<compile_context>
chip_gen: v7x
topology: tpu7x:2x2x1
jax: 0.10.0
libtpu: 0.0.40
codegen_flags: <defaults>
</compile_context>

<pallas_src>
import functools

import jax
import jax.numpy as jnp
from jax.experimental import pallas as pl
from jax.experimental.pallas import tpu as pltpu

NEG_SLOPE = 0.2   # nn.LeakyReLU(negative_slope=0.2)
CLAMP = 1.0       # InvBlockExp clamp
DOWN_NUM = 2
BLOCK_NUM = [1, 1]
CH_IN = 3
CH_OUT = 3


def _vmem_limit_bytes(default=48 * 1024 * 1024):
    """Generation-aware VMEM limit: ~3/4 of per-core capacity, capped at 100 MiB."""
    try:
        info_fn = getattr(pltpu, "get_tpu_info", None)
        if info_fn is None:
            return default
        cap = int(info_fn().vmem_capacity_bytes)
        return min((cap * 3) // 4, 100 * 1024 * 1024)
    except Exception:   # defensive: fall back to a value safe on v5e/v6e/v7x
        return default


# ---------------------------- in-kernel helpers -----------------------------

def _leaky(y, neg_slope):
    return jnp.where(y >= 0, y, neg_slope * y)


def _pad_hw1(x):
    """Zero-pad a [H, W, C] VMEM value by 1 on each spatial side (no HBM pass)."""
    H, W, C = x.shape
    zrow = jnp.zeros((1, W, C), x.dtype)
    x = jnp.concatenate([zrow, x, zrow], axis=0)
    zcol = jnp.zeros((H + 2, 1, C), x.dtype)
    return jnp.concatenate([zcol, x, zcol], axis=1)


def _taps_matmul(taps, w, b, Ho, Wo):
    """im2col matmul: concat taps along channels -> (Ho*Wo, K) @ (K, Cout) + b."""
    Cout = w.shape[-1]
    patch = jnp.concatenate(taps, axis=-1).reshape(Ho * Wo, -1)
    # TODO(synk): on v6e/v7x cast patch/weights to bf16 right before the dot (keep
    # f32 accumulation) once spatial sizes make the MXU the binding slot; kept f32
    # here so the correctness check stays tight and v5e's f32-only VPU is safe.
    out = jnp.dot(patch, w, preferred_element_type=jnp.float32) + b
    return out.reshape(Ho, Wo, Cout)


def _conv3x3_valid(xpad, w, b):
    """'valid' 3x3 conv of a padded [Hp, Wp, Cin] value as ONE im2col matmul.

    w: [9*Cin, Cout] in (kh, kw, cin) tap order; b: [1, Cout]. -> [Ho, Wo, Cout].
    """
    Hp, Wp, _ = xpad.shape
    Ho, Wo = Hp - 2, Wp - 2
    taps = [xpad[i:i + Ho, j:j + Wo, :] for i in range(3) for j in range(3)]
    return _taps_matmul(taps, w, b, Ho, Wo)


def _deinterleave_cols(rows, Wp, C):
    """rows: [R, 2*Wp, C] -> (q0, q1) with q_k[r, j, c] = rows[r, 2*j + k, c].

    Uses only the merge/split reshapes the im2col path already relies on
    (no sublane-strided slicing, no lane-splitting reshape).
    """
    R = rows.shape[0]
    g = rows.reshape(R * 2 * Wp, C).reshape(R * Wp, 2, C)
    q0 = g[:, 0, :].reshape(R, Wp, C)
    q1 = g[:, 1, :].reshape(R, Wp, C)
    return q0, q1


def _down_conv3x3_s2(x, w, b, neg_slope):
    """3x3 / stride-2 / pad-1 conv + LeakyReLU, computing only the (H/2, W/2) output.

    out[i, j] = sum_{kh,kw} xp[2i+kh, 2j+kw] . W[kh, kw] with xp = zero-padded x.
    Parity planes plane[p][q][i', j'] = xp[2i'+p, 2j'+q] are built with in-VMEM
    reshapes; tap (kh, kw) then reads plane[kh%2][kw%2] shifted by (kh//2, kw//2),
    so the matmul uses the standard (kh, kw, cin)-ordered im2col weight [9*Cin, Cout].
    """
    H, W, C = x.shape
    Ho, Wo = H // 2, W // 2
    xp = _pad_hw1(x)                                   # [2*(Ho+1), 2*(Wo+1), C]
    xr = xp.reshape(Ho + 1, 2, 2 * (Wo + 1), C)        # split rows by parity (leading dims)
    planes = []
    for p in range(2):
        planes.append(_deinterleave_cols(xr[:, p], Wo + 1, C))
    taps = [planes[kh % 2][kw % 2][kh // 2:kh // 2 + Ho, kw // 2:kw // 2 + Wo, :]
            for kh in range(3) for kw in range(3)]
    return _leaky(_taps_matmul(taps, w, b, Ho, Wo), neg_slope)


def _inv_block(x, wf, bf, wgh, bgh, split1, clamp):
    """InvBlockExp (rev=False), all intermediates in VMEM/vregs:

        y1 = x1 + F(x2)
        y2 = x2 * exp(clamp * tanh(H(y1)/2)) + G(y1)      # 2*sigmoid(h)-1 == tanh(h/2)

    G and H share one conv with concatenated output channels.
    """
    s1 = split1
    s2 = x.shape[-1] - s1
    x1 = x[..., :s1]
    x2 = x[..., s1:]
    f = _conv3x3_valid(_pad_hw1(x2), wf, bf)
    y1 = x1 + f
    gh = _conv3x3_valid(_pad_hw1(y1), wgh, bgh)
    g = gh[..., :s2]
    h = gh[..., s2:]
    y2 = x2 * jnp.exp(clamp * jnp.tanh(0.5 * h)) + g
    return jnp.concatenate([y1, y2], axis=-1)


# -------------------------------- the kernel ---------------------------------

def _invsrnet_kernel(x_ref, *refs, down_num, block_num, split1, clamp, neg_slope):
    """Whole InvSRNet forward (rev=False) for ONE batch image."""
    o_ref = refs[-1]
    w = refs[:-1]
    k = 0
    cur = x_ref[...]                                   # [H, W, Cin] f32
    for i in range(down_num):
        cur = _down_conv3x3_s2(cur, w[k][...], w[k + 1][...], neg_slope)
        k += 2
        for _ in range(block_num[i]):
            cur = _inv_block(cur, w[k][...], w[k + 1][...], w[k + 2][...],
                             w[k + 3][...], split1, clamp)
            k += 4
    y = _conv3x3_valid(_pad_hw1(cur), w[k][...], w[k + 1][...])   # end_forward_conv
    o_ref[...] = _leaky(y, neg_slope).astype(o_ref.dtype)


# ------------------------------ host-side wrapper ----------------------------

def _im2col_w(w):
    """PyTorch [Cout, Cin, 3, 3] conv weight -> (kh, kw, cin)-ordered [9*Cin, Cout]."""
    cout, cin = w.shape[0], w.shape[1]
    return jnp.transpose(w, (2, 3, 1, 0)).reshape(9 * cin, cout)


def _flatten_params(params):
    flat = []
    for i in range(DOWN_NUM):
        wd, bd = params[f"down{i}"]
        flat += [_im2col_w(wd), bd.reshape(1, -1)]
        for blk in params[f"inv{i}"]:
            wf, bf = blk["F"]
            wg, bg = blk["G"]
            wh, bh = blk["H"]
            flat += [_im2col_w(wf), bf.reshape(1, -1),
                     jnp.concatenate([_im2col_w(wg), _im2col_w(wh)], axis=-1),
                     jnp.concatenate([bg, bh]).reshape(1, -1)]
    we, be = params["end_forward"]
    flat += [_im2col_w(we), be.reshape(1, -1)]
    return flat


def inv_sr_net_forward(x_nchw, params):
    """InvSRNet.forward(x, rev=False). NCHW in / NCHW out, like the PyTorch module."""
    N, C, H, W = x_nchw.shape
    factor = 2 ** DOWN_NUM
    assert H % factor == 0 and W % factor == 0, (
        "kernel assumes H, W divisible by 2**down_num (PyTorch's stride-2 conv "
        "would otherwise produce ceil-sized outputs)")
    # TODO(synk): fold this NCHW->NHWC transpose into the kernel's first conv
    # (3 plane loads) to save one XLA pass at realistic SR resolutions.
    x = jnp.transpose(x_nchw, (0, 2, 3, 1)).astype(jnp.float32)
    flat_w = _flatten_params(params)

    Ho, Wo = H // factor, W // factor
    in_specs = [pl.BlockSpec((None, H, W, C), lambda n: (n, 0, 0, 0))]
    for a in flat_w:                                   # weights: fetched once, VMEM-resident
        in_specs.append(pl.BlockSpec(tuple(a.shape), lambda n: (0, 0)))
    out_specs = pl.BlockSpec((None, Ho, Wo, CH_OUT), lambda n: (n, 0, 0, 0))

    kern = functools.partial(
        _invsrnet_kernel, down_num=DOWN_NUM, block_num=tuple(BLOCK_NUM),
        split1=CH_OUT, clamp=CLAMP, neg_slope=NEG_SLOPE)

    # TODO(synk): for realistic SR resolutions add an H row-strip grid axis with a
    # 1-row halo (bounds the 9x im2col patch blow-up under v7x's 64 MiB VMEM and
    # gives each TensorCore >=3-4 grid steps so double-buffering engages);
    # batch-only fusion is the right shape for the tiny sizes exercised here.
    out = pl.pallas_call(
        kern,
        out_shape=jax.ShapeDtypeStruct((N, Ho, Wo, CH_OUT), jnp.float32),
        grid=(N,),
        in_specs=in_specs,
        out_specs=out_specs,
        compiler_params=pltpu.CompilerParams(
            dimension_semantics=("parallel",),         # batch axis -> megacore / 2 TCs on v7x
            vmem_limit_bytes=_vmem_limit_bytes(),
        ),
    )(x, *flat_w)
    # TODO(synk): rev=True path (end_backward_conv + inverse InvBlockExp + PixelShuffle
    # upscale) not implemented.
    return jnp.transpose(out, (0, 3, 1, 2))            # NHWC -> NCHW


# ------------------------------ params / reference ---------------------------

def init_conv(key, cin, cout, scale=0.1):
    kw, kb = jax.random.split(key)
    w = scale * jax.random.normal(kw, (cout, cin, 3, 3), jnp.float32)
    b = scale * jax.random.normal(kb, (cout,), jnp.float32)
    return w, b


def init_params(key):
    params = {}
    cur = CH_IN
    for i in range(DOWN_NUM):
        key, k = jax.random.split(key)
        params[f"down{i}"] = init_conv(k, cur, cur * 4)
        blocks = []
        for _ in range(BLOCK_NUM[i]):
            s1, s2 = CH_OUT, cur * 4 - CH_OUT
            key, kf, kg, kh = jax.random.split(key, 4)
            blocks.append({"F": init_conv(kf, s2, s1),
                           "G": init_conv(kg, s1, s2),
                           "H": init_conv(kh, s1, s2)})
        params[f"inv{i}"] = blocks
        cur *= 4
    key, k = jax.random.split(key)
    params["end_forward"] = init_conv(k, cur, CH_OUT)
    # end_backward_conv / upscale_blocks exist in __init__ but are unused for rev=False.
    return params


def _ref_conv(x, w, b, stride, lrelu):
    out = jax.lax.conv_general_dilated(
        x, jnp.transpose(w, (2, 3, 1, 0)),
        window_strides=(stride, stride), padding=((1, 1), (1, 1)),
        dimension_numbers=("NHWC", "HWIO", "NHWC"),
        precision=jax.lax.Precision.HIGHEST)
    out = out + b
    if lrelu:
        out = jnp.where(out >= 0, out, NEG_SLOPE * out)
    return out


def ref_forward(x_nchw, params):
    out = jnp.transpose(x_nchw, (0, 2, 3, 1))
    for i in range(DOWN_NUM):
        w, b = params[f"down{i}"]
        out = _ref_conv(out, w, b, 2, True)
        for blk in params[f"inv{i}"]:
            x1, x2 = out[..., :CH_OUT], out[..., CH_OUT:]
            y1 = x1 + _ref_conv(x2, *blk["F"], 1, False)
            s = CLAMP * (2.0 * jax.nn.sigmoid(_ref_conv(y1, *blk["H"], 1, False)) - 1.0)
            y2 = x2 * jnp.exp(s) + _ref_conv(y1, *blk["G"], 1, False)
            out = jnp.concatenate([y1, y2], axis=-1)
    w, b = params["end_forward"]
    out = _ref_conv(out, w, b, 1, True)
    return jnp.transpose(out, (0, 3, 1, 2))


# ----------------------------------- main ------------------------------------

if __name__ == "__main__":
    key = jax.random.PRNGKey(0)
    kx, kp = jax.random.split(key)
    x = jax.random.normal(kx, (2, CH_IN, 16, 16), jnp.float32)   # NCHW like PyTorch
    params = init_params(kp)

    fwd = jax.jit(inv_sr_net_forward)
    out = jax.block_until_ready(fwd(x, params))
    ref = jax.block_until_ready(ref_forward(x, params))

    assert out.shape == (2, CH_OUT, 4, 4), out.shape
    err = float(jnp.max(jnp.abs(out - ref)))
    # Coupling uses the exact tanh(h/2) identity (no approx reciprocal), so the
    # residual is only matmul / transcendental rounding.
    assert err < 2e-3, f"mismatch vs reference: max abs err = {err}"
    print("KERNEL_OK")
</pallas_src>

<mosaic_0001>
module attributes {stable_mosaic.version = 11 : i64} {
  func.func @_invsrnet_kernel(%arg0: i32, %arg1: memref<1x16x16x3xf32, #tpu.memory_space<vmem>>, %arg2: memref<27x12xf32, #tpu.memory_space<vmem>>, %arg3: memref<1x12xf32, #tpu.memory_space<vmem>>, %arg4: memref<81x3xf32, #tpu.memory_space<vmem>>, %arg5: memref<1x3xf32, #tpu.memory_space<vmem>>, %arg6: memref<27x18xf32, #tpu.memory_space<vmem>>, %arg7: memref<1x18xf32, #tpu.memory_space<vmem>>, %arg8: memref<108x48xf32, #tpu.memory_space<vmem>>, %arg9: memref<1x48xf32, #tpu.memory_space<vmem>>, %arg10: memref<405x3xf32, #tpu.memory_space<vmem>>, %arg11: memref<1x3xf32, #tpu.memory_space<vmem>>, %arg12: memref<27x90xf32, #tpu.memory_space<vmem>>, %arg13: memref<1x90xf32, #tpu.memory_space<vmem>>, %arg14: memref<432x3xf32, #tpu.memory_space<vmem>>, %arg15: memref<1x3xf32, #tpu.memory_space<vmem>>, %arg16: memref<1x4x4x3xf32, #tpu.memory_space<vmem>>) attributes {dimension_semantics = [#tpu.dimension_semantics<parallel>], iteration_bounds = array<i64: 2>, scalar_prefetch = 0 : i64, scratch_operands = 0 : i64, tpu.core_type = #tpu.core_type<tc>, window_params = [{transform_indices = @transform_0, window_bounds = array<i64: 1, 16, 16, 3>}, {pipeline_mode = #tpu.pipeline_mode<synchronous>, transform_indices = @transform_1, window_bounds = array<i64: 27, 12>}, {pipeline_mode = #tpu.pipeline_mode<synchronous>, transform_indices = @transform_2, window_bounds = array<i64: 1, 12>}, {pipeline_mode = #tpu.pipeline_mode<synchronous>, transform_indices = @transform_3, window_bounds = array<i64: 81, 3>}, {pipeline_mode = #tpu.pipeline_mode<synchronous>, transform_indices = @transform_4, window_bounds = array<i64: 1, 3>}, {pipeline_mode = #tpu.pipeline_mode<synchronous>, transform_indices = @transform_5, window_bounds = array<i64: 27, 18>}, {pipeline_mode = #tpu.pipeline_mode<synchronous>, transform_indices = @transform_6, window_bounds = array<i64: 1, 18>}, {pipeline_mode = #tpu.pipeline_mode<synchronous>, transform_indices = @transform_7, window_bounds = array<i64: 108, 48>}, {pipeline_mode = #tpu.pipeline_mode<synchronous>, transform_indices = @transform_8, window_bounds = array<i64: 1, 48>}, {pipeline_mode = #tpu.pipeline_mode<synchronous>, transform_indices = @transform_9, window_bounds = array<i64: 405, 3>}, {pipeline_mode = #tpu.pipeline_mode<synchronous>, transform_indices = @transform_10, window_bounds = array<i64: 1, 3>}, {pipeline_mode = #tpu.pipeline_mode<synchronous>, transform_indices = @transform_11, window_bounds = array<i64: 27, 90>}, {pipeline_mode = #tpu.pipeline_mode<synchronous>, transform_indices = @transform_12, window_bounds = array<i64: 1, 90>}, {pipeline_mode = #tpu.pipeline_mode<synchronous>, transform_indices = @transform_13, window_bounds = array<i64: 432, 3>}, {pipeline_mode = #tpu.pipeline_mode<synchronous>, transform_indices = @transform_14, window_bounds = array<i64: 1, 3>}, {transform_indices = @transform_15, window_bounds = array<i64: 1, 4, 4, 3>}]} {
    %c0 = arith.constant 0 : index
    %c0_0 = arith.constant 0 : index
    %c0_1 = arith.constant 0 : index
    %c0_2 = arith.constant 0 : index
    %0 = vector.load %arg1[%c0, %c0_0, %c0_1, %c0_2] : memref<1x16x16x3xf32, #tpu.memory_space<vmem>>, vector<1x16x16x3xf32>
    %1 = vector.shape_cast %0 : vector<1x16x16x3xf32> to vector<16x16x3xf32>
    %c0_3 = arith.constant 0 : index
    %c0_4 = arith.constant 0 : index
    %2 = vector.load %arg2[%c0_3, %c0_4] : memref<27x12xf32, #tpu.memory_space<vmem>>, vector<27x12xf32>
    %c0_5 = arith.constant 0 : index
    %c0_6 = arith.constant 0 : index
    %3 = vector.load %arg3[%c0_5, %c0_6] : memref<1x12xf32, #tpu.memory_space<vmem>>, vector<1x12xf32>
    %cst = arith.constant 0.000000e+00 : f32
    %4 = vector.broadcast %cst : f32 to vector<1x16x3xf32>
    %5 = tpu.concatenate %4, %1, %4 in 0 : vector<1x16x3xf32>, vector<16x16x3xf32>, vector<1x16x3xf32> -> vector<18x16x3xf32>
    %cst_7 = arith.constant 0.000000e+00 : f32
    %6 = vector.broadcast %cst_7 : f32 to vector<18x1x3xf32>
    %7 = tpu.concatenate %6, %5, %6 in 1 : vector<18x1x3xf32>, vector<18x16x3xf32>, vector<18x1x3xf32> -> vector<18x18x3xf32>
    %8 = vector.shape_cast %7 : vector<18x18x3xf32> to vector<9x2x18x3xf32>
    %9 = vector.extract_strided_slice %8 {offsets = [0, 0, 0, 0], sizes = [9, 1, 18, 3], strides = [1, 1, 1, 1]} : vector<9x2x18x3xf32> to vector<9x1x18x3xf32>
    %10 = vector.shape_cast %9 : vector<9x1x18x3xf32> to vector<9x18x3xf32>
    %11 = vector.shape_cast %10 : vector<9x18x3xf32> to vector<162x3xf32>
    %12 = vector.shape_cast %11 : vector<162x3xf32> to vector<81x2x3xf32>
    %13 = vector.extract_strided_slice %12 {offsets = [0, 0, 0], sizes = [81, 1, 3], strides = [1, 1, 1]} : vector<81x2x3xf32> to vector<81x1x3xf32>
    %14 = vector.shape_cast %13 : vector<81x1x3xf32> to vector<81x3xf32>
    %15 = vector.shape_cast %14 : vector<81x3xf32> to vector<9x9x3xf32>
    %16 = vector.extract_strided_slice %12 {offsets = [0, 1, 0], sizes = [81, 1, 3], strides = [1, 1, 1]} : vector<81x2x3xf32> to vector<81x1x3xf32>
    %17 = vector.shape_cast %16 : vector<81x1x3xf32> to vector<81x3xf32>
    %18 = vector.shape_cast %17 : vector<81x3xf32> to vector<9x9x3xf32>
    %19 = vector.extract_strided_slice %8 {offsets = [0, 1, 0, 0], sizes = [9, 1, 18, 3], strides = [1, 1, 1, 1]} : vector<9x2x18x3xf32> to vector<9x1x18x3xf32>
    %20 = vector.shape_cast %19 : vector<9x1x18x3xf32> to vector<9x18x3xf32>
    %21 = vector.shape_cast %20 : vector<9x18x3xf32> to vector<162x3xf32>
    %22 = vector.shape_cast %21 : vector<162x3xf32> to vector<81x2x3xf32>
    %23 = vector.extract_strided_slice %22 {offsets = [0, 0, 0], sizes = [81, 1, 3], strides = [1, 1, 1]} : vector<81x2x3xf32> to vector<81x1x3xf32>
    %24 = vector.shape_cast %23 : vector<81x1x3xf32> to vector<81x3xf32>
    %25 = vector.shape_cast %24 : vector<81x3xf32> to vector<9x9x3xf32>
    %26 = vector.extract_strided_slice %22 {offsets = [0, 1, 0], sizes = [81, 1, 3], strides = [1, 1, 1]} : vector<81x2x3xf32> to vector<81x1x3xf32>
    %27 = vector.shape_cast %26 : vector<81x1x3xf32> to vector<81x3xf32>
    %28 = vector.shape_cast %27 : vector<81x3xf32> to vector<9x9x3xf32>
    %29 = vector.extract_strided_slice %15 {offsets = [0, 0, 0], sizes = [8, 8, 3], strides = [1, 1, 1]} : vector<9x9x3xf32> to vector<8x8x3xf32>
    %30 = vector.extract_strided_slice %18 {offsets = [0, 0, 0], sizes = [8, 8, 3], strides = [1, 1, 1]} : vector<9x9x3xf32> to vector<8x8x3xf32>
    %31 = vector.extract_strided_slice %15 {offsets = [0, 1, 0], sizes = [8, 8, 3], strides = [1, 1, 1]} : vector<9x9x3xf32> to vector<8x8x3xf32>
    %32 = vector.extract_strided_slice %25 {offsets = [0, 0, 0], sizes = [8, 8, 3], strides = [1, 1, 1]} : vector<9x9x3xf32> to vector<8x8x3xf32>
    %33 = vector.extract_strided_slice %28 {offsets = [0, 0, 0], sizes = [8, 8, 3], strides = [1, 1, 1]} : vector<9x9x3xf32> to vector<8x8x3xf32>
    %34 = vector.extract_strided_slice %25 {offsets = [0, 1, 0], sizes = [8, 8, 3], strides = [1, 1, 1]} : vector<9x9x3xf32> to vector<8x8x3xf32>
    %35 = vector.extract_strided_slice %15 {offsets = [1, 0, 0], sizes = [8, 8, 3], strides = [1, 1, 1]} : vector<9x9x3xf32> to vector<8x8x3xf32>
    %36 = vector.extract_strided_slice %18 {offsets = [1, 0, 0], sizes = [8, 8, 3], strides = [1, 1, 1]} : vector<9x9x3xf32> to vector<8x8x3xf32>
    %37 = vector.extract_strided_slice %15 {offsets = [1, 1, 0], sizes = [8, 8, 3], strides = [1, 1, 1]} : vector<9x9x3xf32> to vector<8x8x3xf32>
    %38 = tpu.concatenate %29, %30, %31, %32, %33, %34, %35, %36, %37 in 2 : vector<8x8x3xf32>, vector<8x8x3xf32>, vector<8x8x3xf32>, vector<8x8x3xf32>, vector<8x8x3xf32>, vector<8x8x3xf32>, vector<8x8x3xf32>, vector<8x8x3xf32>, vector<8x8x3xf32> -> vector<8x8x27xf32>
    %39 = vector.shape_cast %38 : vector<8x8x27xf32> to vector<64x27xf32>
    %cst_8 = arith.constant dense<0.000000e+00> : vector<64x12xf32>
    %40 = tpu.matmul %39, %2, %cst_8 {dimension_numbers = #tpu.dot_dimension_numbers<[1], [0], [0], [1], [0, 0, 1, 1], [], []>} : vector<64x27xf32>, vector<27x12xf32>, vector<64x12xf32> -> vector<64x12xf32>
    %41 = vector.broadcast %3 : vector<1x12xf32> to vector<64x12xf32>
    %42 = arith.addf %40, %41 : vector<64x12xf32>
    %43 = vector.shape_cast %42 : vector<64x12xf32> to vector<8x8x12xf32>
    %cst_9 = arith.constant 0.000000e+00 : f32
    %44 = vector.broadcast %cst_9 : f32 to vector<8x8x12xf32>
    %45 = arith.cmpf oge, %43, %44 : vector<8x8x12xf32>
    %cst_10 = arith.constant 2.000000e-01 : f32
    %46 = vector.broadcast %cst_10 : f32 to vector<8x8x12xf32>
    %47 = arith.mulf %46, %43 : vector<8x8x12xf32>
    %48 = arith.select %45, %43, %47 : vector<8x8x12xi1>, vector<8x8x12xf32>
    %c0_11 = arith.constant 0 : index
    %c0_12 = arith.constant 0 : index
    %49 = vector.load %arg4[%c0_11, %c0_12] : memref<81x3xf32, #tpu.memory_space<vmem>>, vector<81x3xf32>
    %c0_13 = arith.constant 0 : index
    %c0_14 = arith.constant 0 : index
    %50 = vector.load %arg5[%c0_13, %c0_14] : memref<1x3xf32, #tpu.memory_space<vmem>>, vector<1x3xf32>
    %c0_15 = arith.constant 0 : index
    %c0_16 = arith.constant 0 : index
    %51 = vector.load %arg6[%c0_15, %c0_16] : memref<27x18xf32, #tpu.memory_space<vmem>>, vector<27x18xf32>
    %c0_17 = arith.constant 0 : index
    %c0_18 = arith.constant 0 : index
    %52 = vector.load %arg7[%c0_17, %c0_18] : memref<1x18xf32, #tpu.memory_space<vmem>>, vector<1x18xf32>
    %53 = vector.extract_strided_slice %48 {offsets = [0, 0, 0], sizes = [8, 8, 3], strides = [1, 1, 1]} : vector<8x8x12xf32> to vector<8x8x3xf32>
    %54 = vector.extract_strided_slice %48 {offsets = [0, 0, 3], sizes = [8, 8, 9], strides = [1, 1, 1]} : vector<8x8x12xf32> to vector<8x8x9xf32>
    %cst_19 = arith.constant 0.000000e+00 : f32
    %55 = vector.broadcast %cst_19 : f32 to vector<1x8x9xf32>
    %56 = tpu.concatenate %55, %54, %55 in 0 : vector<1x8x9xf32>, vector<8x8x9xf32>, vector<1x8x9xf32> -> vector<10x8x9xf32>
    %cst_20 = arith.constant 0.000000e+00 : f32
    %57 = vector.broadcast %cst_20 : f32 to vector<10x1x9xf32>
    %58 = tpu.concatenate %57, %56, %57 in 1 : vector<10x1x9xf32>, vector<10x8x9xf32>, vector<10x1x9xf32> -> vector<10x10x9xf32>
    %59 = vector.extract_strided_slice %58 {offsets = [0, 0, 0], sizes = [8, 8, 9], strides = [1, 1, 1]} : vector<10x10x9xf32> to vector<8x8x9xf32>
    %60 = vector.extract_strided_slice %58 {offsets = [0, 1, 0], sizes = [8, 8, 9], strides = [1, 1, 1]} : vector<10x10x9xf32> to vector<8x8x9xf32>
    %61 = vector.extract_strided_slice %58 {offsets = [0, 2, 0], sizes = [8, 8, 9], strides = [1, 1, 1]} : vector<10x10x9xf32> to vector<8x8x9xf32>
    %62 = vector.extract_strided_slice %58 {offsets = [1, 0, 0], sizes = [8, 8, 9], strides = [1, 1, 1]} : vector<10x10x9xf32> to vector<8x8x9xf32>
    %63 = vector.extract_strided_slice %58 {offsets = [1, 1, 0], sizes = [8, 8, 9], strides = [1, 1, 1]} : vector<10x10x9xf32> to vector<8x8x9xf32>
    %64 = vector.extract_strided_slice %58 {offsets = [1, 2, 0], sizes = [8, 8, 9], strides = [1, 1, 1]} : vector<10x10x9xf32> to vector<8x8x9xf32>
    %65 = vector.extract_strided_slice %58 {offsets = [2, 0, 0], sizes = [8, 8, 9], strides = [1, 1, 1]} : vector<10x10x9xf32> to vector<8x8x9xf32>
    %66 = vector.extract_strided_slice %58 {offsets = [2, 1, 0], sizes = [8, 8, 9], strides = [1, 1, 1]} : vector<10x10x9xf32> to vector<8x8x9xf32>
    %67 = vector.extract_strided_slice %58 {offsets = [2, 2, 0], sizes = [8, 8, 9], strides = [1, 1, 1]} : vector<10x10x9xf32> to vector<8x8x9xf32>
    %68 = tpu.concatenate %59, %60, %61, %62, %63, %64, %65, %66, %67 in 2 : vector<8x8x9xf32>, vector<8x8x9xf32>, vector<8x8x9xf32>, vector<8x8x9xf32>, vector<8x8x9xf32>, vector<8x8x9xf32>, vector<8x8x9xf32>, vector<8x8x9xf32>, vector<8x8x9xf32> -> vector<8x8x81xf32>
    %69 = vector.shape_cast %68 : vector<8x8x81xf32> to vector<64x81xf32>
    %cst_21 = arith.constant dense<0.000000e+00> : vector<64x3xf32>
    %70 = tpu.matmul %69, %49, %cst_21 {dimension_numbers = #tpu.dot_dimension_numbers<[1], [0], [0], [1], [0, 0, 1, 1], [], []>} : vector<64x81xf32>, vector<81x3xf32>, vector<64x3xf32> -> vector<64x3xf32>
    %71 = vector.broadcast %50 : vector<1x3xf32> to vector<64x3xf32>
    %72 = arith.addf %70, %71 : vector<64x3xf32>
    %73 = vector.shape_cast %72 : vector<64x3xf32> to vector<8x8x3xf32>
    %74 = arith.addf %53, %73 : vector<8x8x3xf32>
    %cst_22 = arith.constant 0.000000e+00 : f32
    %75 = vector.broadcast %cst_22 : f32 to vector<1x8x3xf32>
    %76 = tpu.concatenate %75, %74, %75 in 0 : vector<1x8x3xf32>, vector<8x8x3xf32>, vector<1x8x3xf32> -> vector<10x8x3xf32>
    %cst_23 = arith.constant 0.000000e+00 : f32
    %77 = vector.broadcast %cst_23 : f32 to vector<10x1x3xf32>
    %78 = tpu.concatenate %77, %76, %77 in 1 : vector<10x1x3xf32>, vector<10x8x3xf32>, vector<10x1x3xf32> -> vector<10x10x3xf32>
    %79 = vector.extract_strided_slice %78 {offsets = [0, 0, 0], sizes = [8, 8, 3], strides = [1, 1, 1]} : vector<10x10x3xf32> to vector<8x8x3xf32>
    %80 = vector.extract_strided_slice %78 {offsets = [0, 1, 0], sizes = [8, 8, 3], strides = [1, 1, 1]} : vector<10x10x3xf32> to vector<8x8x3xf32>
    %81 = vector.extract_strided_slice %78 {offsets = [0, 2, 0], sizes = [8, 8, 3], strides = [1, 1, 1]} : vector<10x10x3xf32> to vector<8x8x3xf32>
    %82 = vector.extract_strided_slice %78 {offsets = [1, 0, 0], sizes = [8, 8, 3], strides = [1, 1, 1]} : vector<10x10x3xf32> to vector<8x8x3xf32>
    %83 = vector.extract_strided_slice %78 {offsets = [1, 1, 0], sizes = [8, 8, 3], strides = [1, 1, 1]} : vector<10x10x3xf32> to vector<8x8x3xf32>
    %84 = vector.extract_strided_slice %78 {offsets = [1, 2, 0], sizes = [8, 8, 3], strides = [1, 1, 1]} : vector<10x10x3xf32> to vector<8x8x3xf32>
    %85 = vector.extract_strided_slice %78 {offsets = [2, 0, 0], sizes = [8, 8, 3], strides = [1, 1, 1]} : vector<10x10x3xf32> to vector<8x8x3xf32>
    %86 = vector.extract_strided_slice %78 {offsets = [2, 1, 0], sizes = [8, 8, 3], strides = [1, 1, 1]} : vector<10x10x3xf32> to vector<8x8x3xf32>
    %87 = vector.extract_strided_slice %78 {offsets = [2, 2, 0], sizes = [8, 8, 3], strides = [1, 1, 1]} : vector<10x10x3xf32> to vector<8x8x3xf32>
    %88 = tpu.concatenate %79, %80, %81, %82, %83, %84, %85, %86, %87 in 2 : vector<8x8x3xf32>, vector<8x8x3xf32>, vector<8x8x3xf32>, vector<8x8x3xf32>, vector<8x8x3xf32>, vector<8x8x3xf32>, vector<8x8x3xf32>, vector<8x8x3xf32>, vector<8x8x3xf32> -> vector<8x8x27xf32>
    %89 = vector.shape_cast %88 : vector<8x8x27xf32> to vector<64x27xf32>
    %cst_24 = arith.constant dense<0.000000e+00> : vector<64x18xf32>
    %90 = tpu.matmul %89, %51, %cst_24 {dimension_numbers = #tpu.dot_dimension_numbers<[1], [0], [0], [1], [0, 0, 1, 1], [], []>} : vector<64x27xf32>, vector<27x18xf32>, vector<64x18xf32> -> vector<64x18xf32>
    %91 = vector.broadcast %52 : vector<1x18xf32> to vector<64x18xf32>
    %92 = arith.addf %90, %91 : vector<64x18xf32>
    %93 = vector.shape_cast %92 : vector<64x18xf32> to vector<8x8x18xf32>
    %94 = vector.extract_strided_slice %93 {offsets = [0, 0, 0], sizes = [8, 8, 9], strides = [1, 1, 1]} : vector<8x8x18xf32> to vector<8x8x9xf32>
    %95 = vector.extract_strided_slice %93 {offsets = [0, 0, 9], sizes = [8, 8, 9], strides = [1, 1, 1]} : vector<8x8x18xf32> to vector<8x8x9xf32>
    %cst_25 = arith.constant 5.000000e-01 : f32
    %96 = vector.broadcast %cst_25 : f32 to vector<8x8x9xf32>
    %97 = arith.mulf %96, %95 : vector<8x8x9xf32>
    %98 = math.tanh %97 : vector<8x8x9xf32>
    %cst_26 = arith.constant 1.000000e+00 : f32
    %99 = vector.broadcast %cst_26 : f32 to vector<8x8x9xf32>
    %100 = arith.mulf %99, %98 : vector<8x8x9xf32>
    %101 = math.exp %100 : vector<8x8x9xf32>
    %102 = arith.mulf %54, %101 : vector<8x8x9xf32>
    %103 = arith.addf %102, %94 : vector<8x8x9xf32>
    %104 = tpu.concatenate %74, %103 in 2 : vector<8x8x3xf32>, vector<8x8x9xf32> -> vector<8x8x12xf32>
    %c0_27 = arith.constant 0 : index
    %c0_28 = arith.constant 0 : index
    %105 = vector.load %arg8[%c0_27, %c0_28] : memref<108x48xf32, #tpu.memory_space<vmem>>, vector<108x48xf32>
    %c0_29 = arith.constant 0 : index
    %c0_30 = arith.constant 0 : index
    %106 = vector.load %arg9[%c0_29, %c0_30] : memref<1x48xf32, #tpu.memory_space<vmem>>, vector<1x48xf32>
    %cst_31 = arith.constant 0.000000e+00 : f32
    %107 = vector.broadcast %cst_31 : f32 to vector<1x8x12xf32>
    %108 = tpu.concatenate %107, %104, %107 in 0 : vector<1x8x12xf32>, vector<8x8x12xf32>, vector<1x8x12xf32> -> vector<10x8x12xf32>
    %cst_32 = arith.constant 0.000000e+00 : f32
    %109 = vector.broadcast %cst_32 : f32 to vector<10x1x12xf32>
    %110 = tpu.concatenate %109, %108, %109 in 1 : vector<10x1x12xf32>, vector<10x8x12xf32>, vector<10x1x12xf32> -> vector<10x10x12xf32>
    %111 = vector.shape_cast %110 : vector<10x10x12xf32> to vector<5x2x10x12xf32>
    %112 = vector.extract_strided_slice %111 {offsets = [0, 0, 0, 0], sizes = [5, 1, 10, 12], strides = [1, 1, 1, 1]} : vector<5x2x10x12xf32> to vector<5x1x10x12xf32>
    %113 = vector.shape_cast %112 : vector<5x1x10x12xf32> to vector<5x10x12xf32>
    %114 = vector.shape_cast %113 : vector<5x10x12xf32> to vector<50x12xf32>
    %115 = vector.shape_cast %114 : vector<50x12xf32> to vector<25x2x12xf32>
    %116 = vector.extract_strided_slice %115 {offsets = [0, 0, 0], sizes = [25, 1, 12], strides = [1, 1, 1]} : vector<25x2x12xf32> to vector<25x1x12xf32>
    %117 = vector.shape_cast %116 : vector<25x1x12xf32> to vector<25x12xf32>
    %118 = vector.shape_cast %117 : vector<25x12xf32> to vector<5x5x12xf32>
    %119 = vector.extract_strided_slice %115 {offsets = [0, 1, 0], sizes = [25, 1, 12], strides = [1, 1, 1]} : vector<25x2x12xf32> to vector<25x1x12xf32>
    %120 = vector.shape_cast %119 : vector<25x1x12xf32> to vector<25x12xf32>
    %121 = vector.shape_cast %120 : vector<25x12xf32> to vector<5x5x12xf32>
    %122 = vector.extract_strided_slice %111 {offsets = [0, 1, 0, 0], sizes = [5, 1, 10, 12], strides = [1, 1, 1, 1]} : vector<5x2x10x12xf32> to vector<5x1x10x12xf32>
    %123 = vector.shape_cast %122 : vector<5x1x10x12xf32> to vector<5x10x12xf32>
    %124 = vector.shape_cast %123 : vector<5x10x12xf32> to vector<50x12xf32>
    %125 = vector.shape_cast %124 : vector<50x12xf32> to vector<25x2x12xf32>
    %126 = vector.extract_strided_slice %125 {offsets = [0, 0, 0], sizes = [25, 1, 12], strides = [1, 1, 1]} : vector<25x2x12xf32> to vector<25x1x12xf32>
    %127 = vector.shape_cast %126 : vector<25x1x12xf32> to vector<25x12xf32>
    %128 = vector.shape_cast %127 : vector<25x12xf32> to vector<5x5x12xf32>
    %129 = vector.extract_strided_slice %125 {offsets = [0, 1, 0], sizes = [25, 1, 12], strides = [1, 1, 1]} : vector<25x2x12xf32> to vector<25x1x12xf32>
    %130 = vector.shape_cast %129 : vector<25x1x12xf32> to vector<25x12xf32>
    %131 = vector.shape_cast %130 : vector<25x12xf32> to vector<5x5x12xf32>
    %132 = vector.extract_strided_slice %118 {offsets = [0, 0, 0], sizes = [4, 4, 12], strides = [1, 1, 1]} : vector<5x5x12xf32> to vector<4x4x12xf32>
    %133 = vector.extract_strided_slice %121 {offsets = [0, 0, 0], sizes = [4, 4, 12], strides = [1, 1, 1]} : vector<5x5x12xf32> to vector<4x4x12xf32>
    %134 = vector.extract_strided_slice %118 {offsets = [0, 1, 0], sizes = [4, 4, 12], strides = [1, 1, 1]} : vector<5x5x12xf32> to vector<4x4x12xf32>
    %135 = vector.extract_strided_slice %128 {offsets = [0, 0, 0], sizes = [4, 4, 12], strides = [1, 1, 1]} : vector<5x5x12xf32> to vector<4x4x12xf32>
    %136 = vector.extract_strided_slice %131 {offsets = [0, 0, 0], sizes = [4, 4, 12], strides = [1, 1, 1]} : vector<5x5x12xf32> to vector<4x4x12xf32>
    %137 = vector.extract_strided_slice %128 {offsets = [0, 1, 0], sizes = [4, 4, 12], strides = [1, 1, 1]} : vector<5x5x12xf32> to vector<4x4x12xf32>
    %138 = vector.extract_strided_slice %118 {offsets = [1, 0, 0], sizes = [4, 4, 12], strides = [1, 1, 1]} : vector<5x5x12xf32> to vector<4x4x12xf32>
    %139 = vector.extract_strided_slice %121 {offsets = [1, 0, 0], sizes = [4, 4, 12], strides = [1, 1, 1]} : vector<5x5x12xf32> to vector<4x4x12xf32>
    %140 = vector.extract_strided_slice %118 {offsets = [1, 1, 0], sizes = [4, 4, 12], strides = [1, 1, 1]} : vector<5x5x12xf32> to vector<4x4x12xf32>
    %141 = tpu.concatenate %132, %133, %134, %135, %136, %137, %138, %139, %140 in 2 : vector<4x4x12xf32>, vector<4x4x12xf32>, vector<4x4x12xf32>, vector<4x4x12xf32>, vector<4x4x12xf32>, vector<4x4x12xf32>, vector<4x4x12xf32>, vector<4x4x12xf32>, vector<4x4x12xf32> -> vector<4x4x108xf32>
    %142 = vector.shape_cast %141 : vector<4x4x108xf32> to vector<16x108xf32>
    %cst_33 = arith.constant dense<0.000000e+00> : vector<16x48xf32>
    %143 = tpu.matmul %142, %105, %cst_33 {dimension_numbers = #tpu.dot_dimension_numbers<[1], [0], [0], [1], [0, 0, 1, 1], [], []>} : vector<16x108xf32>, vector<108x48xf32>, vector<16x48xf32> -> vector<16x48xf32>
    %144 = vector.broadcast %106 : vector<1x48xf32> to vector<16x48xf32>
    %145 = arith.addf %143, %144 : vector<16x48xf32>
    %146 = vector.shape_cast %145 : vector<16x48xf32> to vector<4x4x48xf32>
    %cst_34 = arith.constant 0.000000e+00 : f32
    %147 = vector.broadcast %cst_34 : f32 to vector<4x4x48xf32>
    %148 = arith.cmpf oge, %146, %147 : vector<4x4x48xf32>
    %cst_35 = arith.constant 2.000000e-01 : f32
    %149 = vector.broadcast %cst_35 : f32 to vector<4x4x48xf32>
    %150 = arith.mulf %149, %146 : vector<4x4x48xf32>
    %151 = arith.select %148, %146, %150 : vector<4x4x48xi1>, vector<4x4x48xf32>
    %c0_36 = arith.constant 0 : index
    %c0_37 = arith.constant 0 : index
    %152 = vector.load %arg10[%c0_36, %c0_37] : memref<405x3xf32, #tpu.memory_space<vmem>>, vector<405x3xf32>
    %c0_38 = arith.constant 0 : index
    %c0_39 = arith.constant 0 : index
    %153 = vector.load %arg11[%c0_38, %c0_39] : memref<1x3xf32, #tpu.memory_space<vmem>>, vector<1x3xf32>
    %c0_40 = arith.constant 0 : index
    %c0_41 = arith.constant 0 : index
    %154 = vector.load %arg12[%c0_40, %c0_41] : memref<27x90xf32, #tpu.memory_space<vmem>>, vector<27x90xf32>
    %c0_42 = arith.constant 0 : index
    %c0_43 = arith.constant 0 : index
    %155 = vector.load %arg13[%c0_42, %c0_43] : memref<1x90xf32, #tpu.memory_space<vmem>>, vector<1x90xf32>
    %156 = vector.extract_strided_slice %151 {offsets = [0, 0, 0], sizes = [4, 4, 3], strides = [1, 1, 1]} : vector<4x4x48xf32> to vector<4x4x3xf32>
    %157 = vector.extract_strided_slice %151 {offsets = [0, 0, 3], sizes = [4, 4, 45], strides = [1, 1, 1]} : vector<4x4x48xf32> to vector<4x4x45xf32>
    %cst_44 = arith.constant 0.000000e+00 : f32
    %158 = vector.broadcast %cst_44 : f32 to vector<1x4x45xf32>
    %159 = tpu.concatenate %158, %157, %158 in 0 : vector<1x4x45xf32>, vector<4x4x45xf32>, vector<1x4x45xf32> -> vector<6x4x45xf32>
    %cst_45 = arith.constant 0.000000e+00 : f32
    %160 = vector.broadcast %cst_45 : f32 to vector<6x1x45xf32>
    %161 = tpu.concatenate %160, %159, %160 in 1 : vector<6x1x45xf32>, vector<6x4x45xf32>, vector<6x1x45xf32> -> vector<6x6x45xf32>
    %162 = vector.extract_strided_slice %161 {offsets = [0, 0, 0], sizes = [4, 4, 45], strides = [1, 1, 1]} : vector<6x6x45xf32> to vector<4x4x45xf32>
    %163 = vector.extract_strided_slice %161 {offsets = [0, 1, 0], sizes = [4, 4, 45], strides = [1, 1, 1]} : vector<6x6x45xf32> to vector<4x4x45xf32>
    %164 = vector.extract_strided_slice %161 {offsets = [0, 2, 0], sizes = [4, 4, 45], strides = [1, 1, 1]} : vector<6x6x45xf32> to vector<4x4x45xf32>
    %165 = vector.extract_strided_slice %161 {offsets = [1, 0, 0], sizes = [4, 4, 45], strides = [1, 1, 1]} : vector<6x6x45xf32> to vector<4x4x45xf32>
    %166 = vector.extract_strided_slice %161 {offsets = [1, 1, 0], sizes = [4, 4, 45], strides = [1, 1, 1]} : vector<6x6x45xf32> to vector<4x4x45xf32>
    %167 = vector.extract_strided_slice %161 {offsets = [1, 2, 0], sizes = [4, 4, 45], strides = [1, 1, 1]} : vector<6x6x45xf32> to vector<4x4x45xf32>
    %168 = vector.extract_strided_slice %161 {offsets = [2, 0, 0], sizes = [4, 4, 45], strides = [1, 1, 1]} : vector<6x6x45xf32> to vector<4x4x45xf32>
    %169 = vector.extract_strided_slice %161 {offsets = [2, 1, 0], sizes = [4, 4, 45], strides = [1, 1, 1]} : vector<6x6x45xf32> to vector<4x4x45xf32>
    %170 = vector.extract_strided_slice %161 {offsets = [2, 2, 0], sizes = [4, 4, 45], strides = [1, 1, 1]} : vector<6x6x45xf32> to vector<4x4x45xf32>
    %171 = tpu.concatenate %162, %163, %164, %165, %166, %167, %168, %169, %170 in 2 : vector<4x4x45xf32>, vector<4x4x45xf32>, vector<4x4x45xf32>, vector<4x4x45xf32>, vector<4x4x45xf32>, vector<4x4x45xf32>, vector<4x4x45xf32>, vector<4x4x45xf32>, vector<4x4x45xf32> -> vector<4x4x405xf32>
    %172 = vector.shape_cast %171 : vector<4x4x405xf32> to vector<16x405xf32>
    %cst_46 = arith.constant dense<0.000000e+00> : vector<16x3xf32>
    %173 = tpu.matmul %172, %152, %cst_46 {dimension_numbers = #tpu.dot_dimension_numbers<[1], [0], [0], [1], [0, 0, 1, 1], [], []>} : vector<16x405xf32>, vector<405x3xf32>, vector<16x3xf32> -> vector<16x3xf32>
    %174 = vector.broadcast %153 : vector<1x3xf32> to vector<16x3xf32>
    %175 = arith.addf %173, %174 : vector<16x3xf32>
    %176 = vector.shape_cast %175 : vector<16x3xf32> to vector<4x4x3xf32>
    %177 = arith.addf %156, %176 : vector<4x4x3xf32>
    %cst_47 = arith.constant 0.000000e+00 : f32
    %178 = vector.broadcast %cst_47 : f32 to vector<1x4x3xf32>
    %179 = tpu.concatenate %178, %177, %178 in 0 : vector<1x4x3xf32>, vector<4x4x3xf32>, vector<1x4x3xf32> -> vector<6x4x3xf32>
    %cst_48 = arith.constant 0.000000e+00 : f32
    %180 = vector.broadcast %cst_48 : f32 to vector<6x1x3xf32>
    %181 = tpu.concatenate %180, %179, %180 in 1 : vector<6x1x3xf32>, vector<6x4x3xf32>, vector<6x1x3xf32> -> vector<6x6x3xf32>
    %182 = vector.extract_strided_slice %181 {offsets = [0, 0, 0], sizes = [4, 4, 3], strides = [1, 1, 1]} : vector<6x6x3xf32> to vector<4x4x3xf32>
    %183 = vector.extract_strided_slice %181 {offsets = [0, 1, 0], sizes = [4, 4, 3], strides = [1, 1, 1]} : vector<6x6x3xf32> to vector<4x4x3xf32>
    %184 = vector.extract_strided_slice %181 {offsets = [0, 2, 0], sizes = [4, 4, 3], strides = [1, 1, 1]} : vector<6x6x3xf32> to vector<4x4x3xf32>
    %185 = vector.extract_strided_slice %181 {offsets = [1, 0, 0], sizes = [4, 4, 3], strides = [1, 1, 1]} : vector<6x6x3xf32> to vector<4x4x3xf32>
    %186 = vector.extract_strided_slice %181 {offsets = [1, 1, 0], sizes = [4, 4, 3], strides = [1, 1, 1]} : vector<6x6x3xf32> to vector<4x4x3xf32>
    %187 = vector.extract_strided_slice %181 {offsets = [1, 2, 0], sizes = [4, 4, 3], strides = [1, 1, 1]} : vector<6x6x3xf32> to vector<4x4x3xf32>
    %188 = vector.extract_strided_slice %181 {offsets = [2, 0, 0], sizes = [4, 4, 3], strides = [1, 1, 1]} : vector<6x6x3xf32> to vector<4x4x3xf32>
    %189 = vector.extract_strided_slice %181 {offsets = [2, 1, 0], sizes = [4, 4, 3], strides = [1, 1, 1]} : vector<6x6x3xf32> to vector<4x4x3xf32>
    %190 = vector.extract_strided_slice %181 {offsets = [2, 2, 0], sizes = [4, 4, 3], strides = [1, 1, 1]} : vector<6x6x3xf32> to vector<4x4x3xf32>
    %191 = tpu.concatenate %182, %183, %184, %185, %186, %187, %188, %189, %190 in 2 : vector<4x4x3xf32>, vector<4x4x3xf32>, vector<4x4x3xf32>, vector<4x4x3xf32>, vector<4x4x3xf32>, vector<4x4x3xf32>, vector<4x4x3xf32>, vector<4x4x3xf32>, vector<4x4x3xf32> -> vector<4x4x27xf32>
    %192 = vector.shape_cast %191 : vector<4x4x27xf32> to vector<16x27xf32>
    %cst_49 = arith.constant dense<0.000000e+00> : vector<16x90xf32>
    %193 = tpu.matmul %192, %154, %cst_49 {dimension_numbers = #tpu.dot_dimension_numbers<[1], [0], [0], [1], [0, 0, 1, 1], [], []>} : vector<16x27xf32>, vector<27x90xf32>, vector<16x90xf32> -> vector<16x90xf32>
    %194 = vector.broadcast %155 : vector<1x90xf32> to vector<16x90xf32>
    %195 = arith.addf %193, %194 : vector<16x90xf32>
    %196 = vector.shape_cast %195 : vector<16x90xf32> to vector<4x4x90xf32>
    %197 = vector.extract_strided_slice %196 {offsets = [0, 0, 0], sizes = [4, 4, 45], strides = [1, 1, 1]} : vector<4x4x90xf32> to vector<4x4x45xf32>
    %198 = vector.extract_strided_slice %196 {offsets = [0, 0, 45], sizes = [4, 4, 45], strides = [1, 1, 1]} : vector<4x4x90xf32> to vector<4x4x45xf32>
    %cst_50 = arith.constant 5.000000e-01 : f32
    %199 = vector.broadcast %cst_50 : f32 to vector<4x4x45xf32>
    %200 = arith.mulf %199, %198 : vector<4x4x45xf32>
    %201 = math.tanh %200 : vector<4x4x45xf32>
    %cst_51 = arith.constant 1.000000e+00 : f32
    %202 = vector.broadcast %cst_51 : f32 to vector<4x4x45xf32>
    %203 = arith.mulf %202, %201 : vector<4x4x45xf32>
    %204 = math.exp %203 : vector<4x4x45xf32>
    %205 = arith.mulf %157, %204 : vector<4x4x45xf32>
    %206 = arith.addf %205, %197 : vector<4x4x45xf32>
    %207 = tpu.concatenate %177, %206 in 2 : vector<4x4x3xf32>, vector<4x4x45xf32> -> vector<4x4x48xf32>
    %cst_52 = arith.constant 0.000000e+00 : f32
    %208 = vector.broadcast %cst_52 : f32 to vector<1x4x48xf32>
    %209 = tpu.concatenate %208, %207, %208 in 0 : vector<1x4x48xf32>, vector<4x4x48xf32>, vector<1x4x48xf32> -> vector<6x4x48xf32>
    %cst_53 = arith.constant 0.000000e+00 : f32
    %210 = vector.broadcast %cst_53 : f32 to vector<6x1x48xf32>
    %211 = tpu.concatenate %210, %209, %210 in 1 : vector<6x1x48xf32>, vector<6x4x48xf32>, vector<6x1x48xf32> -> vector<6x6x48xf32>
    %c0_54 = arith.constant 0 : index
    %c0_55 = arith.constant 0 : index
    %212 = vector.load %arg14[%c0_54, %c0_55] : memref<432x3xf32, #tpu.memory_space<vmem>>, vector<432x3xf32>
    %c0_56 = arith.constant 0 : index
    %c0_57 = arith.constant 0 : index
    %213 = vector.load %arg15[%c0_56, %c0_57] : memref<1x3xf32, #tpu.memory_space<vmem>>, vector<1x3xf32>
    %214 = vector.extract_strided_slice %211 {offsets = [0, 0, 0], sizes = [4, 4, 48], strides = [1, 1, 1]} : vector<6x6x48xf32> to vector<4x4x48xf32>
    %215 = vector.extract_strided_slice %211 {offsets = [0, 1, 0], sizes = [4, 4, 48], strides = [1, 1, 1]} : vector<6x6x48xf32> to vector<4x4x48xf32>
    %216 = vector.extract_strided_slice %211 {offsets = [0, 2, 0], sizes = [4, 4, 48], strides = [1, 1, 1]} : vector<6x6x48xf32> to vector<4x4x48xf32>
    %217 = vector.extract_strided_slice %211 {offsets = [1, 0, 0], sizes = [4, 4, 48], strides = [1, 1, 1]} : vector<6x6x48xf32> to vector<4x4x48xf32>
    %218 = vector.extract_strided_slice %211 {offsets = [1, 1, 0], sizes = [4, 4, 48], strides = [1, 1, 1]} : vector<6x6x48xf32> to vector<4x4x48xf32>
    %219 = vector.extract_strided_slice %211 {offsets = [1, 2, 0], sizes = [4, 4, 48], strides = [1, 1, 1]} : vector<6x6x48xf32> to vector<4x4x48xf32>
    %220 = vector.extract_strided_slice %211 {offsets = [2, 0, 0], sizes = [4, 4, 48], strides = [1, 1, 1]} : vector<6x6x48xf32> to vector<4x4x48xf32>
    %221 = vector.extract_strided_slice %211 {offsets = [2, 1, 0], sizes = [4, 4, 48], strides = [1, 1, 1]} : vector<6x6x48xf32> to vector<4x4x48xf32>
    %222 = vector.extract_strided_slice %211 {offsets = [2, 2, 0], sizes = [4, 4, 48], strides = [1, 1, 1]} : vector<6x6x48xf32> to vector<4x4x48xf32>
    %223 = tpu.concatenate %214, %215, %216, %217, %218, %219, %220, %221, %222 in 2 : vector<4x4x48xf32>, vector<4x4x48xf32>, vector<4x4x48xf32>, vector<4x4x48xf32>, vector<4x4x48xf32>, vector<4x4x48xf32>, vector<4x4x48xf32>, vector<4x4x48xf32>, vector<4x4x48xf32> -> vector<4x4x432xf32>
    %224 = vector.shape_cast %223 : vector<4x4x432xf32> to vector<16x432xf32>
    %cst_58 = arith.constant dense<0.000000e+00> : vector<16x3xf32>
    %225 = tpu.matmul %224, %212, %cst_58 {dimension_numbers = #tpu.dot_dimension_numbers<[1], [0], [0], [1], [0, 0, 1, 1], [], []>} : vector<16x432xf32>, vector<432x3xf32>, vector<16x3xf32> -> vector<16x3xf32>
    %226 = vector.broadcast %213 : vector<1x3xf32> to vector<16x3xf32>
    %227 = arith.addf %225, %226 : vector<16x3xf32>
    %228 = vector.shape_cast %227 : vector<16x3xf32> to vector<4x4x3xf32>
    %cst_59 = arith.constant 0.000000e+00 : f32
    %229 = vector.broadcast %cst_59 : f32 to vector<4x4x3xf32>
    %230 = arith.cmpf oge, %228, %229 : vector<4x4x3xf32>
    %cst_60 = arith.constant 2.000000e-01 : f32
    %231 = vector.broadcast %cst_60 : f32 to vector<4x4x3xf32>
    %232 = arith.mulf %231, %228 : vector<4x4x3xf32>
    %233 = arith.select %230, %228, %232 : vector<4x4x3xi1>, vector<4x4x3xf32>
    %c0_61 = arith.constant 0 : index
    %c0_62 = arith.constant 0 : index
    %c0_63 = arith.constant 0 : index
    %c0_64 = arith.constant 0 : index
    %234 = vector.load %arg16[%c0_61, %c0_62, %c0_63, %c0_64] : memref<1x4x4x3xf32, #tpu.memory_space<vmem>>, vector<1x4x4x3xf32>
    %235 = vector.shape_cast %234 : vector<1x4x4x3xf32> to vector<4x4x3xf32>
    %236 = vector.shape_cast %233 : vector<4x4x3xf32> to vector<1x4x4x3xf32>
    tpu.vector_store %arg16[%c0_61, %c0_62, %c0_63, %c0_64], %236 {strides = array<i32>} : memref<1x4x4x3xf32, #tpu.memory_space<vmem>>, vector<1x4x4x3xf32>,
    return
  }
  func.func @transform_0(%arg0: i32) -> (i32, i32, i32, i32) {
    %c0_i32 = arith.constant 0 : i32
    %c0_i32_0 = arith.constant 0 : i32
    %c0_i32_1 = arith.constant 0 : i32
    %c0_i32_2 = arith.constant 0 : i32
    return %arg0, %c0_i32, %c0_i32_0, %c0_i32_1 : i32, i32, i32, i32
  }
  func.func @transform_1(%arg0: i32) -> (i32, i32) {
    %c0_i32 = arith.constant 0 : i32
    %c0_i32_0 = arith.constant 0 : i32
    %c0_i32_1 = arith.constant 0 : i32
    return %c0_i32, %c0_i32_0 : i32, i32
  }
  func.func @transform_2(%arg0: i32) -> (i32, i32) {
    %c0_i32 = arith.constant 0 : i32
    %c0_i32_0 = arith.constant 0 : i32
    %c0_i32_1 = arith.constant 0 : i32
    return %c0_i32, %c0_i32_0 : i32, i32
  }
  func.func @transform_3(%arg0: i32) -> (i32, i32) {
    %c0_i32 = arith.constant 0 : i32
    %c0_i32_0 = arith.constant 0 : i32
    %c0_i32_1 = arith.constant 0 : i32
    return %c0_i32, %c0_i32_0 : i32, i32
  }
  func.func @transform_4(%arg0: i32) -> (i32, i32) {
    %c0_i32 = arith.constant 0 : i32
    %c0_i32_0 = arith.constant 0 : i32
    %c0_i32_1 = arith.constant 0 : i32
    return %c0_i32, %c0_i32_0 : i32, i32
  }
  func.func @transform_5(%arg0: i32) -> (i32, i32) {
    %c0_i32 = arith.constant 0 : i32
    %c0_i32_0 = arith.constant 0 : i32
    %c0_i32_1 = arith.constant 0 : i32
    return %c0_i32, %c0_i32_0 : i32, i32
  }
  func.func @transform_6(%arg0: i32) -> (i32, i32) {
    %c0_i32 = arith.constant 0 : i32
    %c0_i32_0 = arith.constant 0 : i32
    %c0_i32_1 = arith.constant 0 : i32
    return %c0_i32, %c0_i32_0 : i32, i32
  }
  func.func @transform_7(%arg0: i32) -> (i32, i32) {
    %c0_i32 = arith.constant 0 : i32
    %c0_i32_0 = arith.constant 0 : i32
    %c0_i32_1 = arith.constant 0 : i32
    return %c0_i32, %c0_i32_0 : i32, i32
  }
  func.func @transform_8(%arg0: i32) -> (i32, i32) {
    %c0_i32 = arith.constant 0 : i32
    %c0_i32_0 = arith.constant 0 : i32
    %c0_i32_1 = arith.constant 0 : i32
    return %c0_i32, %c0_i32_0 : i32, i32
  }
  func.func @transform_9(%arg0: i32) -> (i32, i32) {
    %c0_i32 = arith.constant 0 : i32
    %c0_i32_0 = arith.constant 0 : i32
    %c0_i32_1 = arith.constant 0 : i32
    return %c0_i32, %c0_i32_0 : i32, i32
  }
  func.func @transform_10(%arg0: i32) -> (i32, i32) {
    %c0_i32 = arith.constant 0 : i32
    %c0_i32_0 = arith.constant 0 : i32
    %c0_i32_1 = arith.constant 0 : i32
    return %c0_i32, %c0_i32_0 : i32, i32
  }
  func.func @transform_11(%arg0: i32) -> (i32, i32) {
    %c0_i32 = arith.constant 0 : i32
    %c0_i32_0 = arith.constant 0 : i32
    %c0_i32_1 = arith.constant 0 : i32
    return %c0_i32, %c0_i32_0 : i32, i32
  }
  func.func @transform_12(%arg0: i32) -> (i32, i32) {
    %c0_i32 = arith.constant 0 : i32
    %c0_i32_0 = arith.constant 0 : i32
    %c0_i32_1 = arith.constant 0 : i32
    return %c0_i32, %c0_i32_0 : i32, i32
  }
  func.func @transform_13(%arg0: i32) -> (i32, i32) {
    %c0_i32 = arith.constant 0 : i32
    %c0_i32_0 = arith.constant 0 : i32
    %c0_i32_1 = arith.constant 0 : i32
    return %c0_i32, %c0_i32_0 : i32, i32
  }
  func.func @transform_14(%arg0: i32) -> (i32, i32) {
    %c0_i32 = arith.constant 0 : i32
    %c0_i32_0 = arith.constant 0 : i32
    %c0_i32_1 = arith.constant 0 : i32
    return %c0_i32, %c0_i32_0 : i32, i32
  }
  func.func @transform_15(%arg0: i32) -> (i32, i32, i32, i32) {
    %c0_i32 = arith.constant 0 : i32
    %c0_i32_0 = arith.constant 0 : i32
    %c0_i32_1 = arith.constant 0 : i32
    %c0_i32_2 = arith.constant 0 : i32
    return %arg0, %c0_i32, %c0_i32_0, %c0_i32_1 : i32, i32, i32, i32
  }
}

</mosaic_0001>

<bundles_post_ra>
// kernel: inv_sr_net_forward.1
= control target key start
LH: loop header
LB: loop body
LE: loop exit
PB: predicated region body
PF: predicated region fallthrough
CT: control target
= control target key end

     0   :  { %s7404_s18 = smov 0   ;;  %s11233_s0 = inlined_call_operand.vmem [shape: f32[2,16,16,3], index: 0, kind: input, shape index: {}]   ;;  %s11234_s1 = inlined_call_operand.vmem [shape: f32[27,12], index: 1, kind: input, shape index: {}]   ;;  %s11235_s2 = inlined_call_operand.vmem [shape: f32[1,12], index: 2, kind: input, shape index: {}]   ;;  %s11236_s3 = inlined_call_operand.vmem [shape: f32[81,3], index: 3, kind: input, shape index: {}]   ;;  %s11237_s4 = inlined_call_operand.vmem [shape: f32[1,3], index: 4, kind: input, shape index: {}]   ;;  %s11238_s5 = inlined_call_operand.vmem [shape: f32[27,18], index: 5, kind: input, shape index: {}]   ;;  %s11239_s6 = inlined_call_operand.vmem [shape: f32[1,18], index: 6, kind: input, shape index: {}]   ;;  %s11240_s7 = inlined_call_operand.vmem [shape: f32[108,48], index: 7, kind: input, shape index: {}]   ;;  %s11241_s8 = inlined_call_operand.vmem [shape: f32[1,48], index: 8, kind: input, shape index: {}]   ;;  %s11242_s9 = inlined_call_operand.vmem [shape: f32[405,3], index: 9, kind: input, shape index: {}]   ;;  %s11243_s10 = inlined_call_operand.vmem [shape: f32[1,3], index: 10, kind: input, shape index: {}]   ;;  %s11244_s11 = inlined_call_operand.vmem [shape: f32[27,90], index: 11, kind: input, shape index: {}]   ;;  %s11245_s12 = inlined_call_operand.vmem [shape: f32[1,90], index: 12, kind: input, shape index: {}]   ;;  %s11246_s13 = inlined_call_operand.vmem [shape: f32[432,3], index: 13, kind: input, shape index: {}]   ;;  %s11247_s14 = inlined_call_operand.vmem [shape: f32[1,3], index: 14, kind: input, shape index: {}]   ;;  %s11248_s15 = inlined_call_operand.vmem [shape: f32[2,4,4,3], index: 15, kind: output, shape index: {}]  }
   0x1   :  { %11331 = sst [smem:[#allocation17_spill]] %s11233_s0 }
   0x2   :  { %11332 = sst [smem:[#allocation18_spill]] %s11234_s1 }
   0x3   :  { %11333 = sst [smem:[#allocation19_spill]] %s11235_s2 }
   0x4   :  { %11334 = sst [smem:[#allocation20_spill]] %s11236_s3 }
   0x5   :  { %11335 = sst [smem:[#allocation21_spill]] %s11237_s4 }
   0x6   :  { %11336 = sst [smem:[#allocation22_spill]] %s11238_s5 }
   0x7   :  { %11337 = sst [smem:[#allocation23_spill]] %s11239_s6 }
   0x8   :  { %11338 = sst [smem:[#allocation24_spill]] %s11240_s7 }
   0x9   :  { %11339 = sst [smem:[#allocation25_spill]] %s11241_s8 }
   0xa   :  { %11340 = sst [smem:[#allocation26_spill]] %s11248_s15 }
   0xb LB: > { %11341 = sst [smem:[#allocation2_spill]] %s7285_s18  ;;  %s6651_s19 = sadd.s32 4294967295, %s7285_s18   ;;  %s7285_s18 = sphi %s7404_s18, %s25_s18  }
   0xc   : > { %p6655_p0 = scmp.ge.s32.totalorder %s7285_s18, 1  ;;  %p437_p1 = scmp.lt.s32.totalorder %s7285_s18, 3 }
   0xe   : > { %p438_p2 = pnand %p6655_p0, %p437_p1 }
  0x10   : > { %441 = sbr.rel (%p438_p2) target bundleno = 3479 (0xd97), region = 80 }
  0x17   : > { %vm565_vm0 = vcmask 1040384   ;;  %v705_v0 = vlaneseq  ;;  %v11249_v1 = vmov 0.0   ;;  %v7288_v3 = vmov 1983009808   ;;  %p485_p3 = scmp.lt.s32.totalorder %s6651_s19, 1  ;;  %s11344_s0 = sld [smem:[#allocation17_spill]] }
  0x18   : > { %v566_v2 = vrot.slane %v11249_v1, 7  ;;  %v703_v4 = vunpack.c.l.s4 %v7288_v3  ;;  %vm11278_vm1 = vcmask 1041409   ;;  %vm11276_vm2 = vcmask 1042434   ;;  %s11287_s24 = smov 3   ;;  %s11285_s25 = smov 6  }
  0x19   : > { %v706_v5 = vshrl.u32 %v705_v0, 7  ;;  %s11530_s19 = smov (!%p485_p3, %s6651_s19), 1  ;;  %vm11279_vm3 = vcmask 1043459   ;;  %vm1676_vm4 = vcmask 1044484   ;;  %vm1678_vm5 = vcmask 1045509   ;;  %s11306_s26 = smov 9  }
  0x1a   : > { %v7414_v6 = vsel %vm565_vm0, 0.0, %v566_v2  ;;  %v704_v7 = vunpack.c.0.s8 %v703_v4  ;;  %v718_v8 = vcombine.high %v566_v2, %v566_v2  ;;  %v7423_v11 = vsel %vm565_vm0, %v566_v2, 0.0  ;;  %s6723_s20 = sshll.u32 %s11530_s19, 8  ;;  %s11295_s27 = smov 18  }
  0x1b   : > { %11342 = vst [vmem:[#allocation3_spill] sm:$0xff] %v7414_v6  ;;  %v701_v9 = vcombine.high %v7414_v6, %v7414_v6  ;;  %11343 = vst [vmem:[#allocation4_spill] sm:$0xff] %v7423_v11  ;;  %v7426_v12 = vsub.s32 0, %v706_v5  ;;  %v7428_v13 = vsub.s32 1, %v706_v5  ;;  %vm1680_vm6 = vcmask 1046534   ;;  %s11274_s28 = smov 12  }
  0x1c   : > { %v7420_v10 = vsub.s32 %v704_v7, %v706_v5  ;;  %vm1682_vm7 = vcmask 1047559   ;;  %s11272_s29 = smov 15   ;;  %s11289_s30 = smov 21   ;;  %vm3134_vm8 = vcmask 23552   ;;  %vm3143_vm9 = vcmask 48128  }
  0x1d   : > { %s7433_s23 = scalar_lea.vmem %s11344_s0, %s6723_s20  ;;  %s11283_s16 = smov 24   ;;  %vm3152_vm10 = vcmask 72704   ;;  %vm3161_vm11 = vcmask 97280   ;;  %vm11298_vm12 = vcmask 121856   ;;  %vm11305_vm13 = vcmask 146432  }
  0x1e   : > { %v7437_v14 = vrot.slane %v7414_v6, %v7420_v10  ;;  %v715_v15 = vrot.slane %v701_v9, %v7420_v10  ;;  %v725_v16 = vrot.slane %v566_v2, %v7420_v10  ;;  %v732_v17 = vrot.slane %v718_v8, %v7420_v10  ;;  %v499_v18 = vld [vmem:[%s7433_s23 + $0x20] sm:$0xff]  ;;  %v7444_v19 = vld [vmem:[%s7433_s23 + $0x28] sm:$0xff]  ;;  %v7447_v20 = vld [vmem:[%s7433_s23 + $0x10] sm:$0xff]  ;;  %s11372_s1 = sld [smem:[#allocation18_spill]]  ;;  %s11378_s2 = sld [smem:[#allocation19_spill]] }
  0x1f   : > { %v741_v21 = vrot.slane %v7423_v11, %v7420_v10  ;;  %v574_v22 = vrot.slane %v499_v18, 7  ;;  %v11250_v23 = vrot.slane %v7444_v19, 7  ;;  %v571_v24 = vrot.slane %v7447_v20, 7  ;;  %v7543_v7 = vld [vmem:[%s7433_s23 + $0x18] sm:$0xff]  ;;  %s11281_s22 = smov 125   ;;  %s11301_s17 = smov 36  }
  0x20   : > { %11345 = vst [vmem:[#allocation5_spill] sm:$0xff] %v7437_v14  ;;  %v716_v25 = vcombine.high %v7437_v14, %v7437_v14  ;;  %v717_v26 = vcombine.high %v715_v15, %v715_v15  ;;  %v733_v27 = vcombine.high %v725_v16, %v725_v16  ;;  %v734_v28 = vcombine.high %v732_v17, %v732_v17  ;;  %v7560_v18 = vld [vmem:[%s7433_s23 + $0x38] sm:$0xff]  ;;  %s11299_s20 = smov 45   ;;  %s11291_s21 = smov 72  }
  0x21   : > { %v1744_v29 = vrot.slane %v7437_v14, %v7428_v13  ;;  %v1752_v30 = vrot.slane %v715_v15, %v7428_v13  ;;  %v1760_v31 = vrot.slane %v725_v16, %v7428_v13  ;;  %v1768_v32 = vrot.slane %v732_v17, %v7428_v13  ;;  %s11379_s3 = sld [smem:[#allocation20_spill]]  ;;  %s11386_s4 = sld [smem:[#allocation21_spill]] }
  0x22   : > { %v1748_v33 = vrot.slane %v716_v25, %v7428_v13  ;;  %v1756_v34 = vrot.slane %v717_v26, %v7428_v13  ;;  %v1764_v35 = vrot.slane %v733_v27, %v7428_v13  ;;  %v1772_v36 = vrot.slane %v734_v28, %v7428_v13  ;;  %s11390_s5 = sld [smem:[#allocation22_spill]]  ;;  %s11413_s6 = sld [smem:[#allocation23_spill]] }
  0x23   : > { %v7465_v37 = vrot.slane %v716_v25, %v7426_v12  ;;  %v7468_v38 = vrot.slane %v715_v15, %v7426_v12  ;;  %v7471_v39 = vrot.slane %v717_v26, %v7426_v12  ;;  %v7474_v40 = vrot.slane %v725_v16, %v7426_v12  ;;  %s11469_s7 = sld [smem:[#allocation24_spill]]  ;;  %s11476_s0 = smov 60  }
  0x24   : > { %v1997_v41 = vsel %vm11278_vm1, %v1748_v33, %v1744_v29  ;;  %v7478_v42 = vrot.slane %v733_v27, %v7426_v12  ;;  %v7481_v43 = vrot.slane %v732_v17, %v7426_v12  ;;  %v7484_v44 = vrot.slane %v734_v28, %v7426_v12  ;;  %v501_v17 = vld [vmem:[%s7433_s23 + $0x30] sm:$0xff]  ;;  %s11490_s8 = sld [smem:[#allocation25_spill]] }
  0x25   : > { %11346 = vst [vmem:[#allocation6_spill] sm:$0xff] %v7465_v37  ;;  %11347 = vst [vmem:[#allocation7_spill] sm:$0xff] %v7468_v38  ;;  %v1998_v45 = vsel %vm11276_vm2, %v1752_v30, %v1997_v41  ;;  %v7488_v46 = vrot.slane %v741_v21, %v7426_v12  ;;  %v2109_v47 = vsel %vm11278_vm1, %v7468_v38, %v7465_v37  ;;  %v652_v51 = vsel %vm565_vm0, 0.0, %v574_v22 }
  0x26   : > { %11348 = vst [vmem:[#allocation8_spill] sm:$0xff] %v7471_v39  ;;  %11349 = vst [vmem:[#allocation9_spill] sm:$0xff] %v7474_v40  ;;  %v576_v48 = vsel %vm565_vm0, %v574_v22, %v11250_v23  ;;  %v7497_v49 = vsel %vm11279_vm3, %v1756_v34, %v1998_v45  ;;  %v7501_v50 = vsel %vm11276_vm2, %v7471_v39, %v2109_v47  ;;  %v11252_v30 = vrot.slane %v7543_v7, 7 }
  0x27   : > { %11350 = vst [vmem:[#allocation10_spill] sm:$0xff] %v7478_v42  ;;  %11351 = vst [vmem:[#allocation11_spill] sm:$0xff] %v7481_v43  ;;  %v1144_v52 = vcombine.high %v576_v48, %v576_v48  ;;  %v2000_v53 = vsel %vm1676_vm4, %v1760_v31, %v7497_v49  ;;  %v2111_v54 = vsel %vm11279_vm3, %v7474_v40, %v7501_v50  ;;  %v577_v33 = vrot.slane %v501_v17, 7 }
  0x28   : > { %11352 = vst [vmem:[#allocation12_spill] sm:$0xff] %v7484_v44  ;;  %11353 = vst [vmem:[#allocation13_spill] sm:$0xff] %v7488_v46  ;;  %v1127_v55 = vcombine.high %v652_v51, %v652_v51  ;;  %v7510_v56 = vrot.slane %v652_v51, %v7420_v10  ;;  %v2001_v57 = vsel %vm1678_vm5, %v1764_v35, %v2000_v53  ;;  %v11251_v34 = vrot.slane %v7560_v18, 7 }
  0x29   : > { %11354 = vst [vmem:[#allocation14_spill] sm:$0xff] %v7497_v49  ;;  %11355 = vst [vmem:[#allocation15_spill] sm:$0xff] %v7501_v50  ;;  %v2112_v58 = vsel %vm1676_vm4, %v7478_v42, %v2111_v54  ;;  %v7516_v59 = vrot.slane %v576_v48, %v7420_v10  ;;  %v7519_v60 = vrot.slane %v1144_v52, %v7420_v10  ;;  %vm11297_vm14 = vcmask 171008  }
  0x2a   : > { %v2002_v61 = vsel %vm1680_vm6, %v1768_v32, %v2001_v57  ;;  %v2113_v62 = vsel %vm1678_vm5, %v7481_v43, %v2112_v58  ;;  %v7525_v63 = vrot.slane %v1127_v55, %v7420_v10  ;;  %v7529_v0 = vcombine.high %v7510_v56, %v7510_v56 }
  0x2b   : > { %v2003_v2 = vsel %vm1682_vm7, %v1772_v36, %v2002_v61  ;;  %v2114_v3 = vsel %vm1680_vm6, %v7484_v44, %v2113_v62  ;;  %v7536_v4 = vcombine.high %v7516_v59, %v7516_v59  ;;  %v7540_v5 = vcombine.high %v7519_v60, %v7519_v60 }
  0x2c   : > { %2053 = vrot.lane.b32.xlu0 %v2003_v2, %s11287_s24  ;;  %v2115_v8 = vsel %vm1682_vm7, %v7488_v46, %v2114_v3  ;;  %v7550_v9 = vcombine.high %v7525_v63, %v7525_v63  ;;  %v2224_v15 = vrot.slane %v7510_v56, %v7426_v12  ;;  %v7556_v16 = vrot.slane %v7529_v0, %v7426_v12 }
  0x2d   : > { %2165 = vrot.lane.b32.xlu1 %v2115_v8, %s11285_s25  ;;  %v7565_v21 = vrot.slane %v7525_v63, %v7426_v12  ;;  %v7569_v22 = vrot.slane %v7516_v59, %v7426_v12  ;;  %v7573_v25 = vrot.slane %v7536_v4, %v7426_v12  ;;  %v7577_v26 = vrot.slane %v7519_v60, %v7426_v12 }
  0x2e   : > { %v7581_v27 = vrot.slane %v7550_v9, %v7426_v12  ;;  %v7585_v28 = vrot.slane %v7540_v5, %v7426_v12  ;;  %v2452_v29 = vsel %vm11278_vm1, %v7556_v16, %v2224_v15  ;;  %v651_v32 = vsel %vm565_vm0, 0.0, %v571_v24 }
  0x2f   : > { %v2453_v31 = vsel %vm11276_vm2, %v7565_v21, %v2452_v29  ;;  %v573_v36 = vsel %vm565_vm0, %v571_v24, %v11252_v30  ;;  %v742_v41 = vcombine.high %v651_v32, %v651_v32  ;;  %v7604_v45 = vrot.slane %v651_v32, %v7420_v10 }
  0x30   : > { %v2454_v35 = vsel %vm11279_vm3, %v7581_v27, %v2453_v31  ;;  %v759_v48 = vcombine.high %v573_v36, %v573_v36  ;;  %v7609_v51 = vrot.slane %v573_v36, %v7420_v10  ;;  %v579_v52 = vsel %vm565_vm0, %v577_v33, %v11251_v34 }
  0x31   : > { %v2455_v47 = vsel %vm1676_vm4, %v7569_v22, %v2454_v35  ;;  %v756_v24 = vrot.slane %v742_v41, %v7420_v10  ;;  %v757_v53 = vcombine.high %v7604_v45, %v7604_v45  ;;  %v1776_v54 = vrot.slane %v7604_v45, %v7428_v13 }
  0x32   : > { %v2456_v20 = vsel %vm1678_vm5, %v7573_v25, %v2455_v47  ;;  %v7624_v57 = vrot.slane %v759_v48, %v7420_v10  ;;  %v7628_v58 = vcombine.high %v7609_v51, %v7609_v51  ;;  %v1792_v61 = vrot.slane %v7609_v51, %v7428_v13 }
  0x33   : > { %v2457_v55 = vsel %vm1680_vm6, %v7577_v26, %v2456_v20  ;;  %v758_v2 = vcombine.high %v756_v24, %v756_v24  ;;  %v1780_v3 = vrot.slane %v757_v53, %v7428_v13  ;;  %v1784_v8 = vrot.slane %v756_v24, %v7428_v13 }
  0x34   : > { %v2458_v62 = vsel %vm1682_vm7, %v7585_v28, %v2457_v55  ;;  %v7639_v15 = vcombine.high %v7624_v57, %v7624_v57  ;;  %v1796_v17 = vrot.slane %v7628_v58, %v7428_v13  ;;  %v1800_v29 = vrot.slane %v7624_v57, %v7428_v13 }
  0x35   : > { %2503 = vrot.lane.b32.xlu1 %v2458_v62, %s11306_s26  ;;  %v653_v31 = vsel %vm565_vm0, 0.0, %v577_v33  ;;  %v1788_v32 = vrot.slane %v758_v2, %v7428_v13  ;;  %v2004_v35 = vsel %vm11278_vm1, %v1780_v3, %v1776_v54  ;;  %v800_v20 = vcombine.high %v579_v52, %v579_v52 }
  0x36   : > { %v783_v36 = vcombine.high %v653_v31, %v653_v31  ;;  %v7649_v41 = vrot.slane %v653_v31, %v7420_v10  ;;  %v1804_v47 = vrot.slane %v7639_v15, %v7428_v13  ;;  %v2005_v48 = vsel %vm11276_vm2, %v1784_v8, %v2004_v35  ;;  %v495_v35 = vld [vmem:[%s7433_s23] sm:$0xff] }
  0x37   : > { %v7655_v55 = vrot.slane %v579_v52, %v7420_v10  ;;  %v2006_v33 = vsel %vm11279_vm3, %v1788_v32, %v2005_v48  ;;  %v7669_v8 = vrot.slane %v800_v20, %v7420_v10  ;;  %v568_v50 = vrot.slane %v495_v35, 7 }
  0x38   : > { %v7659_v62 = vrot.slane %v783_v36, %v7420_v10  ;;  %v7663_v54 = vcombine.high %v7649_v41, %v7649_v41  ;;  %v1808_v3 = vrot.slane %v7649_v41, %v7428_v13  ;;  %v2007_v31 = vsel %vm1676_vm4, %v1792_v61, %v2006_v33  ;;  %v7688_v33 = vld [vmem:[%s7433_s23 + $0x8] sm:$0xff] }
  0x39   : > { %v7673_v52 = vcombine.high %v7655_v55, %v7655_v55  ;;  %v1824_v32 = vrot.slane %v7655_v55, %v7428_v13  ;;  %v2008_v36 = vsel %vm1678_vm5, %v1796_v17, %v2007_v31  ;;  %v7693_v23 = vcombine.high %v7669_v8, %v7669_v8 }
  0x3a   : > { %v7681_v48 = vcombine.high %v7659_v62, %v7659_v62  ;;  %v1812_v61 = vrot.slane %v7663_v54, %v7428_v13  ;;  %v1816_v20 = vrot.slane %v7659_v62, %v7428_v13  ;;  %v2009_v1 = vsel %vm1680_vm6, %v1800_v29, %v2008_v36 }
  0x3b   : > { %v1828_v17 = vrot.slane %v7673_v52, %v7428_v13  ;;  %v1832_v31 = vrot.slane %v7669_v8, %v7428_v13  ;;  %v7700_v34 = vsel %vm1682_vm7, %v1804_v47, %v2009_v1  ;;  %v1836_v29 = vrot.slane %v7693_v23, %v7428_v13 }
  0x3c   : > { %v1820_v30 = vrot.slane %v7681_v48, %v7428_v13  ;;  %v2011_v46 = vsel %vm11278_vm1, %v1812_v61, %v1808_v3  ;;  %2055 = vrot.lane.b32.xlu0 %v7700_v34, %s11287_s24  ;;  %v11262_v49 = vrot.slane %v7688_v33, 7  ;;  %v1449_v1 = vrot.slane %v7604_v45, %v7426_v12 }
  0x3d   : > { %v2012_v36 = vsel %vm11276_vm2, %v1816_v20, %v2011_v46  ;;  %v650_v11 = vsel %vm565_vm0, 0.0, %v568_v50  ;;  %v1453_v3 = vrot.slane %v757_v53, %v7426_v12  ;;  %v1457_v35 = vrot.slane %v756_v24, %v7426_v12 }
  0x3e   : > { %v2013_v47 = vsel %vm11279_vm3, %v1820_v30, %v2012_v36  ;;  %v570_v6 = vsel %vm565_vm0, %v568_v50, %v11262_v49  ;;  %v1086_v46 = vcombine.high %v650_v11, %v650_v11  ;;  %v1093_v20 = vrot.slane %v650_v11, %v7420_v10 }
  0x3f   : > { %v2014_v61 = vsel %vm1676_vm4, %v1824_v32, %v2013_v47  ;;  %v1103_v45 = vcombine.high %v570_v6, %v570_v6  ;;  %v1110_v30 = vrot.slane %v570_v6, %v7420_v10  ;;  %v1461_v36 = vrot.slane %v758_v2, %v7426_v12 }
  0x40   : > { %v2015_v44 = vsel %vm1678_vm5, %v1828_v17, %v2014_v61  ;;  %v1100_v24 = vrot.slane %v1086_v46, %v7420_v10  ;;  %v1101_v43 = vcombine.high %v1093_v20, %v1093_v20  ;;  %v2192_v32 = vrot.slane %v1093_v20, %v7426_v12 }
  0x41   : > { %v2016_v53 = vsel %vm1680_vm6, %v1832_v31, %v2015_v44  ;;  %v1117_v50 = vrot.slane %v1103_v45, %v7420_v10  ;;  %v1118_v11 = vcombine.high %v1110_v30, %v1110_v30  ;;  %v7733_v17 = vrot.slane %v1110_v30, %v7426_v12 }
  0x42   : > { %v7729_v47 = vsel %vm1682_vm7, %v1836_v29, %v2016_v53  ;;  %v1102_v6 = vcombine.high %v1100_v24, %v1100_v24  ;;  %v7738_v44 = vrot.slane %v1101_v43, %v7426_v12  ;;  %v7741_v2 = vrot.slane %v1100_v24, %v7426_v12 }
  0x43   : > { %11356 = vst [vmem:[#allocation16_spill] sm:$0xff] %v7729_v47  ;;  %2057 = vrot.lane.b32.xlu1 %v7729_v47, %s11287_s24  ;;  %v1465_v31 = vrot.slane %v7609_v51, %v7426_v12  ;;  %v1119_v29 = vcombine.high %v1117_v50, %v1117_v50  ;;  %v7746_v61 = vrot.slane %v1118_v11, %v7426_v12  ;;  %vm11280_vm15 = vcmask 195584  }
  0x44   : > { %v7749_v46 = vrot.slane %v1117_v50, %v7426_v12  ;;  %v1469_v45 = vrot.slane %v7628_v58, %v7426_v12  ;;  %v7754_v53 = vrot.slane %v1102_v6, %v7426_v12  ;;  %v2445_v49 = vsel %vm11278_vm1, %v7738_v44, %v2192_v32 }
  0x45   : > { %v1473_v42 = vrot.slane %v7624_v57, %v7426_v12  ;;  %v1477_v51 = vrot.slane %v7639_v15, %v7426_v12  ;;  %v7763_v40 = vrot.slane %v1119_v29, %v7426_v12  ;;  %v2446_v39 = vsel %vm11276_vm2, %v7741_v2, %v2445_v49 }
  0x46   : > { %v1684_v58 = vsel %vm11278_vm1, %v1453_v3, %v1449_v1  ;;  %v2528_v38 = vrot.slane %v1093_v20, %v7428_v13  ;;  %v2447_v37 = vsel %vm11279_vm3, %v7754_v53, %v2446_v39  ;;  %v2532_v57 = vrot.slane %v1101_v43, %v7428_v13 }
  0x47   : > { %v1685_v32 = vsel %vm11276_vm2, %v1457_v35, %v1684_v58  ;;  %v2536_v14 = vrot.slane %v1100_v24, %v7428_v13  ;;  %v2448_v15 = vsel %vm1676_vm4, %v7733_v17, %v2447_v37  ;;  %v2540_v49 = vrot.slane %v1102_v6, %v7428_v13 }
  0x48   : > { %v1686_v47 = vsel %vm11279_vm3, %v1461_v36, %v1685_v32  ;;  %v2544_v1 = vrot.slane %v1110_v30, %v7428_v13  ;;  %v2449_v20 = vsel %vm1678_vm5, %v7746_v61, %v2448_v15  ;;  %v2548_v58 = vrot.slane %v1118_v11, %v7428_v13 }
  0x49   : > { %v1687_v39 = vsel %vm1676_vm4, %v1465_v31, %v1686_v47  ;;  %v2552_v43 = vrot.slane %v1117_v50, %v7428_v13  ;;  %v2450_v24 = vsel %vm1680_vm6, %v7749_v46, %v2449_v20  ;;  %v2556_v32 = vrot.slane %v1119_v29, %v7428_v13 }
  0x4a   : > { %v1688_v37 = vsel %vm1678_vm5, %v1469_v45, %v1687_v39  ;;  %v2781_v6 = vsel %vm11278_vm1, %v2532_v57, %v2528_v38  ;;  %v2451_v30 = vsel %vm1682_vm7, %v7763_v40, %v2450_v24  ;;  %v11357_v11 = vrot.slane %v7543_v7, 7 }
  0x4b   : > { %v1689_v15 = vsel %vm1680_vm6, %v1473_v42, %v1688_v37  ;;  %v2782_v47 = vsel %vm11276_vm2, %v2536_v14, %v2781_v6  ;;  %2501 = vrot.lane.b32.xlu0 %v2451_v30, %s11306_s26  ;;  %v2116_v57 = vsel %vm11278_vm1, %v1457_v35, %v1453_v3  ;;  %v2560_v39 = vrot.slane %v7510_v56, %v7428_v13  ;;  %v505_v30 = vld [vmem:[%s7433_s23 + $0x50] sm:$0xff] }
  0x4c   : > { %v668_v50 = vsel %vm565_vm0, %v11357_v11, 0.0  ;;  %v7798_v20 = vsel %vm1682_vm7, %v1477_v51, %v1689_v15  ;;  %v2783_v29 = vsel %vm11279_vm3, %v2540_v49, %v2782_v47  ;;  %v2117_v7 = vsel %vm11276_vm2, %v1461_v36, %v2116_v57 }
  0x4d   : > { %v782_v38 = vrot.slane %v668_v50, %v7420_v10  ;;  %3012 = vrot.lane.b32.xlu1 %v7798_v20, %s11295_s27  ;;  %v2784_v14 = vsel %vm1676_vm4, %v2544_v1, %v2783_v29  ;;  %v2564_v49 = vrot.slane %v7529_v0, %v7428_v13  ;;  %v2118_v35 = vsel %vm11279_vm3, %v1465_v31, %v2117_v7 }
  0x4e   : > { %v2785_v24 = vsel %vm1678_vm5, %v2548_v58, %v2784_v14  ;;  %v2568_v37 = vrot.slane %v7525_v63, %v7428_v13  ;;  %v2119_v36 = vsel %vm1676_vm4, %v1469_v45, %v2118_v35  ;;  %v2572_v6 = vrot.slane %v7550_v9, %v7428_v13 }
  0x4f   : > { %v2084_v3 = vrot.slane %v782_v38, %v7426_v12  ;;  %v2786_v1 = vsel %vm1680_vm6, %v2552_v43, %v2785_v24  ;;  %v2576_v56 = vrot.slane %v7516_v59, %v7428_v13  ;;  %v2120_v58 = vsel %vm1678_vm5, %v1473_v42, %v2119_v36  ;;  %v7830_v43 = vld [vmem:[%s7433_s23 + $0x58] sm:$0xff] }
  0x50   : > { %v2787_v0 = vsel %vm1682_vm7, %v2556_v32, %v2786_v1  ;;  %v2580_v31 = vrot.slane %v7536_v4, %v7428_v13  ;;  %v2584_v63 = vrot.slane %v7519_v60, %v7428_v13  ;;  %v2121_v9 = vsel %vm1680_vm6, %v1477_v51, %v2120_v58 }
  0x51   : > { %2837 = vrot.lane.b32.xlu0 %v2787_v0, %s11274_s28  ;;  %v2588_v59 = vrot.slane %v7540_v5, %v7428_v13  ;;  %v2788_v45 = vsel %vm11278_vm1, %v2564_v49, %v2560_v39  ;;  %v11358_v42 = vrot.slane %v7688_v33, 7  ;;  %v7841_v32 = vsel %vm1682_vm7, %v2084_v3, %v2121_v9 }
  0x52   : > { %v2789_v60 = vsel %vm11276_vm2, %v2568_v37, %v2788_v45  ;;  %v2893_v51 = vsel %vm11278_vm1, %v7741_v2, %v7738_v44  ;;  %2167 = vrot.lane.b32.xlu1 %v7841_v32, %s11285_s25  ;;  %v583_v47 = vrot.slane %v505_v30, 7  ;;  %v584_v11 = vrot.slane %v7830_v43, 7 }
  0x53   : > { %v667_v4 = vsel %vm565_vm0, %v11358_v42, 0.0  ;;  %v2790_v5 = vsel %vm11279_vm3, %v2572_v6, %v2789_v60  ;;  %v2894_v33 = vsel %vm11276_vm2, %v7754_v53, %v2893_v51  ;;  %v11359_v44 = vrot.slane %v7560_v18, 7 }
  0x54   : > { %v1126_v15 = vrot.slane %v667_v4, %v7420_v10  ;;  %v2791_v50 = vsel %vm1676_vm4, %v2576_v56, %v2790_v5  ;;  %v2895_v38 = vsel %vm11279_vm3, %v7733_v17, %v2894_v33  ;;  %v585_v53 = vsel %vm565_vm0, %v583_v47, %v584_v11 }
  0x55   : > { %v670_v2 = vsel %vm565_vm0, %v11359_v44, 0.0  ;;  %v2792_v57 = vsel %vm1678_vm5, %v2580_v31, %v2791_v50  ;;  %v2896_v14 = vsel %vm1676_vm4, %v7746_v61, %v2895_v38  ;;  %v655_v7 = vsel %vm565_vm0, 0.0, %v583_v47 }
  0x56   : > { %v2864_v29 = vrot.slane %v1126_v15, %v7426_v12  ;;  %v2793_v39 = vsel %vm1680_vm6, %v2584_v63, %v2792_v57  ;;  %v2897_v17 = vsel %vm1678_vm5, %v7749_v46, %v2896_v14  ;;  %v824_v49 = vcombine.high %v655_v7, %v655_v7 }
  0x57   : > { %v7872_v18 = vrot.slane %v655_v7, %v7420_v10  ;;  %v2794_v24 = vsel %vm1682_vm7, %v2588_v59, %v2793_v39  ;;  %v2898_v61 = vsel %vm1680_vm6, %v7763_v40, %v2897_v17  ;;  %v841_v3 = vcombine.high %v585_v53, %v585_v53  ;;  %v7968_v7 = vld [vmem:[%s7433_s23 + $0x48] sm:$0xff] }
  0x58   : > { %v7878_v35 = vrot.slane %v585_v53, %v7420_v10  ;;  %2839 = vrot.lane.b32.xlu0 %v2794_v24, %s11274_s28  ;;  %v2899_v37 = vsel %vm1682_vm7, %v2864_v29, %v2898_v61  ;;  %v7883_v1 = vrot.slane %v824_v49, %v7420_v10  ;;  %v823_v0 = vrot.slane %v670_v2, %v7420_v10  ;;  %v503_v29 = vld [vmem:[%s7433_s23 + $0x40] sm:$0xff] }
  0x59   : > { %v839_v46 = vcombine.high %v7872_v18, %v7872_v18  ;;  %v1840_v36 = vrot.slane %v7872_v18, %v7428_v13  ;;  %2949 = vrot.lane.b32.xlu1 %v2899_v37, %s11272_s29  ;;  %v7891_v40 = vrot.slane %v841_v3, %v7420_v10  ;;  %v7907_v30 = vrot.slane %v7663_v54, %v7426_v12 }
  0x5a   : > { %v7895_v6 = vcombine.high %v7878_v35, %v7878_v35  ;;  %v1856_v56 = vrot.slane %v7878_v35, %v7428_v13  ;;  %v840_v58 = vcombine.high %v7883_v1, %v7883_v1  ;;  %v1848_v63 = vrot.slane %v7883_v1, %v7428_v13 }
  0x5b   : > { %v1844_v31 = vrot.slane %v839_v46, %v7428_v13  ;;  %v7911_v9 = vcombine.high %v7891_v40, %v7891_v40  ;;  %v1864_v45 = vrot.slane %v7891_v40, %v7428_v13  ;;  %v7919_v42 = vrot.slane %v7659_v62, %v7426_v12 }
  0x5c   : > { %v1860_v59 = vrot.slane %v7895_v6, %v7428_v13  ;;  %v1852_v4 = vrot.slane %v840_v58, %v7428_v13  ;;  %v7925_v60 = vrot.slane %v7681_v48, %v7426_v12  ;;  %v7929_v15 = vrot.slane %v7655_v55, %v7426_v12 }
  0x5d   : > { %v2018_v54 = vsel %vm11278_vm1, %v1844_v31, %v1840_v36  ;;  %v1868_v51 = vrot.slane %v7911_v9, %v7428_v13  ;;  %v7936_v62 = vrot.slane %v7673_v52, %v7426_v12  ;;  %v7940_v33 = vrot.slane %v7669_v8, %v7426_v12 }
  0x5e   : > { %v2019_v5 = vsel %vm11276_vm2, %v1848_v63, %v2018_v54  ;;  %v7945_v55 = vrot.slane %v7693_v23, %v7426_v12  ;;  %v2088_v47 = vrot.slane %v823_v0, %v7426_v12  ;;  %v2123_v50 = vsel %vm11278_vm1, %v7919_v42, %v7907_v30 }
  0x5f   : > { %v2020_v48 = vsel %vm11279_vm3, %v1852_v4, %v2019_v5  ;;  %v2124_v38 = vsel %vm11276_vm2, %v7925_v60, %v2123_v50  ;;  %v11360_v8 = vrot.slane %v7444_v19, 7  ;;  %v2900_v23 = vsel %vm11278_vm1, %v7565_v21, %v7556_v16 }
  0x60   : > { %v2021_v52 = vsel %vm1676_vm4, %v1856_v56, %v2020_v48  ;;  %v2125_v57 = vsel %vm11279_vm3, %v7929_v15, %v2124_v38  ;;  %v2901_v53 = vsel %vm11276_vm2, %v7581_v27, %v2900_v23  ;;  %v580_v21 = vrot.slane %v503_v29, 7 }
  0x61   : > { %v669_v44 = vsel %vm565_vm0, %v11360_v8, 0.0  ;;  %v2022_v2 = vsel %vm1678_vm5, %v1860_v59, %v2021_v52  ;;  %v2126_v39 = vsel %vm1676_vm4, %v7936_v62, %v2125_v57  ;;  %v2902_v16 = vsel %vm11279_vm3, %v7569_v22, %v2901_v53 }
  0x62   : > { %v1167_v14 = vrot.slane %v669_v44, %v7420_v10  ;;  %v2023_v19 = vsel %vm1680_vm6, %v1864_v45, %v2022_v2  ;;  %v2127_v49 = vsel %vm1678_vm5, %v7940_v33, %v2126_v39  ;;  %v2903_v27 = vsel %vm1676_vm4, %v7573_v25, %v2902_v16 }
  0x63   : > { %v7976_v17 = vsel %vm1682_vm7, %v1868_v51, %v2023_v19  ;;  %v2128_v61 = vsel %vm1680_vm6, %v7945_v55, %v2127_v49  ;;  %v2904_v22 = vsel %vm1678_vm5, %v7577_v26, %v2903_v27  ;;  %v581_v3 = vrot.slane %v7968_v7, 7 }
  0x64   : > { %v2868_v24 = vrot.slane %v1167_v14, %v7426_v12  ;;  %2059 = vrot.lane.b32.xlu0 %v7976_v17, %s11287_s24  ;;  %v654_v37 = vsel %vm565_vm0, 0.0, %v580_v21  ;;  %v7992_v36 = vsel %vm1682_vm7, %v2088_v47, %v2128_v61  ;;  %v2905_v56 = vsel %vm1680_vm6, %v7585_v28, %v2904_v22 }
  0x65   : > { %v1168_v25 = vcombine.high %v654_v37, %v654_v37  ;;  %v7997_v0 = vrot.slane %v654_v37, %v7420_v10  ;;  %2169 = vrot.lane.b32.xlu1 %v7992_v36, %s11285_s25  ;;  %v582_v26 = vsel %vm565_vm0, %v580_v21, %v581_v3  ;;  %v672_v63 = vsel %vm565_vm0, %v584_v11, 0.0 }
  0x66   : > { %v2906_v31 = vsel %vm1682_vm7, %v2868_v24, %v2905_v56  ;;  %v8009_v59 = vrot.slane %v839_v46, %v7426_v12  ;;  %v1185_v4 = vcombine.high %v582_v26, %v582_v26  ;;  %v8017_v54 = vrot.slane %v582_v26, %v7420_v10  ;;  %v507_v26 = vld [vmem:[%s7433_s23 + $0x60] sm:$0xff] }
  0x67   : > { %v8012_v28 = vrot.slane %v1168_v25, %v7420_v10  ;;  %v1183_v45 = vcombine.high %v7997_v0, %v7997_v0  ;;  %v2256_v43 = vrot.slane %v7997_v0, %v7426_v12  ;;  %v864_v11 = vrot.slane %v672_v63, %v7420_v10  ;;  %v8127_v63 = vld [vmem:[%s7433_s23 + $0x68] sm:$0xff] }
  0x68   : > { %2951 = vrot.lane.b32.xlu0 %v2906_v31, %s11272_s29  ;;  %v8025_v46 = vrot.slane %v7883_v1, %v7426_v12  ;;  %v8028_v51 = vrot.slane %v840_v58, %v7426_v12  ;;  %v8033_v48 = vrot.slane %v1185_v4, %v7420_v10  ;;  %v8037_v47 = vcombine.high %v8017_v54, %v8017_v54 }
  0x69   : > { %v1184_v5 = vcombine.high %v8012_v28, %v8012_v28  ;;  %v8040_v50 = vrot.slane %v1183_v45, %v7426_v12  ;;  %v8044_v1 = vrot.slane %v8012_v28, %v7426_v12  ;;  %v8048_v58 = vrot.slane %v8017_v54, %v7426_v12 }
  0x6a   : > { %v8052_v29 = vrot.slane %v7878_v35, %v7426_v12  ;;  %v8056_v52 = vrot.slane %v7895_v6, %v7426_v12  ;;  %v8060_v38 = vcombine.high %v8033_v48, %v8033_v48  ;;  %v8067_v44 = vrot.slane %v8037_v47, %v7426_v12 }
  0x6b   : > { %v8063_v8 = vrot.slane %v1184_v5, %v7426_v12  ;;  %v8071_v23 = vrot.slane %v8033_v48, %v7426_v12  ;;  %v2459_v35 = vsel %vm11278_vm1, %v8040_v50, %v2256_v43  ;;  %v8077_v6 = vrot.slane %v7891_v40, %v7426_v12  ;;  %v509_v43 = vld [vmem:[%s7433_s23 + $0x70] sm:$0xff] }
  0x6c   : > { %v8081_v2 = vrot.slane %v7911_v9, %v7426_v12  ;;  %v2092_v57 = vrot.slane %v864_v11, %v7426_v12  ;;  %v8086_v14 = vrot.slane %v8060_v38, %v7426_v12  ;;  %v2460_v53 = vsel %vm11276_vm2, %v8044_v1, %v2459_v35 }
  0x6d   : > { %v2130_v19 = vsel %vm11278_vm1, %v8025_v46, %v8009_v59  ;;  %v1481_v40 = vrot.slane %v7649_v41, %v7426_v12  ;;  %v2461_v9 = vsel %vm11279_vm3, %v8063_v8, %v2460_v53  ;;  %v2592_v16 = vrot.slane %v7997_v0, %v7428_v13 }
  0x6e   : > { %v2131_v39 = vsel %vm11276_vm2, %v8028_v51, %v2130_v19  ;;  %v2596_v21 = vrot.slane %v1183_v45, %v7428_v13  ;;  %v2462_v49 = vsel %vm1676_vm4, %v8048_v58, %v2461_v9  ;;  %v2600_v27 = vrot.slane %v8012_v28, %v7428_v13 }
  0x6f   : > { %v2132_v24 = vsel %vm11279_vm3, %v8052_v29, %v2131_v39  ;;  %v1691_v41 = vsel %vm11278_vm1, %v7907_v30, %v1481_v40  ;;  %v2463_v61 = vsel %vm1678_vm5, %v8067_v44, %v2462_v49  ;;  %v2604_v56 = vrot.slane %v1184_v5, %v7428_v13 }
  0x70   : > { %v2133_v22 = vsel %vm1676_vm4, %v8056_v52, %v2132_v24  ;;  %v1692_v37 = vsel %vm11276_vm2, %v7919_v42, %v1691_v41  ;;  %v2464_v25 = vsel %vm1680_vm6, %v8071_v23, %v2463_v61  ;;  %v2608_v31 = vrot.slane %v8017_v54, %v7428_v13 }
  0x71   : > { %v2134_v30 = vsel %vm1678_vm5, %v8077_v6, %v2133_v22  ;;  %v1693_v0 = vsel %vm11279_vm3, %v7925_v60, %v1692_v37  ;;  %v2465_v42 = vsel %vm1682_vm7, %v8086_v14, %v2464_v25  ;;  %v2612_v4 = vrot.slane %v8037_v47, %v7428_v13  ;;  %v8139_v60 = vld [vmem:[%s7433_s23 + $0x78] sm:$0xff] }
  0x72   : > { %v2135_v28 = vsel %vm1680_vm6, %v8081_v2, %v2134_v30  ;;  %v1694_v45 = vsel %vm1676_vm4, %v7929_v15, %v1693_v0  ;;  %2505 = vrot.lane.b32.xlu1 %v2465_v42, %s11306_s26  ;;  %v2616_v5 = vrot.slane %v8033_v48, %v7428_v13  ;;  %v2620_v15 = vrot.slane %v8060_v38, %v7428_v13 }
  0x73   : > { %v8143_v54 = vsel %vm1682_vm7, %v2092_v57, %v2135_v28  ;;  %v1695_v11 = vsel %vm1678_vm5, %v7936_v62, %v1694_v45  ;;  %v2795_v35 = vsel %vm11278_vm1, %v2596_v21, %v2592_v16  ;;  %v586_v53 = vrot.slane %v507_v26, 7 }
  0x74   : > { %2171 = vrot.lane.b32.xlu0 %v8143_v54, %s11285_s25  ;;  %v1696_v47 = vsel %vm1680_vm6, %v7940_v33, %v1695_v11  ;;  %v587_v57 = vrot.slane %v8127_v63, 7  ;;  %v2796_v48 = vsel %vm11276_vm2, %v2600_v27, %v2795_v35  ;;  %v589_v19 = vrot.slane %v509_v43, 7 }
  0x75   : > { %v8159_v62 = vsel %vm1682_vm7, %v7945_v55, %v1696_v47  ;;  %v590_v38 = vrot.slane %v8139_v60, 7  ;;  %v2797_v40 = vsel %vm11279_vm3, %v2604_v56, %v2796_v48  ;;  %v656_v9 = vsel %vm565_vm0, 0.0, %v586_v53 }
  0x76   : > { %v588_v33 = vsel %vm565_vm0, %v586_v53, %v587_v57  ;;  %v8171_v39 = vsel %vm565_vm0, %v581_v3, 0.0  ;;  %3075 = vrot.lane.b32.xlu1 %v7700_v34, %s11289_s30  ;;  %v2798_v55 = vsel %vm1676_vm4, %v2608_v31, %v2797_v40  ;;  %v1209_v16 = vcombine.high %v656_v9, %v656_v9 }
  0x77   : > { %v1216_v21 = vrot.slane %v656_v9, %v7420_v10  ;;  %v1226_v49 = vcombine.high %v588_v33, %v588_v33  ;;  %v2799_v24 = vsel %vm1678_vm5, %v2612_v4, %v2798_v55  ;;  %v1233_v7 = vrot.slane %v588_v33, %v7420_v10 }
  0x78   : > { %3014 = vrot.lane.b32.xlu0 %v8159_v62, %s11295_s27  ;;  %v591_v3 = vsel %vm565_vm0, %v589_v19, %v590_v38  ;;  %v657_v41 = vsel %vm565_vm0, 0.0, %v589_v19  ;;  %v2800_v34 = vsel %vm1680_vm6, %v2616_v5, %v2799_v24  ;;  %v1223_v27 = vrot.slane %v1209_v16, %v7420_v10 }
  0x79   : > { %v1224_v61 = vcombine.high %v1216_v21, %v1216_v21  ;;  %v1240_v22 = vrot.slane %v1226_v49, %v7420_v10  ;;  %v2801_v37 = vsel %vm1682_vm7, %v2620_v15, %v2800_v34  ;;  %v1241_v56 = vcombine.high %v1233_v7, %v1233_v7 }
  0x7a   : > { %v2288_v25 = vrot.slane %v1216_v21, %v7426_v12  ;;  %v8191_v30 = vrot.slane %v1233_v7, %v7426_v12  ;;  %2841 = vrot.lane.b32.xlu1 %v2801_v37, %s11274_s28  ;;  %v1225_v0 = vcombine.high %v1223_v27, %v1223_v27  ;;  %v8198_v42 = vrot.slane %v1223_v27, %v7426_v12 }
  0x7b   : > { %v1242_v31 = vcombine.high %v1240_v22, %v1240_v22  ;;  %v8195_v26 = vrot.slane %v1224_v61, %v7426_v12  ;;  %v8201_v28 = vrot.slane %v1241_v56, %v7426_v12  ;;  %v8204_v45 = vrot.slane %v1240_v22, %v7426_v12 }
  0x7c   : > { %v2624_v4 = vrot.slane %v1216_v21, %v7428_v13  ;;  %v2628_v43 = vrot.slane %v1224_v61, %v7428_v13  ;;  %v8209_v11 = vrot.slane %v1225_v0, %v7426_v12  ;;  %v2632_v47 = vrot.slane %v1223_v27, %v7428_v13 }
  0x7d   : > { %v8212_v5 = vrot.slane %v1242_v31, %v7426_v12  ;;  %v2466_v15 = vsel %vm11278_vm1, %v8195_v26, %v2288_v25  ;;  %v2636_v53 = vrot.slane %v1225_v0, %v7428_v13  ;;  %v2640_v48 = vrot.slane %v1233_v7, %v7428_v13 }
  0x7e   : > { %v2467_v35 = vsel %vm11276_vm2, %v8198_v42, %v2466_v15  ;;  %v2644_v19 = vrot.slane %v1241_v56, %v7428_v13  ;;  %3110 = vrot.lane.b32.xlu1 %v7841_v32, %s11283_s16  ;;  %v2648_v33 = vrot.slane %v1240_v22, %v7428_v13  ;;  %v2652_v9 = vrot.slane %v1242_v31, %v7428_v13 }
  0x7f   : > { %v2468_v40 = vsel %vm11279_vm3, %v8209_v11, %v2467_v35  ;;  %v2802_v55 = vsel %vm11278_vm1, %v2628_v43, %v2624_v4  ;;  %v865_v49 = vcombine.high %v657_v41, %v657_v41  ;;  %v8233_v24 = vrot.slane %v657_v41, %v7420_v10 }
  0x80   : > { %v2469_v16 = vsel %vm1676_vm4, %v8191_v30, %v2468_v40  ;;  %v2803_v21 = vsel %vm11276_vm2, %v2632_v47, %v2802_v55  ;;  %v882_v34 = vcombine.high %v591_v3, %v591_v3  ;;  %v889_v27 = vrot.slane %v591_v3, %v7420_v10 }
  0x81   : > { %v2470_v7 = vsel %vm1678_vm5, %v8201_v28, %v2469_v16  ;;  %v2804_v32 = vsel %vm11279_vm3, %v2636_v53, %v2803_v21  ;;  %v879_v37 = vrot.slane %v865_v49, %v7420_v10  ;;  %v880_v56 = vcombine.high %v8233_v24, %v8233_v24 }
  0x82   : > { %v2471_v61 = vsel %vm1680_vm6, %v8204_v45, %v2470_v7  ;;  %v2805_v22 = vsel %vm1676_vm4, %v2640_v48, %v2804_v32  ;;  %v896_v0 = vrot.slane %v882_v34, %v7420_v10  ;;  %v897_v31 = vcombine.high %v889_v27, %v889_v27  ;;  %v11361_v7 = vld [vmem:[#allocation16_spill] sm:$0xff] }
  0x83   : > { %v2472_v41 = vsel %vm1682_vm7, %v8212_v5, %v2471_v61  ;;  %v2806_v25 = vsel %vm1678_vm5, %v2644_v19, %v2805_v22  ;;  %v881_v4 = vcombine.high %v879_v37, %v879_v37  ;;  %v1872_v43 = vrot.slane %v8233_v24, %v7428_v13 }
  0x84   : > { %2507 = vrot.lane.b32.xlu0 %v2472_v41, %s11306_s26  ;;  %v2807_v3 = vsel %vm1680_vm6, %v2648_v33, %v2806_v25  ;;  %v1876_v15 = vrot.slane %v880_v56, %v7428_v13  ;;  %v898_v35 = vcombine.high %v896_v0, %v896_v0  ;;  %v1880_v53 = vrot.slane %v879_v37, %v7428_v13 }
  0x85   : > { %v2808_v47 = vsel %vm1682_vm7, %v2652_v9, %v2807_v3  ;;  %v1888_v48 = vrot.slane %v889_v27, %v7428_v13  ;;  %v1884_v19 = vrot.slane %v881_v4, %v7428_v13  ;;  %v1892_v40 = vrot.slane %v897_v31, %v7428_v13 }
  0x86   : > { %2843 = vrot.lane.b32.xlu1 %v2808_v47, %s11274_s28  ;;  %v1896_v33 = vrot.slane %v896_v0, %v7428_v13  ;;  %v2025_v55 = vsel %vm11278_vm1, %v1876_v15, %v1872_v43  ;;  %v1900_v16 = vrot.slane %v898_v35, %v7428_v13  ;;  %v1208_v9 = vrot.slane %v8171_v39, %v7420_v10  ;;  %v8307_v15 = vld [vmem:[%s7433_s23 + $0x98] sm:$0xff] }
  0x87   : > { %v2026_v21 = vsel %vm11276_vm2, %v1880_v53, %v2025_v55  ;;  %v2907_v49 = vsel %vm11278_vm1, %v8044_v1, %v8040_v50  ;;  %v674_v61 = vsel %vm565_vm0, %v590_v38, 0.0  ;;  %v8278_v39 = vrot.slane %v880_v56, %v7426_v12  ;;  %v513_v56 = vld [vmem:[%s7433_s23 + $0x90] sm:$0xff] }
  0x88   : > { %3077 = vrot.lane.b32.xlu0 %v11361_v7, %s11289_s30  ;;  %v2027_v32 = vsel %vm11279_vm3, %v1884_v19, %v2026_v21  ;;  %v2908_v34 = vsel %vm11276_vm2, %v8063_v8, %v2907_v49  ;;  %v2872_v50 = vrot.slane %v1208_v9, %v7426_v12  ;;  %v905_v41 = vrot.slane %v674_v61, %v7420_v10 }
  0x89   : > { %v2028_v22 = vsel %vm1676_vm4, %v1888_v48, %v2027_v32  ;;  %v2909_v1 = vsel %vm11279_vm3, %v8048_v58, %v2908_v34  ;;  %v8291_v60 = vrot.slane %v879_v37, %v7426_v12  ;;  %v8294_v38 = vrot.slane %v881_v4, %v7426_v12 }
  0x8a   : > { %v2029_v25 = vsel %vm1678_vm5, %v1892_v40, %v2028_v22  ;;  %3112 = vrot.lane.b32.xlu1 %v7992_v36, %s11283_s16  ;;  %v2910_v8 = vsel %vm1676_vm4, %v8067_v44, %v2909_v1  ;;  %v8301_v43 = vrot.slane %v889_v27, %v7426_v12  ;;  %v8304_v36 = vrot.slane %v897_v31, %v7426_v12 }
  0x8b   : > { %v2030_v3 = vsel %vm1680_vm6, %v1896_v33, %v2029_v25  ;;  %v2911_v58 = vsel %vm1678_vm5, %v8071_v23, %v2910_v8  ;;  %v8315_v4 = vrot.slane %v896_v0, %v7426_v12  ;;  %v8318_v47 = vrot.slane %v898_v35, %v7426_v12 }
  0x8c   : > { %v8310_v44 = vsel %vm1682_vm7, %v1900_v16, %v2030_v3  ;;  %v2912_v37 = vsel %vm1680_vm6, %v8086_v14, %v2911_v58  ;;  %v2096_v27 = vrot.slane %v905_v41, %v7426_v12  ;;  %v2137_v31 = vsel %vm11278_vm1, %v8291_v60, %v8278_v39 }
  0x8d   : > { %2061 = vrot.lane.b32.xlu0 %v8310_v44, %s11287_s24  ;;  %v2913_v23 = vsel %vm1682_vm7, %v2872_v50, %v2912_v37  ;;  %v595_v53 = vrot.slane %v513_v56, 7  ;;  %v2138_v14 = vsel %vm11276_vm2, %v8294_v38, %v2137_v31  ;;  %v596_v0 = vrot.slane %v8307_v15, 7  ;;  %v511_v37 = vld [vmem:[%s7433_s23 + $0x80] sm:$0xff] }
  0x8e   : > { %v1513_v35 = vrot.slane %v7872_v18, %v7426_v12  ;;  %v673_v48 = vsel %vm565_vm0, %v587_v57, 0.0  ;;  %v2139_v19 = vsel %vm11279_vm3, %v8301_v43, %v2138_v14  ;;  %v2914_v55 = vsel %vm11278_vm1, %v8198_v42, %v8195_v26 }
  0x8f   : > { %v659_v40 = vsel %vm565_vm0, 0.0, %v595_v53  ;;  %v1249_v33 = vrot.slane %v673_v48, %v7420_v10  ;;  %v2140_v16 = vsel %vm1676_vm4, %v8304_v36, %v2139_v19  ;;  %v597_v18 = vsel %vm565_vm0, %v595_v53, %v596_v0  ;;  %v8396_v53 = vld [vmem:[%s7433_s23 + $0x88] sm:$0xff] }
  0x90   : > { %v906_v21 = vcombine.high %v659_v40, %v659_v40  ;;  %v8346_v63 = vrot.slane %v659_v40, %v7420_v10  ;;  %v2141_v57 = vsel %vm1678_vm5, %v8315_v4, %v2140_v16  ;;  %v923_v9 = vcombine.high %v597_v18, %v597_v18 }
  0x91   : > { %2953 = vrot.lane.b32.xlu0 %v2913_v23, %s11272_s29  ;;  %v8352_v49 = vrot.slane %v597_v18, %v7420_v10  ;;  %v1698_v26 = vsel %vm11278_vm1, %v8009_v59, %v1513_v35  ;;  %v2142_v42 = vsel %vm1680_vm6, %v8318_v47, %v2141_v57  ;;  %v2876_v31 = vrot.slane %v1249_v33, %v7426_v12 }
  0x92   : > { %v920_v7 = vrot.slane %v906_v21, %v7420_v10  ;;  %v921_v32 = vcombine.high %v8346_v63, %v8346_v63  ;;  %v1904_v34 = vrot.slane %v8346_v63, %v7428_v13  ;;  %v8364_v61 = vsel %vm1682_vm7, %v2096_v27, %v2142_v42 }
  0x93   : > { %v8367_v22 = vrot.slane %v923_v9, %v7420_v10  ;;  %v8371_v59 = vcombine.high %v8352_v49, %v8352_v49  ;;  %v1920_v50 = vrot.slane %v8352_v49, %v7428_v13  ;;  %2173 = vrot.lane.b32.xlu1 %v8364_v61, %s11285_s25  ;;  %v1699_v8 = vsel %vm11276_vm2, %v8025_v46, %v1698_v26 }
  0x94   : > { %v922_v1 = vcombine.high %v920_v7, %v920_v7  ;;  %v1908_v41 = vrot.slane %v921_v32, %v7428_v13  ;;  %v1912_v25 = vrot.slane %v920_v7, %v7428_v13  ;;  %v1700_v15 = vsel %vm11279_vm3, %v8028_v51, %v1699_v8 }
  0x95   : > { %v939_v56 = vcombine.high %v8367_v22, %v8367_v22  ;;  %v1924_v3 = vrot.slane %v8371_v59, %v7428_v13  ;;  %v1928_v58 = vrot.slane %v8367_v22, %v7428_v13  ;;  %v1701_v46 = vsel %vm1676_vm4, %v8052_v29, %v1700_v15 }
  0x96   : > { %v1916_v23 = vrot.slane %v922_v1, %v7428_v13  ;;  %v2032_v27 = vsel %vm11278_vm1, %v1908_v41, %v1904_v34  ;;  %v1702_v48 = vsel %vm1678_vm5, %v8056_v52, %v1701_v46  ;;  %v2915_v51 = vsel %vm11276_vm2, %v8209_v11, %v2914_v55 }
  0x97   : > { %v1932_v14 = vrot.slane %v939_v56, %v7428_v13  ;;  %v2033_v35 = vsel %vm11276_vm2, %v1912_v25, %v2032_v27  ;;  %v1703_v40 = vsel %vm1680_vm6, %v8077_v6, %v1702_v48  ;;  %v2916_v29 = vsel %vm11279_vm3, %v8191_v30, %v2915_v51 }
  0x98   : > { %v2034_v19 = vsel %vm11279_vm3, %v1916_v23, %v2033_v35  ;;  %v592_v33 = vrot.slane %v511_v37, 7  ;;  %v8412_v18 = vsel %vm1682_vm7, %v8081_v2, %v1703_v40  ;;  %v2917_v52 = vsel %vm1676_vm4, %v8201_v28, %v2916_v29 }
  0x99   : > { %v2035_v16 = vsel %vm1676_vm4, %v1920_v50, %v2034_v19  ;;  %v593_v11 = vrot.slane %v8396_v53, 7  ;;  %3016 = vrot.lane.b32.xlu1 %v8412_v18, %s11295_s27  ;;  %v2918_v6 = vsel %vm1678_vm5, %v8204_v45, %v2917_v52  ;;  %v676_v21 = vsel %vm565_vm0, %v596_v0, 0.0 }
  0x9a   : > { %v2036_v55 = vsel %vm1678_vm5, %v1924_v3, %v2035_v16  ;;  %v658_v30 = vsel %vm565_vm0, 0.0, %v592_v33  ;;  %v2919_v57 = vsel %vm1680_vm6, %v8212_v5, %v2918_v6  ;;  %v946_v50 = vrot.slane %v676_v21, %v7420_v10 }
  0x9b   : > { %v2037_v2 = vsel %vm1680_vm6, %v1928_v58, %v2036_v55  ;;  %v594_v28 = vsel %vm565_vm0, %v592_v33, %v593_v11  ;;  %v1250_v9 = vcombine.high %v658_v30, %v658_v30  ;;  %v2920_v42 = vsel %vm1682_vm7, %v2876_v31, %v2919_v57 }
  0x9c   : > { %v8431_v26 = vsel %vm1682_vm7, %v1932_v14, %v2037_v2  ;;  %v8435_v45 = vrot.slane %v658_v30, %v7420_v10  ;;  %v1267_v34 = vcombine.high %v594_v28, %v594_v28  ;;  %v8443_v5 = vrot.slane %v594_v28, %v7420_v10 }
  0x9d   : > { %2063 = vrot.lane.b32.xlu0 %v8431_v26, %s11287_s24  ;;  %v8440_v0 = vrot.slane %v1250_v9, %v7420_v10  ;;  %v8447_v41 = vrot.slane %v921_v32, %v7426_v12  ;;  %v8457_v58 = vrot.slane %v920_v7, %v7426_v12  ;;  %v8485_v31 = vrot.slane %v922_v1, %v7426_v12 }
  0x9e   : > { %v1265_v25 = vcombine.high %v8435_v45, %v8435_v45  ;;  %v8452_v8 = vrot.slane %v1267_v34, %v7420_v10  ;;  %v2320_v3 = vrot.slane %v8435_v45, %v7426_v12  ;;  %v8463_v37 = vcombine.high %v8443_v5, %v8443_v5 }
  0x9f   : > { %v1266_v15 = vcombine.high %v8440_v0, %v8440_v0  ;;  %v8467_v32 = vrot.slane %v8440_v0, %v7426_v12  ;;  %v8471_v23 = vrot.slane %v8443_v5, %v7426_v12  ;;  %v8497_v48 = vrot.slane %v8352_v49, %v7426_v12 }
  0xa0   : > { %v8475_v27 = vcombine.high %v8452_v8, %v8452_v8  ;;  %v8478_v7 = vrot.slane %v1265_v25, %v7426_v12  ;;  %v8482_v46 = vrot.slane %v8452_v8, %v7426_v12  ;;  %v8493_v35 = vrot.slane %v8463_v37, %v7426_v12 }
  0xa1   : > { %2955 = vrot.lane.b32.xlu0 %v2920_v42, %s11272_s29  ;;  %v8489_v14 = vrot.slane %v1266_v15, %v7426_v12  ;;  %v8501_v51 = vrot.slane %v8371_v59, %v7426_v12  ;;  %v8511_v40 = vrot.slane %v8367_v22, %v7426_v12  ;;  %v8514_v29 = vrot.slane %v939_v56, %v7426_v12 }
  0xa2   : > { %v8505_v1 = vrot.slane %v8475_v27, %v7426_v12  ;;  %v2473_v19 = vsel %vm11278_vm1, %v8478_v7, %v2320_v3  ;;  %v2100_v59 = vrot.slane %v946_v50, %v7426_v12  ;;  %v2144_v33 = vsel %vm11278_vm1, %v8457_v58, %v8447_v41  ;;  %v8556_v50 = vld [vmem:[%s7433_s23 + $0xa8] sm:$0xff] }
  0xa3   : > { %v2474_v49 = vsel %vm11276_vm2, %v8467_v32, %v2473_v19  ;;  %v1545_v16 = vrot.slane %v8233_v24, %v7426_v12  ;;  %v2145_v22 = vsel %vm11276_vm2, %v8485_v31, %v2144_v33  ;;  %v2656_v56 = vrot.slane %v8435_v45, %v7428_v13  ;;  %v517_v19 = vld [vmem:[%s7433_s23 + $0xb0] sm:$0xff] }
  0xa4   : > { %v2475_v52 = vsel %vm11279_vm3, %v8489_v14, %v2474_v49  ;;  %v2660_v55 = vrot.slane %v1265_v25, %v7428_v13  ;;  %v2146_v30 = vsel %vm11279_vm3, %v8497_v48, %v2145_v22  ;;  %v2664_v21 = vrot.slane %v8440_v0, %v7428_v13  ;;  %v515_v0 = vld [vmem:[%s7433_s23 + $0xa0] sm:$0xff] }
  0xa5   : > { %v2476_v6 = vsel %vm1676_vm4, %v8471_v23, %v2475_v52  ;;  %v1705_v24 = vsel %vm11278_vm1, %v8278_v39, %v1545_v16  ;;  %v2147_v57 = vsel %vm1676_vm4, %v8501_v51, %v2146_v30  ;;  %v2668_v9 = vrot.slane %v1266_v15, %v7428_v13 }
  0xa6   : > { %v2477_v2 = vsel %vm1678_vm5, %v8493_v35, %v2476_v6  ;;  %v1706_v28 = vsel %vm11276_vm2, %v8291_v60, %v1705_v24  ;;  %v2148_v39 = vsel %vm1678_vm5, %v8511_v40, %v2147_v57  ;;  %v2672_v34 = vrot.slane %v8443_v5, %v7428_v13 }
  0xa7   : > { %v2478_v42 = vsel %vm1680_vm6, %v8482_v46, %v2477_v2  ;;  %v1707_v45 = vsel %vm11279_vm3, %v8294_v38, %v1706_v28  ;;  %v2149_v25 = vsel %vm1680_vm6, %v8514_v29, %v2148_v39  ;;  %v2676_v15 = vrot.slane %v8463_v37, %v7428_v13  ;;  %v8568_v38 = vld [vmem:[%s7433_s23 + $0xb8] sm:$0xff] }
  0xa8   : > { %v2479_v60 = vsel %vm1682_vm7, %v8505_v1, %v2478_v42  ;;  %v1708_v3 = vsel %vm1676_vm4, %v8301_v43, %v1707_v45  ;;  %v8572_v5 = vsel %vm1682_vm7, %v2100_v59, %v2149_v25  ;;  %v2680_v33 = vrot.slane %v8452_v8, %v7428_v13 }
  0xa9   : > { %2509 = vrot.lane.b32.xlu1 %v2479_v60, %s11306_s26  ;;  %v1709_v49 = vsel %vm1678_vm5, %v8304_v36, %v1708_v3  ;;  %v2684_v43 = vrot.slane %v8475_v27, %v7428_v13  ;;  %2175 = vrot.lane.b32.xlu0 %v8572_v5, %s11285_s25  ;;  %v2809_v16 = vsel %vm11278_vm1, %v2660_v55, %v2656_v56  ;;  %v598_v52 = vrot.slane %v515_v0, 7 }
  0xaa   : > { %v1710_v37 = vsel %vm1680_vm6, %v8315_v4, %v1709_v49  ;;  %v599_v59 = vrot.slane %v8556_v50, 7  ;;  %v2810_v8 = vsel %vm11276_vm2, %v2664_v21, %v2809_v16  ;;  %v601_v22 = vrot.slane %v517_v19, 7 }
  0xab   : > { %v8588_v36 = vsel %vm1682_vm7, %v8318_v47, %v1710_v37  ;;  %v602_v27 = vrot.slane %v8568_v38, 7  ;;  %v2811_v6 = vsel %vm11279_vm3, %v2668_v9, %v2810_v8  ;;  %v660_v56 = vsel %vm565_vm0, 0.0, %v598_v52 }
  0xac   : > { %v600_v4 = vsel %vm565_vm0, %v598_v52, %v599_v59  ;;  %v8600_v55 = vsel %vm565_vm0, %v593_v11, 0.0  ;;  %v2812_v47 = vsel %vm1676_vm4, %v2672_v34, %v2811_v6  ;;  %v1291_v30 = vcombine.high %v660_v56, %v660_v56 }
  0xad   : > { %3079 = vrot.lane.b32.xlu1 %v7976_v17, %s11289_s30  ;;  %v1298_v24 = vrot.slane %v660_v56, %v7420_v10  ;;  %v1308_v21 = vcombine.high %v600_v4, %v600_v4  ;;  %3018 = vrot.lane.b32.xlu0 %v8588_v36, %s11295_s27  ;;  %v2813_v2 = vsel %vm1678_vm5, %v2676_v15, %v2812_v47  ;;  %v661_v11 = vsel %vm565_vm0, 0.0, %v601_v22 }
  0xae   : > { %v1315_v57 = vrot.slane %v600_v4, %v7420_v10  ;;  %v603_v53 = vsel %vm565_vm0, %v601_v22, %v602_v27  ;;  %v2814_v17 = vsel %vm1680_vm6, %v2680_v33, %v2813_v2  ;;  %v1305_v28 = vrot.slane %v1291_v30, %v7420_v10 }
  0xaf   : > { %v1306_v9 = vcombine.high %v1298_v24, %v1298_v24  ;;  %v1322_v42 = vrot.slane %v1308_v21, %v7420_v10  ;;  %v2815_v39 = vsel %vm1682_vm7, %v2684_v43, %v2814_v17  ;;  %v2352_v34 = vrot.slane %v1298_v24, %v7426_v12 }
  0xb0   : > { %v1323_v45 = vcombine.high %v1315_v57, %v1315_v57  ;;  %v8620_v0 = vrot.slane %v1315_v57, %v7426_v12  ;;  %v1307_v60 = vcombine.high %v1305_v28, %v1305_v28  ;;  %v8627_v15 = vrot.slane %v1305_v28, %v7426_v12 }
  0xb1   : > { %2845 = vrot.lane.b32.xlu1 %v2815_v39, %s11274_s28  ;;  %v1324_v25 = vcombine.high %v1322_v42, %v1322_v42  ;;  %v8624_v3 = vrot.slane %v1306_v9, %v7426_v12  ;;  %v8633_v49 = vrot.slane %v1322_v42, %v7426_v12  ;;  %v2688_v33 = vrot.slane %v1298_v24, %v7428_v13 }
  0xb2   : > { %v8630_v19 = vrot.slane %v1323_v45, %v7426_v12  ;;  %v2692_v43 = vrot.slane %v1306_v9, %v7428_v13  ;;  %v8638_v37 = vrot.slane %v1307_v60, %v7426_v12  ;;  %v2696_v8 = vrot.slane %v1305_v28, %v7428_v13 }
  0xb3   : > { %v8641_v16 = vrot.slane %v1324_v25, %v7426_v12  ;;  %v2480_v52 = vsel %vm11278_vm1, %v8624_v3, %v2352_v34  ;;  %v2700_v6 = vrot.slane %v1307_v60, %v7428_v13  ;;  %v2704_v4 = vrot.slane %v1315_v57, %v7428_v13 }
  0xb4   : > { %v2481_v22 = vsel %vm11276_vm2, %v8627_v15, %v2480_v52  ;;  %v2708_v56 = vrot.slane %v1323_v45, %v7428_v13  ;;  %v2712_v30 = vrot.slane %v1322_v42, %v7428_v13  ;;  %v2716_v24 = vrot.slane %v1324_v25, %v7428_v13 }
  0xb5   : > { %v2482_v47 = vsel %vm11279_vm3, %v8638_v37, %v2481_v22  ;;  %3114 = vrot.lane.b32.xlu1 %v8143_v54, %s11283_s16  ;;  %v2816_v21 = vsel %vm11278_vm1, %v2692_v43, %v2688_v33  ;;  %v947_v57 = vcombine.high %v661_v11, %v661_v11  ;;  %v8662_v28 = vrot.slane %v661_v11, %v7420_v10 }
  0xb6   : > { %v2483_v2 = vsel %vm1676_vm4, %v8620_v0, %v2482_v47  ;;  %v2817_v17 = vsel %vm11276_vm2, %v2696_v8, %v2816_v21  ;;  %v964_v39 = vcombine.high %v603_v53, %v603_v53  ;;  %v971_v42 = vrot.slane %v603_v53, %v7420_v10 }
  0xb7   : > { %v2484_v9 = vsel %vm1678_vm5, %v8630_v19, %v2483_v2  ;;  %v2818_v54 = vsel %vm11279_vm3, %v2700_v6, %v2817_v17  ;;  %v961_v60 = vrot.slane %v947_v57, %v7420_v10  ;;  %v962_v25 = vcombine.high %v8662_v28, %v8662_v28 }
  0xb8   : > { %v2485_v45 = vsel %vm1680_vm6, %v8633_v49, %v2484_v9  ;;  %v2819_v34 = vsel %vm1676_vm4, %v2704_v4, %v2818_v54  ;;  %v978_v43 = vrot.slane %v964_v39, %v7420_v10  ;;  %v979_v52 = vcombine.high %v971_v42, %v971_v42 }
  0xb9   : > { %v2486_v11 = vsel %vm1682_vm7, %v8641_v16, %v2485_v45  ;;  %v2820_v33 = vsel %vm1678_vm5, %v2708_v56, %v2819_v34  ;;  %v963_v8 = vcombine.high %v961_v60, %v961_v60  ;;  %v1936_v22 = vrot.slane %v8662_v28, %v7428_v13 }
  0xba   : > { %2511 = vrot.lane.b32.xlu0 %v2486_v11, %s11306_s26  ;;  %v2821_v53 = vsel %vm1680_vm6, %v2712_v30, %v2820_v33  ;;  %v1940_v6 = vrot.slane %v962_v25, %v7428_v13  ;;  %v980_v47 = vcombine.high %v978_v43, %v978_v43  ;;  %v1944_v21 = vrot.slane %v961_v60, %v7428_v13 }
  0xbb   : > { %v2822_v4 = vsel %vm1682_vm7, %v2716_v24, %v2821_v53  ;;  %v1952_v56 = vrot.slane %v971_v42, %v7428_v13  ;;  %v1948_v2 = vrot.slane %v963_v8, %v7428_v13  ;;  %v1956_v17 = vrot.slane %v979_v52, %v7428_v13 }
  0xbc   : > { %2847 = vrot.lane.b32.xlu1 %v2822_v4, %s11274_s28  ;;  %v1960_v30 = vrot.slane %v978_v43, %v7428_v13  ;;  %v2039_v57 = vsel %vm11278_vm1, %v1940_v6, %v1936_v22  ;;  %v1964_v9 = vrot.slane %v980_v47, %v7428_v13  ;;  %v1290_v24 = vrot.slane %v8600_v55, %v7420_v10  ;;  %v8736_v4 = vld [vmem:[%s7433_s23 + $0xd8] sm:$0xff] }
  0xbd   : > { %v2040_v54 = vsel %vm11276_vm2, %v1944_v21, %v2039_v57  ;;  %v2921_v39 = vsel %vm11278_vm1, %v8467_v32, %v8478_v7  ;;  %v678_v11 = vsel %vm565_vm0, %v602_v27, 0.0  ;;  %v8707_v55 = vrot.slane %v962_v25, %v7426_v12  ;;  %v521_v25 = vld [vmem:[%s7433_s23 + $0xd0] sm:$0xff] }
  0xbe   : > { %3081 = vrot.lane.b32.xlu0 %v8310_v44, %s11289_s30  ;;  %v2041_v45 = vsel %vm11279_vm3, %v1948_v2, %v2040_v54  ;;  %v2922_v34 = vsel %vm11276_vm2, %v8489_v14, %v2921_v39  ;;  %v2880_v32 = vrot.slane %v1290_v24, %v7426_v12  ;;  %v987_v7 = vrot.slane %v678_v11, %v7420_v10 }
  0xbf   : > { %v2042_v33 = vsel %vm1676_vm4, %v1952_v56, %v2041_v45  ;;  %v2923_v44 = vsel %vm11279_vm3, %v8471_v23, %v2922_v34  ;;  %v8720_v38 = vrot.slane %v961_v60, %v7426_v12  ;;  %v8723_v27 = vrot.slane %v963_v8, %v7426_v12 }
  0xc0   : > { %v2043_v53 = vsel %vm1678_vm5, %v1956_v17, %v2042_v33  ;;  %3116 = vrot.lane.b32.xlu1 %v8364_v61, %s11283_s16  ;;  %v2924_v14 = vsel %vm1676_vm4, %v8493_v35, %v2923_v44  ;;  %v8730_v6 = vrot.slane %v971_v42, %v7426_v12  ;;  %v8733_v61 = vrot.slane %v979_v52, %v7426_v12  ;;  %v8738_v35 = vpop.permute.xlu1 %2165 }
  0xc1   : > { %v2044_v22 = vsel %vm1680_vm6, %v1960_v30, %v2043_v53  ;;  %v2925_v23 = vsel %vm1678_vm5, %v8482_v46, %v2924_v14  ;;  %v8746_v21 = vrot.slane %v978_v43, %v7426_v12  ;;  %v8749_v46 = vrot.slane %v980_v47, %v7426_v12 }
  0xc2   : > { %v8741_v60 = vsel %vm1682_vm7, %v1964_v9, %v2044_v22  ;;  %v2926_v8 = vsel %vm1680_vm6, %v8505_v1, %v2925_v23  ;;  %v2104_v52 = vrot.slane %v987_v7, %v7426_v12  ;;  %v2151_v56 = vsel %vm11278_vm1, %v8720_v38, %v8707_v55 }
  0xc3   : > { %2065 = vrot.lane.b32.xlu0 %v8741_v60, %s11287_s24  ;;  %v2927_v42 = vsel %vm1682_vm7, %v2880_v32, %v2926_v8  ;;  %v607_v2 = vrot.slane %v521_v25, 7  ;;  %v2152_v1 = vsel %vm11276_vm2, %v8723_v27, %v2151_v56  ;;  %v608_v43 = vrot.slane %v8736_v4, 7 }
  0xc4   : > { %v1577_v47 = vrot.slane %v8346_v63, %v7426_v12  ;;  %v677_v17 = vsel %vm565_vm0, %v599_v59, 0.0  ;;  %v2153_v30 = vsel %vm11279_vm3, %v8730_v6, %v2152_v1  ;;  %v2928_v54 = vsel %vm11278_vm1, %v8627_v15, %v8624_v3  ;;  %v8779_v59 = vpop.permute.xlu0 %2053  ;;  %v8789_v15 = vpop.permute.xlu1 %2503  ;;  %v519_v1 = vld [vmem:[%s7433_s23 + $0xc0] sm:$0xff] }
  0xc5   : > { %v663_v57 = vsel %vm565_vm0, 0.0, %v607_v2  ;;  %v1331_v9 = vrot.slane %v677_v17, %v7420_v10  ;;  %v2154_v24 = vsel %vm1676_vm4, %v8733_v61, %v2153_v30  ;;  %v609_v63 = vsel %vm565_vm0, %v607_v2, %v608_v43 }
  0xc6   : > { %v988_v39 = vcombine.high %v663_v57, %v663_v57  ;;  %v8777_v50 = vrot.slane %v663_v57, %v7420_v10  ;;  %v2155_v45 = vsel %vm1678_vm5, %v8746_v21, %v2154_v24  ;;  %v1005_v34 = vcombine.high %v609_v63, %v609_v63  ;;  %v8833_v57 = vld [vmem:[%s7433_s23 + $0xc8] sm:$0xff] }
  0xc7   : > { %2957 = vrot.lane.b32.xlu0 %v2927_v42, %s11272_s29  ;;  %v8785_v11 = vrot.slane %v609_v63, %v7420_v10  ;;  %v1712_v3 = vsel %vm11278_vm1, %v8447_v41, %v1577_v47  ;;  %v2156_v33 = vsel %vm1680_vm6, %v8749_v46, %v2155_v45  ;;  %v2884_v30 = vrot.slane %v1331_v9, %v7426_v12 }
  0xc8   : > { %v1002_v32 = vrot.slane %v988_v39, %v7420_v10  ;;  %v1003_v44 = vcombine.high %v8777_v50, %v8777_v50  ;;  %v1968_v7 = vrot.slane %v8777_v50, %v7428_v13  ;;  %v8799_v53 = vsel %vm1682_vm7, %v2104_v52, %v2156_v33  ;;  %v8835_v24 = vpop.permute.xlu0 %2055 }
  0xc9   : > { %v8802_v14 = vrot.slane %v1005_v34, %v7420_v10  ;;  %v8806_v41 = vcombine.high %v8785_v11, %v8785_v11  ;;  %v1984_v25 = vrot.slane %v8785_v11, %v7428_v13  ;;  %2177 = vrot.lane.b32.xlu1 %v8799_v53, %s11285_s25  ;;  %v1713_v8 = vsel %vm11276_vm2, %v8457_v58, %v1712_v3  ;;  %v8844_v34 = vpop.permute.xlu1 %2057 }
  0xca   : > { %v1004_v22 = vcombine.high %v1002_v32, %v1002_v32  ;;  %v1972_v23 = vrot.slane %v1003_v44, %v7428_v13  ;;  %v1976_v4 = vrot.slane %v1002_v32, %v7428_v13  ;;  %v1714_v2 = vsel %vm11279_vm3, %v8485_v31, %v1713_v8 }
  0xcb   : > { %v8818_v42 = vcombine.high %v8802_v14, %v8802_v14  ;;  %v1988_v52 = vrot.slane %v8806_v41, %v7428_v13  ;;  %v1992_v56 = vrot.slane %v8802_v14, %v7428_v13  ;;  %v1715_v58 = vsel %vm1676_vm4, %v8497_v48, %v1714_v2 }
  0xcc   : > { %v1980_v47 = vrot.slane %v1004_v22, %v7428_v13  ;;  %v2046_v17 = vsel %vm11278_vm1, %v1972_v23, %v1968_v7  ;;  %v1716_v31 = vsel %vm1678_vm5, %v8501_v51, %v1715_v58  ;;  %v2929_v45 = vsel %vm11276_vm2, %v8638_v37, %v2928_v54 }
  0xcd   : > { %v1996_v63 = vrot.slane %v8818_v42, %v7428_v13  ;;  %v2047_v39 = vsel %vm11276_vm2, %v1976_v4, %v2046_v17  ;;  %v1717_v9 = vsel %vm1680_vm6, %v8511_v40, %v1716_v31  ;;  %v2930_v3 = vsel %vm11279_vm3, %v8620_v0, %v2929_v45  ;;  %v8893_v58 = vpop.permute.xlu1 %3012 }
  0xce   : > { %v2048_v48 = vsel %vm11279_vm3, %v1980_v47, %v2047_v39  ;;  %v604_v33 = vrot.slane %v519_v1, 7  ;;  %v8854_v23 = vsel %vm1682_vm7, %v8514_v29, %v1717_v9  ;;  %v2931_v51 = vsel %vm1676_vm4, %v8630_v19, %v2930_v3 }
  0xcf   : > { %v2049_v7 = vsel %vm1676_vm4, %v1984_v25, %v2048_v48  ;;  %v11270_v37 = vrot.slane %v8833_v57, 7  ;;  %3020 = vrot.lane.b32.xlu1 %v8854_v23, %s11295_s27  ;;  %v2932_v40 = vsel %vm1678_vm5, %v8633_v49, %v2931_v51  ;;  %v680_v25 = vsel %vm565_vm0, %v608_v43, 0.0  ;;  %v8879_v43 = vpop.permute.xlu0 %2501 }
  0xd0   : > { %v2050_v54 = vsel %vm1678_vm5, %v1988_v52, %v2049_v7  ;;  %v662_v0 = vsel %vm565_vm0, 0.0, %v604_v33  ;;  %v2933_v4 = vsel %vm1680_vm6, %v8641_v16, %v2932_v40  ;;  %v1028_v47 = vrot.slane %v680_v25, %v7420_v10 }
  0xd1   : > { %v2051_v29 = vsel %vm1680_vm6, %v1992_v56, %v2050_v54  ;;  %v606_v19 = vsel %vm565_vm0, %v604_v33, %v11270_v37  ;;  %v1332_v8 = vcombine.high %v662_v0, %v662_v0  ;;  %v2934_v2 = vsel %vm1682_vm7, %v2884_v30, %v2933_v4 }
  0xd2   : > { %v8873_v52 = vsel %vm1682_vm7, %v1996_v63, %v2051_v29  ;;  %v8877_v49 = vrot.slane %v662_v0, %v7420_v10  ;;  %v1349_v1 = vcombine.high %v606_v19, %v606_v19  ;;  %v8887_v56 = vrot.slane %v606_v19, %v7420_v10 }
  0xd3   : > { %2067 = vrot.lane.b32.xlu0 %v8873_v52, %s11287_s24  ;;  %v8884_v16 = vrot.slane %v1332_v8, %v7420_v10  ;;  %v8891_v17 = vrot.slane %v1003_v44, %v7426_v12  ;;  %v8903_v31 = vrot.slane %v1002_v32, %v7426_v12  ;;  %v8929_v7 = vrot.slane %v1004_v22, %v7426_v12  ;;  %s11382_s24 = smov 72  }
  0xd4   : > { %v1347_v30 = vcombine.high %v8877_v49, %v8877_v49  ;;  %v8898_v63 = vrot.slane %v1349_v1, %v7420_v10  ;;  %v2384_v39 = vrot.slane %v8877_v49, %v7426_v12  ;;  %v8911_v44 = vcombine.high %v8887_v56, %v8887_v56  ;;  %v8970_v1 = vpop.permute.xlu1 %2167 }
  0xd5   : > { %v8907_v45 = vcombine.high %v8884_v16, %v8884_v16  ;;  %v2392_v48 = vrot.slane %v8884_v16, %v7426_v12  ;;  %v8917_v9 = vrot.slane %v8887_v56, %v7426_v12  ;;  %v8942_v40 = vrot.slane %v8785_v11, %v7426_v12  ;;  %v8961_v11 = vpop.permute.xlu0 %2837 }
  0xd6   : > { %v8921_v3 = vcombine.high %v8898_v63, %v8898_v63  ;;  %v2388_v32 = vrot.slane %v1347_v30, %v7426_v12  ;;  %v8926_v33 = vrot.slane %v8898_v63, %v7426_v12  ;;  %v8938_v54 = vrot.slane %v8911_v44, %v7426_v12 }
  0xd7   : > { %2959 = vrot.lane.b32.xlu0 %v2934_v2, %s11272_s29  ;;  %v8934_v51 = vrot.slane %v8907_v45, %v7426_v12  ;;  %v8946_v0 = vrot.slane %v8806_v41, %v7426_v12  ;;  %v8955_v29 = vrot.slane %v8802_v14, %v7426_v12  ;;  %v8959_v4 = vrot.slane %v8818_v42, %v7426_v12 }
  0xd8   : > { %v8950_v22 = vrot.slane %v8921_v3, %v7426_v12  ;;  %v2487_v25 = vsel %vm11278_vm1, %v2388_v32, %v2384_v39  ;;  %v2108_v41 = vrot.slane %v1028_v47, %v7426_v12  ;;  %v2158_v8 = vsel %vm11278_vm1, %v8903_v31, %v8891_v17 }
  0xd9   : > { %v2488_v19 = vsel %vm11276_vm2, %v2392_v48, %v2487_v25  ;;  %v1609_v2 = vrot.slane %v8662_v28, %v7426_v12  ;;  %v2159_v42 = vsel %vm11276_vm2, %v8929_v7, %v2158_v8  ;;  %v2720_v47 = vrot.slane %v8877_v49, %v7428_v13 }
  0xda   : > { %v2489_v14 = vsel %vm11279_vm3, %v8934_v51, %v2488_v19  ;;  %v2724_v39 = vrot.slane %v1347_v30, %v7428_v13  ;;  %v2160_v28 = vsel %vm11279_vm3, %v8942_v40, %v2159_v42  ;;  %v2728_v19 = vrot.slane %v8884_v16, %v7428_v13 }
  0xdb   : > { %v2490_v25 = vsel %vm1676_vm4, %v8917_v9, %v2489_v14  ;;  %v1719_v37 = vsel %vm11278_vm1, %v8707_v55, %v1609_v2  ;;  %v2161_v49 = vsel %vm1676_vm4, %v8946_v0, %v2160_v28  ;;  %v2732_v14 = vrot.slane %v8907_v45, %v7428_v13  ;;  %v9005_v28 = vld [vmem:[%s7433_s23 + $0xe8] sm:$0xff] }
  0xdc   : > { %v2491_v8 = vsel %vm1678_vm5, %v8938_v54, %v2490_v25  ;;  %v1720_v30 = vsel %vm11276_vm2, %v8720_v38, %v1719_v37  ;;  %v2162_v55 = vsel %vm1678_vm5, %v8955_v29, %v2161_v49  ;;  %v2736_v2 = vrot.slane %v8887_v56, %v7428_v13  ;;  %v523_v25 = vld [vmem:[%s7433_s23 + $0xe0] sm:$0xff]  ;;  %v9015_v49 = vpop.permute.xlu0 %2839 }
  0xdd   : > { %v2492_v42 = vsel %vm1680_vm6, %v8926_v33, %v2491_v8  ;;  %v1721_v16 = vsel %vm11279_vm3, %v8723_v27, %v1720_v30  ;;  %v2163_v37 = vsel %vm1680_vm6, %v8959_v4, %v2162_v55  ;;  %v2740_v8 = vrot.slane %v8911_v44, %v7428_v13 }
  0xde   : > { %v2493_v38 = vsel %vm1682_vm7, %v8950_v22, %v2492_v42  ;;  %v1722_v45 = vsel %vm1676_vm4, %v8730_v6, %v1721_v16  ;;  %v9019_v27 = vsel %vm1682_vm7, %v2108_v41, %v2163_v37  ;;  %v2744_v30 = vrot.slane %v8898_v63, %v7428_v13  ;;  %v9027_v6 = vpop.permute.xlu1 %2949 }
  0xdf   : > { %2513 = vrot.lane.b32.xlu1 %v2493_v38, %s11306_s26  ;;  %v1723_v56 = vsel %vm1678_vm5, %v8733_v61, %v1722_v45  ;;  %v2748_v42 = vrot.slane %v8921_v3, %v7428_v13  ;;  %2179 = vrot.lane.b32.xlu0 %v9019_v27, %s11285_s25  ;;  %v2823_v41 = vsel %vm11278_vm1, %v2724_v39, %v2720_v47  ;;  %v610_v55 = vrot.slane %v523_v25, 7  ;;  %s11385_s25 = smov 6  }
  0xe0   : > { %v1724_v44 = vsel %vm1680_vm6, %v8746_v21, %v1723_v56  ;;  %v611_v16 = vrot.slane %v9005_v28, 7  ;;  %v2824_v63 = vsel %vm11276_vm2, %v2728_v19, %v2823_v41  ;;  %v11363_v3 = vrot.slane %v8833_v57, 7  ;;  %v9059_v56 = vpop.permute.xlu0 %2059 }
  0xe1   : > { %v9037_v61 = vsel %vm1682_vm7, %v8749_v46, %v1724_v44  ;;  %v2935_v37 = vsel %vm11278_vm1, %v2392_v48, %v2388_v32  ;;  %v2825_v45 = vsel %vm11279_vm3, %v2732_v14, %v2824_v63  ;;  %v664_v47 = vsel %vm565_vm0, 0.0, %v610_v55 }
  0xe2   : > { %11362 = vst [vmem:[#allocation16_spill] sm:$0xff] %v9037_v61  ;;  %v679_v38 = vsel %vm565_vm0, %v11363_v3, 0.0  ;;  %v612_v21 = vsel %vm565_vm0, %v610_v55, %v611_v16  ;;  %v2826_v46 = vsel %vm1676_vm4, %v2736_v2, %v2825_v45  ;;  %v1373_v19 = vcombine.high %v664_v47, %v664_v47  ;;  %v9064_v55 = vpop.permute.xlu1 %2169 }
  0xe3   : > { %v1372_v39 = vrot.slane %v679_v38, %v7420_v10  ;;  %3083 = vrot.lane.b32.xlu1 %v8431_v26, %s11289_s30  ;;  %v1380_v57 = vrot.slane %v664_v47, %v7420_v10  ;;  %v1390_v25 = vcombine.high %v612_v21, %v612_v21  ;;  %3022 = vrot.lane.b32.xlu0 %v9037_v61, %s11295_s27 }
  0xe4   : > { %v2827_v48 = vsel %vm1678_vm5, %v2740_v8, %v2826_v46  ;;  %v1397_v32 = vrot.slane %v612_v21, %v7420_v10  ;;  %v2936_v28 = vsel %vm11276_vm2, %v8934_v51, %v2935_v37  ;;  %v1387_v2 = vrot.slane %v1373_v19, %v7420_v10 }
  0xe5   : > { %v2888_v14 = vrot.slane %v1372_v39, %v7426_v12  ;;  %v2828_v26 = vsel %vm1680_vm6, %v2744_v30, %v2827_v48  ;;  %v1388_v44 = vcombine.high %v1380_v57, %v1380_v57  ;;  %v1404_v41 = vrot.slane %v1390_v25, %v7420_v10 }
  0xe6   : > { %v2829_v8 = vsel %vm1682_vm7, %v2748_v42, %v2828_v26  ;;  %v1405_v63 = vcombine.high %v1397_v32, %v1397_v32  ;;  %v2416_v3 = vrot.slane %v1380_v57, %v7426_v12  ;;  %v2432_v38 = vrot.slane %v1397_v32, %v7426_v12 }
  0xe7   : > { %2849 = vrot.lane.b32.xlu1 %v2829_v8, %s11274_s28  ;;  %v1389_v51 = vcombine.high %v1387_v2, %v1387_v2  ;;  %v1406_v37 = vcombine.high %v1404_v41, %v1404_v41  ;;  %v2420_v30 = vrot.slane %v1388_v44, %v7426_v12  ;;  %v2424_v45 = vrot.slane %v1387_v2, %v7426_v12 }
  0xe8   : > { %v2436_v21 = vrot.slane %v1405_v63, %v7426_v12  ;;  %v2440_v47 = vrot.slane %v1404_v41, %v7426_v12  ;;  %v2937_v42 = vsel %vm11279_vm3, %v8917_v9, %v2936_v28  ;;  %v2752_v39 = vrot.slane %v1380_v57, %v7428_v13  ;;  %v9087_v28 = vpop.permute.xlu0 %2951 }
  0xe9   : > { %v2428_v46 = vrot.slane %v1389_v51, %v7426_v12  ;;  %v2444_v19 = vrot.slane %v1406_v37, %v7426_v12  ;;  %v2494_v25 = vsel %vm11278_vm1, %v2420_v30, %v2416_v3  ;;  %v2938_v48 = vsel %vm1676_vm4, %v8938_v54, %v2937_v42 }
  0xea   : > { %v2495_v26 = vsel %vm11276_vm2, %v2424_v45, %v2494_v25  ;;  %v2939_v8 = vsel %vm1678_vm5, %v8926_v33, %v2938_v48  ;;  %v2756_v61 = vrot.slane %v1388_v44, %v7428_v13  ;;  %v2760_v9 = vrot.slane %v1387_v2, %v7428_v13  ;;  %v9096_v25 = vpop.permute.xlu1 %2505 }
  0xeb   : > { %v2496_v57 = vsel %vm11279_vm3, %v2428_v46, %v2495_v26  ;;  %3118 = vrot.lane.b32.xlu1 %v8572_v5, %s11283_s16  ;;  %v2940_v3 = vsel %vm1680_vm6, %v8950_v22, %v2939_v8  ;;  %v2764_v54 = vrot.slane %v1389_v51, %v7428_v13  ;;  %v2768_v42 = vrot.slane %v1397_v32, %v7428_v13 }
  0xec   : > { %v2497_v33 = vsel %vm1676_vm4, %v2432_v38, %v2496_v57  ;;  %v2941_v2 = vsel %vm1682_vm7, %v2888_v14, %v2940_v3  ;;  %v2772_v44 = vrot.slane %v1405_v63, %v7428_v13  ;;  %v2776_v48 = vrot.slane %v1404_v41, %v7428_v13 }
  0xed   : > { %v2498_v5 = vsel %vm1678_vm5, %v2436_v21, %v2497_v33  ;;  %v2780_v26 = vrot.slane %v1406_v37, %v7428_v13  ;;  %v2830_v22 = vsel %vm11278_vm1, %v2756_v61, %v2752_v39  ;;  %v681_v32 = vsel %vm565_vm0, %v611_v16, 0.0  ;;  %v11364_v61 = vld [vmem:[#allocation5_spill] sm:$0xff]  ;;  %v9124_v33 = vpop.permute.xlu0 %2171 }
  0xee   : > { %v2499_v51 = vsel %vm1680_vm6, %v2440_v47, %v2498_v5  ;;  %v2831_v8 = vsel %vm11276_vm2, %v2760_v9, %v2830_v22  ;;  %v1413_v14 = vrot.slane %v681_v32, %v7420_v10  ;;  %v2942_v57 = vsel %vm11278_vm1, %v2424_v45, %v2420_v30  ;;  %v525_v16 = vld [vmem:[%s7433_s23 + $0xf0] sm:$0xff]  ;;  %v9122_v45 = vld [vmem:[%s7433_s23 + $0xf8] sm:$0xff]  ;;  %v9130_v22 = vpop.permute.xlu1 %3075  ;;  %s7301_s23 = smov 27  }
  0xef   : > { %v2500_v63 = vsel %vm1682_vm7, %v2444_v19, %v2499_v51  ;;  %2961 = vrot.lane.b32.xlu1 %v2941_v2, %s11272_s29  ;;  %v2832_v41 = vsel %vm11279_vm3, %v2764_v54, %v2831_v8  ;;  %v2943_v37 = vsel %vm11276_vm2, %v2428_v46, %v2942_v57  ;;  %v1417_v39 = vrot.slane %v11364_v61, %v7426_v12  ;;  %v11365_v2 = vld [vmem:[#allocation6_spill] sm:$0xff]  ;;  %v11366_v51 = vld [vmem:[#allocation7_spill] sm:$0xff] }
  0xf0   : > { %2515 = vrot.lane.b32.xlu0 %v2500_v63, %s11306_s26  ;;  %v2833_v9 = vsel %vm1676_vm4, %v2768_v42, %v2832_v41  ;;  %v2892_v3 = vrot.slane %v1413_v14, %v7426_v12  ;;  %v2944_v30 = vsel %vm11279_vm3, %v2432_v38, %v2943_v37  ;;  %v613_v8 = vrot.slane %v525_v16, 7 }
  0xf1   : > { %v2834_v54 = vsel %vm1678_vm5, %v2772_v44, %v2833_v9  ;;  %v2945_v46 = vsel %vm1676_vm4, %v2436_v21, %v2944_v30  ;;  %v1671_v5 = vsel %vm11278_vm1, %v11365_v2, %v1417_v39  ;;  %v11367_v44 = vld [vmem:[#allocation8_spill] sm:$0xff]  ;;  %v614_v63 = vrot.slane %v9122_v45, 7  ;;  %v11370_v9 = vld [vmem:[#allocation11_spill] sm:$0xff] }
  0xf2   : > { %v2835_v32 = vsel %vm1680_vm6, %v2776_v48, %v2834_v54  ;;  %v2946_v42 = vsel %vm1678_vm5, %v2440_v47, %v2945_v46  ;;  %v1673_v38 = vsel %vm11276_vm2, %v11366_v51, %v1671_v5  ;;  %v11368_v47 = vld [vmem:[#allocation9_spill] sm:$0xff]  ;;  %v665_v37 = vsel %vm565_vm0, 0.0, %v613_v8  ;;  %v9162_v46 = vpop.permute.xlu0 %3014 }
  0xf3   : > { %v2836_v14 = vsel %vm1682_vm7, %v2780_v26, %v2835_v32  ;;  %v2947_v57 = vsel %vm1680_vm6, %v2444_v19, %v2946_v42  ;;  %v9140_v21 = vsel %vm11279_vm3, %v11367_v44, %v1673_v38  ;;  %v1641_v19 = vrot.slane %v8777_v50, %v7426_v12  ;;  %v11369_v26 = vld [vmem:[#allocation10_spill] sm:$0xff]  ;;  %v9168_v42 = vpop.permute.xlu1 %2841 }
  0xf4   : > { %3085 = vrot.lane.b32.xlu0 %v8741_v60, %s11289_s30  ;;  %v2948_v48 = vsel %vm1682_vm7, %v2892_v3, %v2947_v57  ;;  %v1677_v41 = vsel %vm1676_vm4, %v11368_v47, %v9140_v21  ;;  %v615_v60 = vsel %vm565_vm0, %v613_v8, %v614_v63  ;;  %v1029_v39 = vcombine.high %v665_v37, %v665_v37  ;;  %v11371_v8 = vld [vmem:[#allocation12_spill] sm:$0xff] }
  0xf5   : > { %2963 = vrot.lane.b32.xlu1 %v2948_v48, %s11272_s29  ;;  %v1679_v61 = vsel %vm1678_vm5, %v11369_v26, %v1677_v41  ;;  %v1036_v16 = vrot.slane %v665_v37, %v7420_v10  ;;  %v1046_v30 = vcombine.high %v615_v60, %v615_v60  ;;  %v1053_v54 = vrot.slane %v615_v60, %v7420_v10  ;;  %s11293_s29 = smov 63  }
  0xf6   : > { %v1681_v3 = vsel %vm1680_vm6, %v11370_v9, %v1679_v61  ;;  %v1043_v50 = vrot.slane %v1029_v39, %v7420_v10  ;;  %v1726_v32 = vsel %vm11278_vm1, %v8891_v17, %v1641_v19 }
  0xf7   : > { %v1044_v2 = vcombine.high %v1036_v16, %v1036_v16  ;;  %v2976_v5 = vrot.slane %v1036_v16, %v7426_v12  ;;  %v1060_v51 = vrot.slane %v1046_v30, %v7420_v10  ;;  %v1061_v38 = vcombine.high %v1053_v54, %v1053_v54  ;;  %v9192_v30 = vpop.permute.xlu0 %2507 }
  0xf8   : > { %2851 = vrot.lane.b32.xlu0 %v2836_v14, %s11274_s28  ;;  %v1683_v57 = vsel %vm1682_vm7, %v11371_v8, %v1681_v3  ;;  %v1045_v44 = vcombine.high %v1043_v50, %v1043_v50  ;;  %v2984_v47 = vrot.slane %v1043_v50, %v7426_v12  ;;  %v2992_v37 = vrot.slane %v1053_v54, %v7426_v12  ;;  %v9199_v8 = vpop.permute.xlu1 %3110  ;;  %s7298_s28 = smov 54  }
  0xf9   : > { %v2980_v48 = vrot.slane %v1044_v2, %v7426_v12  ;;  %v1062_v41 = vcombine.high %v1060_v51, %v1060_v51  ;;  %v2996_v17 = vrot.slane %v1061_v38, %v7426_v12  ;;  %v1727_v14 = vsel %vm11276_vm2, %v8903_v31, %v1726_v32 }
  0xfa   : > { %v2988_v19 = vrot.slane %v1045_v44, %v7426_v12  ;;  %v3000_v26 = vrot.slane %v1060_v51, %v7426_v12  ;;  %v1728_v60 = vsel %vm11279_vm3, %v8929_v7, %v1727_v14  ;;  %v3039_v31 = vrot.slane %v1036_v16, %v7428_v13 }
  0xfb   : > { %v3005_v61 = vsel %vm11278_vm1, %v2980_v48, %v2976_v5  ;;  %v3004_v39 = vrot.slane %v1062_v41, %v7426_v12  ;;  %v1729_v3 = vsel %vm1676_vm4, %v8942_v40, %v1728_v60  ;;  %v3043_v7 = vrot.slane %v1044_v2, %v7428_v13 }
  0xfc   : > { %3120 = vrot.lane.b32.xlu0 %v8799_v53, %s11283_s16  ;;  %v3006_v9 = vsel %vm11276_vm2, %v2984_v47, %v3005_v61  ;;  %v1730_v5 = vsel %vm1678_vm5, %v8946_v0, %v1729_v3  ;;  %v3047_v53 = vrot.slane %v1043_v50, %v7428_v13  ;;  %v3051_v16 = vrot.slane %v1045_v44, %v7428_v13 }
  0xfd   : > { %v3007_v32 = vsel %vm11279_vm3, %v2988_v19, %v3006_v9  ;;  %v1731_v40 = vsel %vm1680_vm6, %v8955_v29, %v1730_v5  ;;  %v3135_v61 = vsel %vm3134_vm8, %v1683_v57, %v8779_v59  ;;  %v3055_v50 = vrot.slane %v1053_v54, %v7428_v13  ;;  %v9231_v5 = vpop.permute.xlu1 %2843 }
  0xfe   : > { %v3008_v14 = vsel %vm1676_vm4, %v2992_v37, %v3007_v32  ;;  %v9210_v0 = vsel %vm1682_vm7, %v8959_v4, %v1731_v40  ;;  %v3059_v29 = vrot.slane %v1061_v38, %v7428_v13  ;;  %v3063_v44 = vrot.slane %v1060_v51, %v7428_v13 }
  0xff   : > { %v3009_v60 = vsel %vm1678_vm5, %v2996_v17, %v3008_v14  ;;  %v3068_v9 = vsel %vm11278_vm1, %v3043_v7, %v3039_v31  ;;  %v3067_v57 = vrot.slane %v1062_v41, %v7428_v13  ;;  %v682_v54 = vsel %vm565_vm0, %v614_v63, 0.0  ;;  %v3078_v31 = vpop.permute.xlu0 %3077 }
 0x100   : > { %v3010_v2 = vsel %vm1680_vm6, %v3000_v26, %v3009_v60  ;;  %3024 = vrot.lane.b32.xlu0 %v9210_v0, %s11295_s27  ;;  %v3069_v4 = vsel %vm11276_vm2, %v3047_v53, %v3068_v9  ;;  %v1069_v38 = vrot.slane %v682_v54, %v7420_v10  ;;  %v3103_v51 = vsel %vm11278_vm1, %v2984_v47, %v2980_v48 }
 0x101   : > { %v3011_v59 = vsel %vm1682_vm7, %v3004_v39, %v3010_v2  ;;  %v3070_v3 = vsel %vm11279_vm3, %v3051_v16, %v3069_v4  ;;  %v3104_v41 = vsel %vm11276_vm2, %v2988_v19, %v3103_v51  ;;  %v3144_v45 = vsel %vm3143_vm9, %v3135_v61, %v8738_v35 }
 0x102   : > { %3026 = vrot.lane.b32.xlu1 %v3011_v59, %s11295_s27  ;;  %v3071_v32 = vsel %vm1676_vm4, %v3055_v50, %v3070_v3  ;;  %v3102_v7 = vrot.slane %v1069_v38, %v7426_v12  ;;  %v3105_v48 = vsel %vm11279_vm3, %v2992_v37, %v3104_v41  ;;  %v3153_v19 = vsel %vm3152_vm10, %v3144_v45, %v8879_v43 }
 0x103   : > { %v3072_v63 = vsel %vm1678_vm5, %v3059_v29, %v3071_v32  ;;  %v3106_v53 = vsel %vm1676_vm4, %v2996_v17, %v3105_v48  ;;  %v3136_v35 = vsel %vm3134_vm8, %v7798_v20, %v8835_v24  ;;  %v3162_v40 = vsel %vm3161_vm11, %v3153_v19, %v8961_v11  ;;  %v527_v20 = vld [vmem:[%s11372_s1] sm:$0xff]  ;;  %v528_v24 = vld [vmem:[%s11372_s1 + $0x8] sm:$0xff] }
 0x104   : > { %3087 = vrot.lane.b32.xlu0 %v8873_v52, %s11289_s30  ;;  %v3073_v47 = vsel %vm1680_vm6, %v3063_v44, %v3072_v63  ;;  %v3107_v52 = vsel %vm1678_vm5, %v3000_v26, %v3106_v53  ;;  %v3145_v43 = vsel %vm3143_vm9, %v3136_v35, %v8970_v1  ;;  %v3171_v17 = vsel %vm11298_vm12, %v3162_v40, %v9027_v6  ;;  %v9266_v26 = vpop.permute.xlu0 %2061  ;;  %v529_v1 = vld [vmem:[%s11372_s1 + $0x10] sm:$0xff]  ;;  %v530_v6 = vld [vmem:[%s11372_s1 + $0x18] sm:$0x7]  ;;  %v11375_v29 = vld [vmem:[#allocation3_spill] sm:$0xff]  ;;  %s11323_s1 = smov 97  }
 0x105   : > { %v3074_v14 = vsel %vm1682_vm7, %v3067_v57, %v3073_v47  ;;  %v3108_v37 = vsel %vm1680_vm6, %v3004_v39, %v3107_v52  ;;  %v3113_v39 = vpop.permute.xlu1 %3112  ;;  %v3154_v16 = vsel %vm3152_vm10, %v3145_v43, %v8789_v15  ;;  %v3180_v61 = vsel %vm11305_vm13, %v3171_v17, %v8893_v58 }
 0x106   : > { %3089 = vrot.lane.b32.xlu1 %v3074_v14, %s11289_s30  ;;  %v3109_v11 = vsel %vm1682_vm7, %v3102_v7, %v3108_v37  ;;  %v3189_v60 = vsel %vm11297_vm14, %v3180_v61, %v9130_v22  ;;  %vm11304_vm4 = vcmask 220160   ;;  %vm3237_vm5 = vcmask 1042432   ;;  %s11313_s30 = smov 48  }
 0x107   : > { %v3198_v50 = vsel %vm11280_vm15, %v3189_v60, %v9199_v8  ;;  %v6986_v2 = vpack.c.bf16 %v530_v6, %v529_v1  ;;  %v3163_v15 = vsel %vm3161_vm11, %v3154_v16, %v9015_v49  ;;  %vm11277_vm6 = vmmov 1   ;;  %v11376_v49 = vld [vmem:[#allocation4_spill] sm:$0xff] }
 0x108   : > { %3122 = vrot.lane.b32.xlu0 %v9019_v27, %s11283_s16  ;;  %v6982_v27 = vpack.c.bf16 %v528_v24, %v527_v20  ;;  %6874 = vmatprep.mubr.msk.f32.mxu0 %vm11304_vm4, %v3198_v50  ;;  %vm9287_vm7 = vmpackc.low %vm3237_vm5, %vm11277_vm6  ;;  %vm3457_vm2 = vcmask 1046528   ;;  %v3172_v22 = vsel %vm11298_vm12, %v3163_v15, %v9087_v28  ;;  %v2954_v8 = vpop.permute.xlu0 %2953  ;;  %v3458_v44 = vrot.slane %v11375_v29, 1 }
 0x109   : > { %v3459_v9 = vrot.slane %v11376_v49, 1  ;;  %v3181_v59 = vsel %vm11305_vm13, %v3172_v22, %v9162_v46  ;;  %v2174_v57 = vpop.permute.xlu1 %2173  ;;  %v3139_v61 = vsel %vm3134_vm8, %v8588_v36, %v9266_v26  ;;  %vm3506_vm5 = vcmask 1045504  }
 0x10a   : > { %3124 = vrot.lane.b32.xlu1 %v3109_v11, %s11283_s16  ;;  %6983 = vmatprep.subr.bf16.mxu0 %v6982_v27  ;;  %v3190_v4 = vsel %vm11297_vm14, %v3181_v59, %v3078_v31  ;;  %v3137_v31 = vsel %vm3134_vm8, %v8159_v62, %v8844_v34  ;;  %v3138_v34 = vsel %vm3134_vm8, %v8412_v18, %v9059_v56  ;;  %s11380_s16 = smov 18  }
 0x10b   : > { %6985 = vmatpush3.bf16.msra.mxu0 %v6982_v27  ;;  %v9303_v28 = vsel %vm3457_vm2, %v3458_v44, %v3459_v9  ;;  %v3199_v54 = vsel %vm11280_vm15, %v3190_v4, %v3113_v39  ;;  %v3146_v45 = vsel %vm3143_vm9, %v3137_v31, %v9064_v55  ;;  %v3148_v27 = vsel %vm3143_vm9, %v3139_v61, %v2174_v57 }
 0x10c   : > { %6988 = vmatprep.subr.msk.bf16.mxu0 %vm9287_vm7, %v6986_v2  ;;  %3482 = vrot.lane.b32.xlu0 %v9303_v28, %s11306_s26  ;;  %v3155_v63 = vsel %vm3152_vm10, %v3146_v45, %v9096_v25  ;;  %v3147_v25 = vsel %vm3143_vm9, %v3138_v34, %v9124_v33  ;;  %v3508_v31 = vrot.slane %v11376_v49, 2 }
 0x10d   : > { %v3017_v3 = vpop.permute.xlu1 %3016  ;;  %v3164_v48 = vsel %vm3161_vm11, %v3155_v63, %v9168_v42  ;;  %v3156_v42 = vsel %vm3152_vm10, %v3147_v25, %v9192_v30 }
 0x10e   : > { %3649 = vrot.lane.b32.xlu1 %v11375_v29, %s7298_s28  ;;  %v3173_v47 = vsel %vm11298_vm12, %v3164_v48, %v2954_v8  ;;  %v3165_v40 = vsel %vm3161_vm11, %v3156_v42, %v9231_v5 }
 0x10f   : > { %6991 = vmatpush3.bf16.msk.msra.mxu0 %vm9287_vm7, %v6986_v2  ;;  %v2064_v46 = vpop.permute.xlu0 %2063  ;;  %v3182_v19 = vsel %vm11305_vm13, %v3173_v47, %v3017_v3  ;;  %v11377_v47 = vld [vmem:[#allocation16_spill] sm:$0xff] }
 0x110   : > { %v3140_v57 = vsel %vm3134_vm8, %v8854_v23, %v2064_v46 }
 0x112   : > { %6875 = vmatmul.mubr.msk.f32.vlgmr.msra.gmra.mrb[0].mxu0 %vm11304_vm4, %v3199_v54  ;;  %3673 = vrot.lane.b32.xlu1 %v9303_v28, %s11293_s29 }
 0x113   : > { %v2956_v38 = vpop.permute.xlu0 %2955 }
 0x114   : > { %v3174_v37 = vsel %vm11298_vm12, %v3165_v40, %v2956_v38 }
 0x11b   : > { %v2510_v51 = vpop.permute.xlu1 %2509  ;;  %v2176_v41 = vpop.permute.xlu0 %2175 }
 0x11c   : > { %v3157_v60 = vsel %vm3152_vm10, %v3148_v27, %v2510_v51  ;;  %v3149_v54 = vsel %vm3143_vm9, %v3140_v57, %v2176_v41 }
 0x11f   : > { %v3080_v32 = vpop.permute.xlu1 %3079  ;;  %v3019_v53 = vpop.permute.xlu0 %3018 }
 0x120   : > { %v3191_v35 = vsel %vm11297_vm14, %v3182_v19, %v3080_v32  ;;  %v3183_v17 = vsel %vm11305_vm13, %v3174_v37, %v3019_v53  ;;  %v3507_v32 = vrot.slane %v11375_v29, 2 }
 0x122   : > { %v9362_v46 = vsel %vm3506_vm5, %v3507_v32, %v3508_v31 }
 0x123   : > { %v2846_v7 = vpop.permute.xlu1 %2845  ;;  %3531 = vrot.lane.b32.xlu0 %v9362_v46, %s11295_s27 }
 0x124   : > { %v3166_v2 = vsel %vm3161_vm11, %v3157_v60, %v2846_v7 }
 0x127   : > { %v3115_v14 = vpop.permute.xlu1 %3114 }
 0x128   : > { %v3200_v62 = vsel %vm11280_vm15, %v3191_v35, %v3115_v14 }
 0x129   : > { %6877 = vmatprep.mubr.msk.f32.mxu0 %vm11304_vm4, %v3200_v62 }
 0x12c   : > { %v2512_v55 = vpop.permute.xlu0 %2511 }
 0x12d   : > { %v3158_v3 = vsel %vm3152_vm10, %v3149_v54, %v2512_v55 }
 0x12e   : > { %v2848_v52 = vpop.permute.xlu1 %2847 }
 0x12f   : > { %v3167_v51 = vsel %vm3161_vm11, %v3158_v3, %v2848_v52 }
 0x130   : > { %v3082_v43 = vpop.permute.xlu0 %3081 }
 0x131   : > { %v3192_v20 = vsel %vm11297_vm14, %v3183_v17, %v3082_v43 }
 0x132   : > { %v3117_v24 = vpop.permute.xlu1 %3116 }
 0x133   : > { %v3201_v18 = vsel %vm11280_vm15, %v3192_v20, %v3117_v24 }
 0x134   : > { %6878 = vmatmul.mubr.msk.f32.gmra.mrb[2].mxu0 %vm11304_vm4, %v3201_v18 }
 0x135   : > { %v2066_v56 = vpop.permute.xlu0 %2065 }
 0x136   : > { %v3141_v19 = vsel %vm3134_vm8, %v11377_v47, %v2066_v56 }
 0x139   : > { %v2958_v33 = vpop.permute.xlu0 %2957 }
 0x13a   : > { %v3175_v15 = vsel %vm11298_vm12, %v3166_v2, %v2958_v33 }
 0x13b   : > { %v2178_v11 = vpop.permute.xlu1 %2177 }
 0x13c   : > { %v3150_v35 = vsel %vm3143_vm9, %v3141_v19, %v2178_v11 }
 0x141   : > { %v3021_v1 = vpop.permute.xlu1 %3020 }
 0x142   : > { %v3184_v22 = vsel %vm11305_vm13, %v3175_v15, %v3021_v1 }
 0x145   : > { %v2068_v30 = vpop.permute.xlu0 %2067 }
 0x146   : > { %v3142_v34 = vsel %vm3134_vm8, %v9210_v0, %v2068_v30  ;;  %v6660_v30 = vld [vmem:[%s11378_s2] ss:$0 sm:$0xff]  ;;  %s11327_s2 = smov 104  }
 0x149   : > { %v2960_v6 = vpop.permute.xlu0 %2959 }
 0x14a   : > { %v3176_v45 = vsel %vm11298_vm12, %v3167_v51, %v2960_v6 }
 0x151   : > { %v2514_v39 = vpop.permute.xlu1 %2513  ;;  %v2180_v16 = vpop.permute.xlu0 %2179 }
 0x152   : > { %v3159_v14 = vsel %vm3152_vm10, %v3150_v35, %v2514_v39  ;;  %v3151_v25 = vsel %vm3143_vm9, %v3142_v34, %v2180_v16 }
 0x155   : > { %v3084_v5 = vpop.permute.xlu1 %3083  ;;  %v3023_v8 = vpop.permute.xlu0 %3022 }
 0x156   : > { %v3193_v44 = vsel %vm11297_vm14, %v3184_v22, %v3084_v5  ;;  %v3185_v23 = vsel %vm11305_vm13, %v3176_v45, %v3023_v8 }
 0x159   : > { %v2850_v50 = vpop.permute.xlu1 %2849 }
 0x15a   : > { %v3168_v55 = vsel %vm3161_vm11, %v3159_v14, %v2850_v50 }
 0x15d   : > { %v3119_v9 = vpop.permute.xlu1 %3118 }
 0x15e   : > { %v3202_v59 = vsel %vm11280_vm15, %v3193_v44, %v3119_v9 }
 0x15f   : > { %6880 = vmatprep.mubr.msk.f32.mxu0 %vm11304_vm4, %v3202_v59 }
 0x161   : > { %v2962_v4 = vpop.permute.xlu1 %2961 }
 0x162   : > { %v2516_v36 = vpop.permute.xlu0 %2515  ;;  %v3177_v42 = vsel %vm11298_vm12, %v3168_v55, %v2962_v4 }
 0x163   : > { %v3160_v52 = vsel %vm3152_vm10, %v3151_v25, %v2516_v36 }
 0x166   : > { %v3086_v26 = vpop.permute.xlu0 %3085 }
 0x167   : > { %v3194_v41 = vsel %vm11297_vm14, %v3185_v23, %v3086_v26  ;;  %v2964_v63 = vpop.permute.xlu1 %2963 }
 0x16a   : > { %v2852_v38 = vpop.permute.xlu0 %2851 }
 0x16b   : > { %v3169_v43 = vsel %vm3161_vm11, %v3160_v52, %v2852_v38 }
 0x16c   : > { %v3178_v24 = vsel %vm11298_vm12, %v3169_v43, %v2964_v63  ;;  %vm3782_vm12 = vcmask 662528  }
 0x16e   : > { %v3121_v7 = vpop.permute.xlu0 %3120 }
 0x16f   : > { %v3203_v49 = vsel %vm11280_vm15, %v3194_v41, %v3121_v7 }
 0x170   : > { %6881 = vmatmul.mubr.msk.f32.gmra.mrb[4].mxu0 %vm11304_vm4, %v3203_v49 }
 0x172   : > { %v3025_v48 = vpop.permute.xlu0 %3024 }
 0x173   : > { %v3186_v40 = vsel %vm11305_vm13, %v3177_v42, %v3025_v48 }
 0x174   : > { %v3027_v53 = vpop.permute.xlu1 %3026 }
 0x175   : > { %v3187_v18 = vsel %vm11305_vm13, %v3178_v24, %v3027_v53 }
 0x176   : > { %v3088_v62 = vpop.permute.xlu0 %3087 }
 0x177   : > { %v3195_v17 = vsel %vm11297_vm14, %v3186_v40, %v3088_v62 }
 0x178   : > { %v3090_v37 = vpop.permute.xlu1 %3089 }
 0x179   : > { %v3196_v56 = vsel %vm11297_vm14, %v3187_v18, %v3090_v37  ;;  %vm3767_vm14 = vcmask 588800  }
 0x17a   : > { %v3123_v20 = vpop.permute.xlu0 %3122 }
 0x17b   : > { %v3204_v0 = vsel %vm11280_vm15, %v3195_v17, %v3123_v20 }
 0x17c   : > { %6883 = vmatprep.mubr.msk.f32.mxu0 %vm11304_vm4, %v3204_v0  ;;  %v3125_v33 = vpop.permute.xlu1 %3124 }
 0x17d   : > { %v3205_v11 = vsel %vm11280_vm15, %v3196_v56, %v3125_v33 }
 0x17e   : > { %6884 = vmatmul.mubr.msk.f32.gmra.mrb[6].mxu0 %vm11304_vm4, %v3205_v11  ;;  %v9418_v63 = vpop.permute.xlu0 %3482 }
 0x180   : > { %v9416_v23 = vpop.permute.xlu1 %3649 }
 0x184   : > { %v9428_v19 = vpop.permute.xlu1 %3673 }
 0x195   : > { %v9430_v53 = vpop.permute.xlu0 %3531 }
 0x1e5   : > { %v6876_v1 = vpop.f32.mrb[0].mxu0 }
 0x1e6   : > { %v3313_v6 = vadd.f32 %v6876_v1, %v6660_v30  ;;  %v3307_v39 = vpop.f32.mrb[1].mxu0 }
 0x1e7   : > { %v3308_v5 = vadd.f32 %v6660_v30, %v3307_v39 }
 0x1e8   : > { %v3355_v16 = vmul.f32 0.2, %v3313_v6  ;;  %vm3347_vm6 = vcmp.ge.f32.partialorder %v3313_v6, 0.0 }
 0x1e9   : > { %v3354_v61 = vmul.f32 0.2, %v3308_v5  ;;  %vm3346_vm1 = vcmp.ge.f32.partialorder %v3308_v5, 0.0 }
 0x1ea   : > { %v9392_v27 = vsel %vm3347_vm6, %v3313_v6, %v3355_v16 }
 0x1eb   : > { %3397 = vrot.lane.b32.xlu1 %v9392_v27, %s11281_s22  ;;  %v9396_v60 = vsel %vm3346_vm1, %v3308_v5, %v3354_v61 }
 0x1ec   : > { %3395 = vrot.lane.b32.xlu0 %v9396_v60, %s11281_s22 }
 0x207   : > { %v6879_v50 = vpop.f32.mrb[2].mxu0 }
 0x208   : > { %v3323_v2 = vadd.f32 %v6879_v50, %v6660_v30  ;;  %v3317_v15 = vpop.f32.mrb[3].mxu0  ;;  %v3370_v50 = vld [vmem:[%s11379_s3] sm:$0xff] }
 0x209   : > { %v3318_v22 = vadd.f32 %v6660_v30, %v3317_v15  ;;  %v3372_v15 = vld [vmem:[%s11379_s3 + $0x10] sm:$0xff] }
 0x20a   : > { %v3357_v8 = vmul.f32 0.2, %v3323_v2  ;;  %vm3349_vm3 = vcmp.ge.f32.partialorder %v3323_v2, 0.0 }
 0x20b   : > { %v3356_v44 = vmul.f32 0.2, %v3318_v22  ;;  %vm3348_vm15 = vcmp.ge.f32.partialorder %v3318_v22, 0.0 }
 0x20c   : > { %v9400_v9 = vsel %vm3349_vm3, %v3323_v2, %v3357_v8  ;;  %v3371_v2 = vld [vmem:[%s11379_s3 + $0x8] sm:$0xff] }
 0x20d   : > { %3401 = vrot.lane.b32.xlu1 %v9400_v9, %s11281_s22  ;;  %v9404_v59 = vsel %vm3348_vm15, %v3318_v22, %v3356_v44  ;;  %v3373_v22 = vld [vmem:[%s11379_s3 + $0x18] sm:$0xff] }
 0x20e   : > { %3399 = vrot.lane.b32.xlu0 %v9404_v59, %s11281_s22 }
 0x243   : > { %v6882_v36 = vpop.f32.mrb[4].mxu0 }
 0x244   : > { %v3333_v26 = vadd.f32 %v6882_v36, %v6660_v30  ;;  %v3327_v57 = vpop.f32.mrb[5].mxu0 }
 0x245   : > { %v3328_v4 = vadd.f32 %v6660_v30, %v3327_v57  ;;  %v6996_v57 = vpack.c.bf16 %v3373_v22, %v3372_v15 }
 0x246   : > { %v3359_v54 = vmul.f32 0.2, %v3333_v26  ;;  %vm3351_vm1 = vcmp.ge.f32.partialorder %v3333_v26, 0.0 }
 0x247   : > { %v3358_v3 = vmul.f32 0.2, %v3328_v4  ;;  %vm3350_vm6 = vcmp.ge.f32.partialorder %v3328_v4, 0.0 }
 0x248   : > { %v9408_v38 = vsel %vm3351_vm1, %v3333_v26, %v3359_v54  ;;  %v6992_v26 = vpack.c.bf16 %v3371_v2, %v3370_v50  ;;  %v3375_v54 = vld [vmem:[%s11379_s3 + $0x28] sm:$0xff]  ;;  %vm3731_vm1 = vcmask 293888  }
 0x249   : > { %3405 = vrot.lane.b32.xlu1 %v9408_v38, %s11281_s22  ;;  %v9412_v51 = vsel %vm3350_vm6, %v3328_v4, %v3358_v3  ;;  %v3374_v4 = vld [vmem:[%s11379_s3 + $0x20] sm:$0xff]  ;;  %vm11303_vm6 = vcmask 367616  }
 0x24a   : > { %3403 = vrot.lane.b32.xlu0 %v9412_v51, %s11281_s22  ;;  %6993 = vmatprep.subr.bf16.mxu0 %v6992_v26 }
 0x24b   : > { %6995 = vmatpush3.bf16.msra.mxu0 %v6992_v26 }
 0x24c   : > { %6997 = vmatprep.subr.bf16.mxu0 %v6996_v57 }
 0x24f   : > { %6999 = vmatpush3.bf16.msra.mxu0 %v6996_v57 }
 0x251   : > { %v6885_v32 = vpop.f32.mrb[6].mxu0 }
 0x252   : > { %v3343_v31 = vadd.f32 %v6885_v32, %v6660_v30  ;;  %v3337_v45 = vpop.f32.mrb[7].mxu0 }
 0x253   : > { %v3338_v41 = vadd.f32 %v6660_v30, %v3337_v45 }
 0x254   : > { %v3361_v7 = vmul.f32 0.2, %v3343_v31  ;;  %vm3353_vm3 = vcmp.ge.f32.partialorder %v3343_v31, 0.0 }
 0x255   : > { %v3360_v49 = vmul.f32 0.2, %v3338_v41  ;;  %vm3352_vm15 = vcmp.ge.f32.partialorder %v3338_v41, 0.0 }
 0x256   : > { %v9420_v48 = vsel %vm3353_vm3, %v3343_v31, %v3361_v7  ;;  %v3376_v7 = vld [vmem:[%s11379_s3 + $0x30] sm:$0xff]  ;;  %vm3749_vm3 = vcmask 441344  }
 0x257   : > { %3409 = vrot.lane.b32.xlu1 %v9420_v48, %s11281_s22  ;;  %v9424_v47 = vsel %vm3352_vm15, %v3338_v41, %v3360_v49  ;;  %v7000_v41 = vpack.c.bf16 %v3375_v54, %v3374_v4  ;;  %v3377_v49 = vld [vmem:[%s11379_s3 + $0x38] sm:$0xff]  ;;  %vm3758_vm15 = vcmask 515072  }
 0x258   : > { %3407 = vrot.lane.b32.xlu0 %v9424_v47, %s11281_s22  ;;  %s11388_s22 = smov 15  }
 0x259   : > { %7001 = vmatprep.subr.bf16.mxu0 %v7000_v41 }
 0x25a   : > { %7003 = vmatpush3.bf16.msra.mxu0 %v7000_v41 }
 0x25d   : > { %v3398_v35 = vpop.permute.xlu1 %3397 }
 0x25e   : > { %v3412_v14 = vrot.slane %v3398_v35, 7  ;;  %v3396_v62 = vpop.permute.xlu0 %3395 }
 0x25f   : > { %v3411_v34 = vrot.slane %v3396_v62, 7 }
 0x260   : > { %v9433_v55 = vsel %vm565_vm0, 0.0, %v3412_v14  ;;  %v3436_v25 = vsel %vm565_vm0, %v3412_v14, 0.0 }
 0x261   : > { %v3465_v42 = vrot.slane %v3436_v25, 1  ;;  %3558 = vrot.lane.b32.xlu1 %v9433_v55, %s7301_s23  ;;  %v9439_v52 = vsel %vm565_vm0, 0.0, %v3411_v34  ;;  %v3464_v40 = vrot.slane %v9433_v55, 1  ;;  %v3514_v37 = vrot.slane %v3436_v25, 2  ;;  %v3378_v25 = vld [vmem:[%s11379_s3 + $0x40] sm:$0xff] }
 0x262   : > { %3556 = vrot.lane.b32.xlu0 %v9439_v52, %s7301_s23  ;;  %v3513_v17 = vrot.slane %v9433_v55, 2  ;;  %v3435_v20 = vsel %vm565_vm0, %v3411_v34, 0.0  ;;  %v3461_v18 = vrot.slane %v9439_v52, 1  ;;  %v3510_v11 = vrot.slane %v9439_v52, 2 }
 0x263   : > { %v3466_v43 = vsel %vm3457_vm2, %v3464_v40, %v3465_v42  ;;  %v3462_v24 = vrot.slane %v3435_v20, 1  ;;  %v3511_v33 = vrot.slane %v3435_v20, 2  ;;  %v7004_v34 = vpack.c.bf16 %v3377_v49, %v3376_v7  ;;  %v3379_v42 = vld [vmem:[%s11379_s3 + $0x48] sm:$0xff] }
 0x264   : > { %v3515_v0 = vsel %vm3506_vm5, %v3513_v17, %v3514_v37  ;;  %v7008_v17 = vpack.c.bf16 %v3379_v42, %v3378_v25 }
 0x265   : > { %3635 = vrot.lane.b32.xlu1 %v9433_v55, %s7298_s28  ;;  %v3463_v56 = vsel %vm3457_vm2, %v3461_v18, %v3462_v24  ;;  %v3512_v30 = vsel %vm3506_vm5, %v3510_v11, %v3511_v33  ;;  %7005 = vmatprep.subr.bf16.mxu0 %v7004_v34  ;;  %v3380_v24 = vld [vmem:[%s11379_s3 + $0x50] sm:$0x1]  ;;  %s11493_s3 = smov 7  }
 0x266   : > { %3586 = vrot.lane.b32.xlu0 %v3466_v43, %s11301_s17  ;;  %7007 = vmatpush3.bf16.msra.mxu0 %v7004_v34 }
 0x267   : > { %7009 = vmatprep.subr.bf16.mxu0 %v7008_v17 }
 0x269   : > { %3486 = vrot.lane.b32.xlu1 %v3466_v43, %s11306_s26 }
 0x26a   : > { %3613 = vrot.lane.b32.xlu0 %v3515_v0, %s11299_s20  ;;  %7011 = vmatpush3.bf16.msra.mxu0 %v7008_v17 }
 0x26b   : > { %6906 = vmatprep.subr.msk.mxu0 %vm565_vm0, %v3380_v24 }
 0x26d   : > { %3535 = vrot.lane.b32.xlu1 %v3515_v0, %s11295_s27 }
 0x26e   : > { %3584 = vrot.lane.b32.xlu0 %v3463_v56, %s11301_s17  ;;  %6907 = vmatpush3.msk.msra.mxu0 %vm565_vm0, %v3380_v24 }
 0x271   : > { %3659 = vrot.lane.b32.xlu1 %v3466_v43, %s11293_s29  ;;  %s11381_s29 = smov 63  }
 0x275   : > { %3683 = vrot.lane.b32.xlu1 %v3515_v0, %s11291_s21  ;;  %s11389_s21 = smov 24  }
 0x279   : > { %3484 = vrot.lane.b32.xlu1 %v3463_v56, %s11306_s26 }
 0x27d   : > { %3533 = vrot.lane.b32.xlu1 %v3512_v30, %s11295_s27  ;;  %s11431_s27 = smov 36  }
 0x27f   : > { %v3402_v1 = vpop.permute.xlu1 %3401 }
 0x280   : > { %v3414_v6 = vrot.slane %v3402_v1, 7  ;;  %v3400_v39 = vpop.permute.xlu0 %3399 }
 0x281   : > { %v3413_v16 = vrot.slane %v3400_v39, 7  ;;  %3611 = vrot.lane.b32.xlu1 %v3512_v30, %s11299_s20 }
 0x282   : > { %v9464_v5 = vsel %vm565_vm0, 0.0, %v3414_v6  ;;  %v3438_v61 = vsel %vm565_vm0, %v3414_v6, 0.0 }
 0x283   : > { %3562 = vrot.lane.b32.xlu0 %v9464_v5, %s7301_s23  ;;  %v3471_v8 = vrot.slane %v3438_v61, 1  ;;  %v9483_v44 = vsel %vm565_vm0, 0.0, %v3413_v16  ;;  %v3470_v36 = vrot.slane %v9464_v5, 1  ;;  %v3520_v3 = vrot.slane %v3438_v61, 2 }
 0x284   : > { %v3519_v31 = vrot.slane %v9464_v5, 2  ;;  %v3437_v45 = vsel %vm565_vm0, %v3413_v16, 0.0  ;;  %v3467_v62 = vrot.slane %v9483_v44, 1  ;;  %v3516_v43 = vrot.slane %v9483_v44, 2 }
 0x285   : > { %3639 = vrot.lane.b32.xlu1 %v9464_v5, %s7298_s28  ;;  %v3472_v32 = vsel %vm3457_vm2, %v3470_v36, %v3471_v8  ;;  %v3468_v35 = vrot.slane %v3437_v45, 1  ;;  %v3517_v40 = vrot.slane %v3437_v45, 2 }
 0x286   : > { %v3521_v14 = vsel %vm3506_vm5, %v3519_v31, %v3520_v3 }
 0x287   : > { %3637 = vrot.lane.b32.xlu0 %v9483_v44, %s7298_s28  ;;  %v3469_v37 = vsel %vm3457_vm2, %v3467_v62, %v3468_v35  ;;  %v3518_v20 = vsel %vm3506_vm5, %v3516_v43, %v3517_v40 }
 0x289   : > { %3560 = vrot.lane.b32.xlu1 %v9483_v44, %s7301_s23 }
 0x28b   : > { %3490 = vrot.lane.b32.xlu0 %v3472_v32, %s11306_s26 }
 0x28d   : > { %3590 = vrot.lane.b32.xlu1 %v3472_v32, %s11301_s17 }
 0x28f   : > { %3617 = vrot.lane.b32.xlu0 %v3521_v14, %s11299_s20 }
 0x291   : > { %3539 = vrot.lane.b32.xlu1 %v3521_v14, %s11380_s16 }
 0x293   : > { %3488 = vrot.lane.b32.xlu0 %v3469_v37, %s11306_s26 }
 0x295   : > { %3663 = vrot.lane.b32.xlu1 %v3472_v32, %s11381_s29 }
 0x297   : > { %3537 = vrot.lane.b32.xlu0 %v3518_v20, %s11380_s16 }
 0x299   : > { %3687 = vrot.lane.b32.xlu1 %v3521_v14, %s11382_s24 }
 0x29b   : > { %3661 = vrot.lane.b32.xlu0 %v3469_v37, %s11381_s29 }
 0x29d   : > { %3588 = vrot.lane.b32.xlu1 %v3469_v37, %s11301_s17 }
 0x29f   : > { %3615 = vrot.lane.b32.xlu0 %v3518_v20, %s11299_s20 }
 0x2a1   : > { %3685 = vrot.lane.b32.xlu1 %v3518_v20, %s11382_s24 }
 0x2bb   : > { %v3406_v0 = vpop.permute.xlu1 %3405 }
 0x2bc   : > { %v3416_v18 = vrot.slane %v3406_v0, 7  ;;  %v3404_v56 = vpop.permute.xlu0 %3403 }
 0x2bd   : > { %v3415_v11 = vrot.slane %v3404_v56, 7 }
 0x2be   : > { %v9536_v33 = vsel %vm565_vm0, 0.0, %v3416_v18  ;;  %v3440_v30 = vsel %vm565_vm0, %v3416_v18, 0.0 }
 0x2bf   : > { %3566 = vrot.lane.b32.xlu0 %v9536_v33, %s7301_s23  ;;  %3643 = vrot.lane.b32.xlu1 %v9536_v33, %s7298_s28  ;;  %v3477_v1 = vrot.slane %v3440_v30, 1  ;;  %v9544_v6 = vsel %vm565_vm0, 0.0, %v3415_v11  ;;  %v3476_v39 = vrot.slane %v9536_v33, 1  ;;  %v3526_v16 = vrot.slane %v3440_v30, 2 }
 0x2c0   : > { %v3525_v50 = vrot.slane %v9536_v33, 2  ;;  %v3439_v2 = vsel %vm565_vm0, %v3415_v11, 0.0  ;;  %v3473_v8 = vrot.slane %v9544_v6, 1  ;;  %v3522_v57 = vrot.slane %v9544_v6, 2 }
 0x2c1   : > { %v3478_v61 = vsel %vm3457_vm2, %v3476_v39, %v3477_v1  ;;  %v3474_v15 = vrot.slane %v3439_v2, 1  ;;  %v3523_v36 = vrot.slane %v3439_v2, 2  ;;  %v3707_v2 = vsel %vm3152_vm10, %v11375_v29, %v9418_v63 }
 0x2c2   : > { %v3527_v22 = vsel %vm3506_vm5, %v3525_v50, %v3526_v16 }
 0x2c3   : > { %3641 = vrot.lane.b32.xlu0 %v9544_v6, %s7298_s28  ;;  %3564 = vrot.lane.b32.xlu1 %v9544_v6, %s7301_s23  ;;  %v3475_v26 = vsel %vm3457_vm2, %v3473_v8, %v3474_v15  ;;  %v3524_v54 = vsel %vm3506_vm5, %v3522_v57, %v3523_v36  ;;  %v3715_v8 = vsel %vm11305_vm13, %v3707_v2, %v9430_v53 }
 0x2c7   : > { %3494 = vrot.lane.b32.xlu0 %v3478_v61, %s11306_s26  ;;  %3594 = vrot.lane.b32.xlu1 %v3478_v61, %s11301_s17 }
 0x2c9   : > { %v3410_v4 = vpop.permute.xlu1 %3409 }
 0x2ca   : > { %v3418_v32 = vrot.slane %v3410_v4, 7  ;;  %v3408_v31 = vpop.permute.xlu0 %3407 }
 0x2cb   : > { %3621 = vrot.lane.b32.xlu0 %v3527_v22, %s11299_s20  ;;  %3543 = vrot.lane.b32.xlu1 %v3527_v22, %s11380_s16  ;;  %v3417_v41 = vrot.slane %v3408_v31, 7 }
 0x2cc   : > { %v3442_v7 = vsel %vm565_vm0, %v3418_v32, 0.0  ;;  %v3434_v49 = vsel %vm565_vm0, 0.0, %v3418_v32 }
 0x2cd   : > { %v3609_v14 = vrot.slane %v3442_v7, 2  ;;  %v9578_v62 = vsel %vm565_vm0, 0.0, %v3417_v41  ;;  %v3608_v34 = vrot.slane %v3434_v49, 2  ;;  %v3441_v25 = vsel %vm565_vm0, %v3417_v41, 0.0 }
 0x2ce   : > { %v3480_v37 = vrot.slane %v3441_v25, 1  ;;  %v3479_v17 = vrot.slane %v9578_v62, 1  ;;  %v3582_v20 = vrot.slane %v3442_v7, 1  ;;  %v3529_v18 = vrot.slane %v3441_v25, 2 }
 0x2cf   : > { %3492 = vrot.lane.b32.xlu0 %v3475_v26, %s11306_s26  ;;  %3667 = vrot.lane.b32.xlu1 %v3478_v61, %s11381_s29  ;;  %v3610_v43 = vsel %vm3506_vm5, %v3608_v34, %v3609_v14  ;;  %v3581_v56 = vrot.slane %v3434_v49, 1  ;;  %v3528_v30 = vrot.slane %v9578_v62, 2 }
 0x2d0   : > { %v3481_v11 = vsel %vm3457_vm2, %v3479_v17, %v3480_v37 }
 0x2d1   : > { %v3583_v39 = vsel %vm3457_vm2, %v3581_v56, %v3582_v20  ;;  %v3530_v16 = vsel %vm3506_vm5, %v3528_v30, %v3529_v18 }
 0x2d3   : > { %3541 = vrot.lane.b32.xlu0 %v3524_v54, %s11380_s16  ;;  %3691 = vrot.lane.b32.xlu1 %v3527_v22, %s11382_s24  ;;  %v9567_v3 = vpop.permute.xlu1 %3558 }
 0x2d4   : > { %v3557_v42 = vpop.permute.xlu0 %3556 }
 0x2d5   : > { %v3723_v36 = vsel %vm11304_vm4, %v3715_v8, %v3557_v42 }
 0x2d7   : > { %3665 = vrot.lane.b32.xlu0 %v3475_v26, %s11381_s29  ;;  %3592 = vrot.lane.b32.xlu1 %v3475_v26, %s11301_s17  ;;  %v3636_v45 = vpop.permute.xlu1 %3635 }
 0x2d8   : > { %v9590_v24 = vpop.permute.xlu0 %3586 }
 0x2db   : > { %3619 = vrot.lane.b32.xlu0 %v3524_v54, %s11299_s20  ;;  %3689 = vrot.lane.b32.xlu1 %v3524_v54, %s11382_s24  ;;  %v9575_v35 = vpop.permute.xlu1 %3486 }
 0x2dc   : > { %v3614_v61 = vpop.permute.xlu0 %3613  ;;  %v3709_v56 = vsel %vm3152_vm10, %v9433_v55, %v9575_v35 }
 0x2df   : > { %3570 = vrot.lane.b32.xlu0 %v3434_v49, %s7301_s23  ;;  %3568 = vrot.lane.b32.xlu1 %v9578_v62, %s7301_s23  ;;  %v9584_v40 = vpop.permute.xlu1 %3535  ;;  %s11384_s23 = smov 3  }
 0x2e0   : > { %v3585_v15 = vpop.permute.xlu0 %3584 }
 0x2e1   : > { %v3732_v26 = vsel %vm3731_vm1, %v3723_v36, %v3585_v15 }
 0x2e3   : > { %3647 = vrot.lane.b32.xlu0 %v3434_v49, %s7298_s28  ;;  %3625 = vrot.lane.b32.xlu1 %v3610_v43, %s11299_s20  ;;  %v3660_v0 = vpop.permute.xlu1 %3659 }
 0x2e7   : > { %3645 = vrot.lane.b32.xlu0 %v9578_v62, %s7298_s28  ;;  %3596 = vrot.lane.b32.xlu1 %v3481_v11, %s11301_s17  ;;  %v3684_v1 = vpop.permute.xlu1 %3683  ;;  %s11383_s28 = smov 21  }
 0x2eb   : > { %3598 = vrot.lane.b32.xlu0 %v3583_v39, %s11301_s17  ;;  %3623 = vrot.lane.b32.xlu1 %v3530_v16, %s11299_s20  ;;  %v3485_v50 = vpop.permute.xlu1 %3484  ;;  %s7305_s17 = smov 122   ;;  %s11312_s20 = smov 84  }
 0x2ec   : > { %v3708_v42 = vsel %vm3152_vm10, %v9439_v52, %v3485_v50 }
 0x2ef   : > { %3671 = vrot.lane.b32.xlu0 %v3583_v39, %s11381_s29  ;;  %3697 = vrot.lane.b32.xlu1 %v9362_v46, %s11382_s24  ;;  %v3534_v22 = vpop.permute.xlu1 %3533 }
 0x2f0   : > { %v3716_v20 = vsel %vm11305_vm13, %v3708_v42, %v3534_v22 }
 0x2f3   : > { %3496 = vrot.lane.b32.xlu0 %v3481_v11, %s11306_s26  ;;  %4161 = vrot.lane.b32.xlu1 %v11375_v29, %s11380_s16  ;;  %v3612_v57 = vpop.permute.xlu1 %3611 }
 0x2f4   : > { %v3741_v63 = vsel %vm11303_vm6, %v3732_v26, %v3612_v57 }
 0x2f5   : > { %v3563_v4 = vpop.permute.xlu0 %3562  ;;  %v3750_v53 = vsel %vm3749_vm3, %v3741_v63, %v3636_v45 }
 0x2f6   : > { %v3759_v54 = vsel %vm3758_vm15, %v3750_v53, %v3660_v0  ;;  %v3724_v0 = vsel %vm11304_vm4, %v3716_v20, %v9567_v3 }
 0x2f7   : > { %3545 = vrot.lane.b32.xlu0 %v3530_v16, %s11380_s16  ;;  %4185 = vrot.lane.b32.xlu1 %v9303_v28, %s11383_s28  ;;  %v3640_v32 = vpop.permute.xlu1 %3639  ;;  %v3768_v41 = vsel %vm3767_vm14, %v3759_v54, %v3684_v1  ;;  %v3733_v52 = vsel %vm3731_vm1, %v3724_v0, %v9590_v24 }
 0x2f8   : > { %6908 = vmatprep.mubr.msk.f32.mxu0 %vm3782_vm12, %v3768_v41  ;;  %v3742_v3 = vsel %vm11303_vm6, %v3733_v52, %v3614_v61 }
 0x2f9   : > { %v3638_v31 = vpop.permute.xlu0 %3637 }
 0x2fa   : > { %v3751_v50 = vsel %vm3749_vm3, %v3742_v3, %v3638_v31 }
 0x2fb   : > { %3669 = vrot.lane.b32.xlu0 %v3481_v11, %s11381_s29  ;;  %v3561_v7 = vpop.permute.xlu1 %3560  ;;  %s11387_s29 = smov 12  }
 0x2fd   : > { %v3491_v49 = vpop.permute.xlu0 %3490 }
 0x2fe   : > { %v3711_v20 = vsel %vm3152_vm10, %v9464_v5, %v3491_v49 }
 0x2ff   : > { %3693 = vrot.lane.b32.xlu0 %v3530_v16, %s11382_s24  ;;  %v3591_v14 = vpop.permute.xlu1 %3590 }
 0x301   : > { %v3618_v45 = vpop.permute.xlu0 %3617 }
 0x303   : > { %3695 = vrot.lane.b32.xlu0 %v3610_v43, %s11382_s24  ;;  %v3540_v34 = vpop.permute.xlu1 %3539 }
 0x305   : > { %v3489_v25 = vpop.permute.xlu0 %3488 }
 0x306   : > { %v3710_v54 = vsel %vm3152_vm10, %v9483_v44, %v3489_v25 }
 0x307   : > { %3998 = vrot.lane.b32.xlu0 %v9303_v28, %s11384_s23  ;;  %v3664_v37 = vpop.permute.xlu1 %3663  ;;  %v3717_v28 = vsel %vm11305_vm13, %v3709_v56, %v9584_v40 }
 0x308   : > { %v3725_v11 = vsel %vm11304_vm4, %v3717_v28, %v3561_v7 }
 0x309   : > { %v3538_v17 = vpop.permute.xlu0 %3537 }
 0x30a   : > { %v3718_v41 = vsel %vm11305_vm13, %v3710_v54, %v3538_v17 }
 0x30b   : > { %4043 = vrot.lane.b32.xlu0 %v9362_v46, %s11385_s25  ;;  %v3688_v18 = vpop.permute.xlu1 %3687  ;;  %v3726_v7 = vsel %vm11304_vm4, %v3718_v41, %v3563_v4 }
 0x30c   : > { %v3735_v0 = vsel %vm3731_vm1, %v3726_v7, %v3591_v14 }
 0x30d   : > { %v3662_v43 = vpop.permute.xlu0 %3661  ;;  %v3744_v44 = vsel %vm11303_vm6, %v3735_v0, %v3618_v45 }
 0x30e   : > { %v3760_v35 = vsel %vm3758_vm15, %v3751_v50, %v3662_v43 }
 0x30f   : > { %v3589_v30 = vpop.permute.xlu1 %3588 }
 0x310   : > { %v3734_v39 = vsel %vm3731_vm1, %v3725_v11, %v3589_v30 }
 0x311   : > { %v3616_v1 = vpop.permute.xlu0 %3615 }
 0x312   : > { %v3743_v16 = vsel %vm11303_vm6, %v3734_v39, %v3616_v1 }
 0x313   : > { %v3752_v55 = vsel %vm3749_vm3, %v3743_v16, %v3640_v32  ;;  %v3686_v40 = vpop.permute.xlu1 %3685 }
 0x314   : > { %v3761_v2 = vsel %vm3758_vm15, %v3752_v55, %v3664_v37  ;;  %v3769_v24 = vsel %vm3767_vm14, %v3760_v35, %v3686_v40 }
 0x315   : > { %v3770_v15 = vsel %vm3767_vm14, %v3761_v2, %v3688_v18  ;;  %6909 = vmatmul.mubr.msk.f32.vlgmr.msra.gmra.mrb[8].mxu0 %vm3782_vm12, %v3769_v24  ;;  %v3719_v18 = vsel %vm11305_vm13, %v3711_v20, %v3540_v34 }
 0x316   : > { %6911 = vmatprep.mubr.msk.f32.mxu0 %vm3782_vm12, %v3770_v15 }
 0x331   : > { %v3567_v61 = vpop.permute.xlu0 %3566  ;;  %v3644_v22 = vpop.permute.xlu1 %3643 }
 0x335   : > { %v3642_v8 = vpop.permute.xlu0 %3641  ;;  %v3565_v36 = vpop.permute.xlu1 %3564 }
 0x336   : > { %v3727_v28 = vsel %vm11304_vm4, %v3719_v18, %v3565_v36  ;;  %v3753_v17 = vsel %vm3749_vm3, %v3744_v44, %v3642_v8 }
 0x339   : > { %v3495_v26 = vpop.permute.xlu0 %3494  ;;  %v3595_v57 = vpop.permute.xlu1 %3594 }
 0x33a   : > { %v3713_v54 = vsel %vm3152_vm10, %v9536_v33, %v3495_v26 }
 0x33d   : > { %v3622_v63 = vpop.permute.xlu0 %3621  ;;  %v3544_v53 = vpop.permute.xlu1 %3543 }
 0x33e   : > { %v3721_v41 = vsel %vm11305_vm13, %v3713_v54, %v3544_v53 }
 0x341   : > { %v3493_v32 = vpop.permute.xlu0 %3492  ;;  %v3668_v31 = vpop.permute.xlu1 %3667 }
 0x342   : > { %v3712_v35 = vsel %vm3152_vm10, %v9544_v6, %v3493_v32 }
 0x345   : > { %v3542_v42 = vpop.permute.xlu0 %3541  ;;  %v3692_v37 = vpop.permute.xlu1 %3691 }
 0x346   : > { %v3720_v2 = vsel %vm11305_vm13, %v3712_v35, %v3542_v42 }
 0x347   : > { %v3728_v15 = vsel %vm11304_vm4, %v3720_v2, %v3567_v61 }
 0x348   : > { %v3737_v6 = vsel %vm3731_vm1, %v3728_v15, %v3595_v57 }
 0x349   : > { %v3666_v43 = vpop.permute.xlu0 %3665  ;;  %v3593_v56 = vpop.permute.xlu1 %3592  ;;  %v3746_v20 = vsel %vm11303_vm6, %v3737_v6, %v3622_v63 }
 0x34a   : > { %v3736_v25 = vsel %vm3731_vm1, %v3727_v28, %v3593_v56  ;;  %v3762_v4 = vsel %vm3758_vm15, %v3753_v17, %v3666_v43 }
 0x34d   : > { %v3620_v52 = vpop.permute.xlu0 %3619  ;;  %v3690_v11 = vpop.permute.xlu1 %3689 }
 0x34e   : > { %v3745_v5 = vsel %vm11303_vm6, %v3736_v25, %v3620_v52  ;;  %v3771_v49 = vsel %vm3767_vm14, %v3762_v4, %v3690_v11 }
 0x34f   : > { %v3754_v14 = vsel %vm3749_vm3, %v3745_v5, %v3644_v22  ;;  %6912 = vmatmul.mubr.msk.f32.gmra.mrb[10].mxu0 %vm3782_vm12, %v3771_v49 }
 0x350   : > { %v3763_v34 = vsel %vm3758_vm15, %v3754_v14, %v3668_v31 }
 0x351   : > { %v3571_v30 = vpop.permute.xlu0 %3570  ;;  %v3772_v45 = vsel %vm3767_vm14, %v3763_v34, %v3692_v37  ;;  %v3569_v3 = vpop.permute.xlu1 %3568 }
 0x352   : > { %6914 = vmatprep.mubr.msk.f32.mxu0 %vm3782_vm12, %v3772_v45  ;;  %v3729_v61 = vsel %vm11304_vm4, %v3721_v41, %v3569_v3 }
 0x355   : > { %v3648_v1 = vpop.permute.xlu0 %3647  ;;  %v3626_v50 = vpop.permute.xlu1 %3625 }
 0x359   : > { %v3646_v39 = vpop.permute.xlu0 %3645  ;;  %v3597_v24 = vpop.permute.xlu1 %3596 }
 0x35a   : > { %v3755_v26 = vsel %vm3749_vm3, %v3746_v20, %v3646_v39 }
 0x35d   : > { %v3599_v16 = vpop.permute.xlu0 %3598  ;;  %v3624_v32 = vpop.permute.xlu1 %3623 }
 0x361   : > { %v3672_v55 = vpop.permute.xlu0 %3671  ;;  %v3698_v56 = vpop.permute.xlu1 %3697 }
 0x365   : > { %v3497_v40 = vpop.permute.xlu0 %3496 }
 0x366   : > { %v3714_v22 = vsel %vm3152_vm10, %v9578_v62, %v3497_v40  ;;  %v3738_v62 = vsel %vm3731_vm1, %v3729_v61, %v3597_v24 }
 0x367   : > { %v3747_v33 = vsel %vm11303_vm6, %v3738_v62, %v3624_v32 }
 0x368   : > { %v3756_v18 = vsel %vm3749_vm3, %v3747_v33, %v3648_v1 }
 0x369   : > { %v3546_v8 = vpop.permute.xlu0 %3545  ;;  %v3765_v28 = vsel %vm3758_vm15, %v3756_v18, %v3672_v55 }
 0x36a   : > { %v3722_v36 = vsel %vm11305_vm13, %v3714_v22, %v3546_v8 }
 0x36b   : > { %v3730_v31 = vsel %vm11304_vm4, %v3722_v36, %v3571_v30 }
 0x36c   : > { %v3739_v7 = vsel %vm3731_vm1, %v3730_v31, %v3599_v16 }
 0x36d   : > { %v3670_v42 = vpop.permute.xlu0 %3669  ;;  %v3748_v37 = vsel %vm11303_vm6, %v3739_v7, %v3626_v50 }
 0x36e   : > { %v3764_v53 = vsel %vm3758_vm15, %v3755_v26, %v3670_v42  ;;  %v3757_v57 = vsel %vm3749_vm3, %v3748_v37, %v9416_v23  ;;  %v9708_v23 = vld [vmem:[%s11386_s4] ss:$0 sm:$0xff]  ;;  %s11497_s4 = smov 90  }
 0x36f   : > { %v3766_v63 = vsel %vm3758_vm15, %v3757_v57, %v9428_v19 }
 0x370   : > { %v3775_v17 = vsel %vm3767_vm14, %v3766_v63, %v3698_v56 }
 0x371   : > { %v3694_v0 = vpop.permute.xlu0 %3693 }
 0x372   : > { %v3773_v43 = vsel %vm3767_vm14, %v3764_v53, %v3694_v0 }
 0x373   : > { %6915 = vmatmul.mubr.msk.f32.gmra.mrb[12].mxu0 %vm3782_vm12, %v3773_v43 }
 0x375   : > { %v3696_v44 = vpop.permute.xlu0 %3695 }
 0x376   : > { %v3774_v25 = vsel %vm3767_vm14, %v3765_v28, %v3696_v44  ;;  %v3382_v28 = vld [vmem:[%s11390_s5] sm:$0xff]  ;;  %v3383_v44 = vld [vmem:[%s11390_s5 + $0x8] sm:$0xff] }
 0x377   : > { %6917 = vmatprep.mubr.msk.f32.mxu0 %vm3782_vm12, %v3774_v25  ;;  %v7012_v25 = vpack.c.bf16 %v3383_v44, %v3382_v28 }
 0x378   : > { %6918 = vmatmul.mubr.msk.f32.gmra.mrb[14].mxu0 %vm3782_vm12, %v3775_v17  ;;  %vm11392_vm12 = vcmask 171008  }
 0x379   : > { %7013 = vmatprep.subr.bf16.mxu0 %v7012_v25  ;;  %v3999_v44 = vpop.permute.xlu0 %3998  ;;  %vm11395_vm15 = vmmov %vm11392_vm12 }
 0x37a   : > { %7015 = vmatpush3.bf16.msra.mxu0 %v7012_v25 }
 0x3e8   : > { %v6910_v4 = vpop.f32.mrb[8].mxu0 }
 0x3e9   : > { %v3882_v52 = vadd.f32 %v6910_v4, %v9708_v23  ;;  %v3876_v19 = vpop.f32.mrb[9].mxu0 }
 0x3ea   : > { %v3877_v11 = vadd.f32 %v9708_v23, %v3876_v19  ;;  %v3384_v19 = vld [vmem:[%s11390_s5 + $0x10] sm:$0xff] }
 0x3eb   : > { %v9713_v5 = vadd.f32 %v3882_v52, %v9392_v27 }
 0x3ec   : > { %v9716_v49 = vadd.f32 %v3877_v11, %v9396_v60  ;;  %v3385_v11 = vld [vmem:[%s11390_s5 + $0x18] sm:$0x7] }
 0x3ed   : > { %v3932_v14 = vrot.slane %v9713_v5, 7 }
 0x3ee   : > { %v3931_v34 = vrot.slane %v9716_v49, 7 }
 0x3ef   : > { %v3956_v30 = vsel %vm565_vm0, %v3932_v14, 0.0  ;;  %v9722_v45 = vsel %vm565_vm0, 0.0, %v3932_v14  ;;  %v7016_v14 = vpack.c.bf16 %v3385_v11, %v3384_v19  ;;  %v4044_v19 = vpop.permute.xlu0 %4043 }
 0x3f0   : > { %v3981_v1 = vrot.slane %v3956_v30, 1  ;;  %4070 = vrot.lane.b32.xlu1 %v9722_v45, %s11306_s26  ;;  %v9727_v39 = vsel %vm565_vm0, 0.0, %v3931_v34  ;;  %v3980_v3 = vrot.slane %v9722_v45, 1  ;;  %v4026_v16 = vrot.slane %v3956_v30, 2 }
 0x3f1   : > { %4068 = vrot.lane.b32.xlu0 %v9727_v39, %s11306_s26  ;;  %v4025_v55 = vrot.slane %v9722_v45, 2  ;;  %v3955_v35 = vsel %vm565_vm0, %v3931_v34, 0.0  ;;  %v3977_v2 = vrot.slane %v9727_v39, 1  ;;  %v4022_v8 = vrot.slane %v9727_v39, 2  ;;  %7018 = vmatprep.subr.msk.bf16.mxu0 %vm9287_vm7, %v7016_v14 }
 0x3f2   : > { %v3982_v50 = vsel %vm3457_vm2, %v3980_v3, %v3981_v1  ;;  %v3978_v40 = vrot.slane %v3955_v35, 1  ;;  %v4023_v22 = vrot.slane %v3955_v35, 2  ;;  %7021 = vmatpush3.bf16.msk.msra.mxu0 %vm9287_vm7, %v7016_v14 }
 0x3f3   : > { %v4027_v24 = vsel %vm3506_vm5, %v4025_v55, %v4026_v16 }
 0x3f4   : > { %4147 = vrot.lane.b32.xlu1 %v9722_v45, %s11380_s16  ;;  %v3979_v15 = vsel %vm3457_vm2, %v3977_v2, %v3978_v40  ;;  %v4024_v36 = vsel %vm3506_vm5, %v4022_v8, %v4023_v22 }
 0x3f5   : > { %4098 = vrot.lane.b32.xlu0 %v3982_v50, %s11387_s29 }
 0x3f8   : > { %4002 = vrot.lane.b32.xlu1 %v3982_v50, %s11384_s23 }
 0x3f9   : > { %4125 = vrot.lane.b32.xlu0 %v4027_v24, %s11388_s22 }
 0x3fc   : > { %4047 = vrot.lane.b32.xlu1 %v4027_v24, %s11385_s25 }
 0x3fd   : > { %4096 = vrot.lane.b32.xlu0 %v3979_v15, %s11387_s29 }
 0x400   : > { %4171 = vrot.lane.b32.xlu1 %v3982_v50, %s11383_s28 }
 0x404   : > { %4195 = vrot.lane.b32.xlu1 %v4027_v24, %s11389_s21 }
 0x408   : > { %4000 = vrot.lane.b32.xlu1 %v3979_v15, %s11384_s23 }
 0x40c   : > { %4045 = vrot.lane.b32.xlu1 %v4024_v36, %s11385_s25 }
 0x410   : > { %4123 = vrot.lane.b32.xlu1 %v4024_v36, %s11388_s22 }
 0x422   : > { %v6913_v54 = vpop.f32.mrb[10].mxu0 }
 0x423   : > { %v3892_v31 = vadd.f32 %v6913_v54, %v9708_v23  ;;  %v3886_v41 = vpop.f32.mrb[11].mxu0 }
 0x424   : > { %v3887_v6 = vadd.f32 %v9708_v23, %v3886_v41 }
 0x425   : > { %v9755_v32 = vadd.f32 %v3892_v31, %v9400_v9 }
 0x426   : > { %v9758_v7 = vadd.f32 %v3887_v6, %v9404_v59 }
 0x427   : > { %v3934_v61 = vrot.slane %v9755_v32, 7 }
 0x428   : > { %v3933_v42 = vrot.slane %v9758_v7, 7 }
 0x429   : > { %v9763_v62 = vsel %vm565_vm0, 0.0, %v3934_v61  ;;  %v3958_v37 = vsel %vm565_vm0, %v3934_v61, 0.0 }
 0x42a   : > { %4074 = vrot.lane.b32.xlu0 %v9763_v62, %s11306_s26  ;;  %4151 = vrot.lane.b32.xlu1 %v9763_v62, %s11380_s16  ;;  %v3987_v20 = vrot.slane %v3958_v37, 1  ;;  %v9771_v33 = vsel %vm565_vm0, 0.0, %v3933_v42  ;;  %v3986_v26 = vrot.slane %v9763_v62, 1  ;;  %v4032_v53 = vrot.slane %v3958_v37, 2 }
 0x42b   : > { %v4031_v0 = vrot.slane %v9763_v62, 2  ;;  %v3957_v18 = vsel %vm565_vm0, %v3933_v42, 0.0  ;;  %v3983_v63 = vrot.slane %v9771_v33, 1  ;;  %v4028_v52 = vrot.slane %v9771_v33, 2  ;;  %v9845_v42 = vpop.permute.xlu1 %4161 }
 0x42c   : > { %v3988_v57 = vsel %vm3457_vm2, %v3986_v26, %v3987_v20  ;;  %v3984_v43 = vrot.slane %v3957_v18, 1  ;;  %v4029_v17 = vrot.slane %v3957_v18, 2 }
 0x42d   : > { %v4033_v56 = vsel %vm3506_vm5, %v4031_v0, %v4032_v53 }
 0x42e   : > { %4149 = vrot.lane.b32.xlu0 %v9771_v33, %s11380_s16  ;;  %4072 = vrot.lane.b32.xlu1 %v9771_v33, %s11306_s26  ;;  %v3985_v4 = vsel %vm3457_vm2, %v3983_v63, %v3984_v43  ;;  %v4030_v34 = vsel %vm3506_vm5, %v4028_v52, %v4029_v17 }
 0x42f   : > { %v9856_v43 = vpop.permute.xlu1 %4185 }
 0x432   : > { %4006 = vrot.lane.b32.xlu0 %v3988_v57, %s11384_s23  ;;  %4102 = vrot.lane.b32.xlu1 %v3988_v57, %s11387_s29 }
 0x436   : > { %4129 = vrot.lane.b32.xlu0 %v4033_v56, %s11388_s22  ;;  %4051 = vrot.lane.b32.xlu1 %v4033_v56, %s11385_s25 }
 0x43a   : > { %4004 = vrot.lane.b32.xlu0 %v3985_v4, %s11384_s23  ;;  %4175 = vrot.lane.b32.xlu1 %v3988_v57, %s11383_s28 }
 0x43e   : > { %4049 = vrot.lane.b32.xlu0 %v4030_v34, %s11385_s25  ;;  %4199 = vrot.lane.b32.xlu1 %v4033_v56, %s11389_s21 }
 0x442   : > { %4173 = vrot.lane.b32.xlu0 %v3985_v4, %s11383_s28  ;;  %4100 = vrot.lane.b32.xlu1 %v3985_v4, %s11387_s29 }
 0x446   : > { %v6916_v30 = vpop.f32.mrb[12].mxu0  ;;  %4127 = vrot.lane.b32.xlu0 %v4030_v34, %s11388_s22  ;;  %4197 = vrot.lane.b32.xlu1 %v4030_v34, %s11389_s21 }
 0x447   : > { %v3902_v1 = vadd.f32 %v6916_v30, %v9708_v23  ;;  %v3896_v3 = vpop.f32.mrb[13].mxu0 }
 0x448   : > { %v3897_v16 = vadd.f32 %v9708_v23, %v3896_v3 }
 0x449   : > { %v9817_v50 = vadd.f32 %v3902_v1, %v9408_v38 }
 0x44a   : > { %v9820_v55 = vadd.f32 %v3897_v16, %v9412_v51 }
 0x44b   : > { %v3936_v35 = vrot.slane %v9817_v50, 7  ;;  %v6919_v40 = vpop.f32.mrb[14].mxu0 }
 0x44c   : > { %v3906_v2 = vpop.f32.mrb[15].mxu0  ;;  %v3935_v24 = vrot.slane %v9820_v55, 7  ;;  %v3912_v18 = vadd.f32 %v6919_v40, %v9708_v23 }
 0x44d   : > { %v9825_v15 = vsel %vm565_vm0, 0.0, %v3936_v35  ;;  %v3960_v22 = vsel %vm565_vm0, %v3936_v35, 0.0  ;;  %v3907_v56 = vadd.f32 %v9708_v23, %v3906_v2 }
 0x44e   : > { %4078 = vrot.lane.b32.xlu0 %v9825_v15, %s11306_s26  ;;  %4155 = vrot.lane.b32.xlu1 %v9825_v15, %s11380_s16  ;;  %v3993_v8 = vrot.slane %v3960_v22, 1  ;;  %v9833_v36 = vsel %vm565_vm0, 0.0, %v3935_v24  ;;  %v3992_v54 = vrot.slane %v9825_v15, 1  ;;  %v4038_v31 = vrot.slane %v3960_v22, 2 }
 0x44f   : > { %v4037_v6 = vrot.slane %v9825_v15, 2  ;;  %v3959_v61 = vsel %vm565_vm0, %v3935_v24, 0.0  ;;  %v3989_v26 = vrot.slane %v9833_v36, 1  ;;  %v4034_v0 = vrot.slane %v9833_v36, 2 }
 0x450   : > { %v3994_v41 = vsel %vm3457_vm2, %v3992_v54, %v3993_v8  ;;  %v3990_v37 = vrot.slane %v3959_v61, 1  ;;  %v4035_v53 = vrot.slane %v3959_v61, 2  ;;  %v9861_v28 = vadd.f32 %v3912_v18, %v9420_v48 }
 0x451   : > { %v4039_v20 = vsel %vm3506_vm5, %v4037_v6, %v4038_v31  ;;  %v9868_v17 = vadd.f32 %v3907_v56, %v9424_v47  ;;  %v4219_v18 = vsel %vm3134_vm8, %v11375_v29, %v3999_v44 }
 0x452   : > { %4153 = vrot.lane.b32.xlu0 %v9833_v36, %s11380_s16  ;;  %4076 = vrot.lane.b32.xlu1 %v9833_v36, %s11306_s26  ;;  %v3991_v57 = vsel %vm3457_vm2, %v3989_v26, %v3990_v37  ;;  %v4036_v63 = vsel %vm3506_vm5, %v4034_v0, %v4035_v53  ;;  %v3938_v4 = vrot.slane %v9861_v28, 7  ;;  %v4227_v56 = vsel %vm3143_vm9, %v4219_v18, %v4044_v19 }
 0x453   : > { %v3937_v52 = vrot.slane %v9868_v17, 7 }
 0x454   : > { %v3962_v11 = vsel %vm565_vm0, %v3938_v4, 0.0  ;;  %v3954_v14 = vsel %vm565_vm0, 0.0, %v3938_v4 }
 0x455   : > { %v4121_v30 = vrot.slane %v3962_v11, 2  ;;  %v4120_v1 = vrot.slane %v3954_v14, 2  ;;  %v9881_v3 = vsel %vm565_vm0, 0.0, %v3937_v52  ;;  %v3961_v16 = vsel %vm565_vm0, %v3937_v52, 0.0 }
 0x456   : > { %4010 = vrot.lane.b32.xlu0 %v3994_v41, %s11384_s23  ;;  %4106 = vrot.lane.b32.xlu1 %v3994_v41, %s11387_s29  ;;  %v3996_v2 = vrot.slane %v3961_v16, 1  ;;  %v3995_v22 = vrot.slane %v9881_v3, 1  ;;  %v4094_v8 = vrot.slane %v3962_v11, 1  ;;  %v4041_v31 = vrot.slane %v3961_v16, 2 }
 0x457   : > { %v4122_v24 = vsel %vm3506_vm5, %v4120_v1, %v4121_v30  ;;  %v4040_v61 = vrot.slane %v9881_v3, 2 }
 0x458   : > { %v3997_v6 = vsel %vm3457_vm2, %v3995_v22, %v3996_v2 }
 0x459   : > { %v4042_v53 = vsel %vm3506_vm5, %v4040_v61, %v4041_v31  ;;  %vm11393_vm5 = vcmask 195584  }
 0x45a   : > { %4133 = vrot.lane.b32.xlu0 %v4039_v20, %s11388_s22  ;;  %4055 = vrot.lane.b32.xlu1 %v4039_v20, %s11385_s25 }
 0x45e   : > { %4008 = vrot.lane.b32.xlu0 %v3991_v57, %s11384_s23  ;;  %4179 = vrot.lane.b32.xlu1 %v3994_v41, %s11383_s28  ;;  %v4093_v41 = vrot.slane %v3954_v14, 1 }
 0x460   : > { %v4095_v26 = vsel %vm3457_vm2, %v4093_v41, %v4094_v8  ;;  %vm11391_vm2 = vcmask 121856  }
 0x461   : > { %vm11394_vm3 = vmmov %vm11391_vm2 }
 0x462   : > { %4053 = vrot.lane.b32.xlu0 %v4036_v63, %s11385_s25  ;;  %4203 = vrot.lane.b32.xlu1 %v4039_v20, %s11389_s21  ;;  %v9865_v25 = vpop.permute.xlu1 %4070 }
 0x463   : > { %v4069_v35 = vpop.permute.xlu0 %4068 }
 0x464   : > { %v4235_v52 = vsel %vm3152_vm10, %v4227_v56, %v4069_v35 }
 0x466   : > { %4177 = vrot.lane.b32.xlu0 %v3991_v57, %s11383_s28  ;;  %4104 = vrot.lane.b32.xlu1 %v3991_v57, %s11387_s29  ;;  %v4148_v23 = vpop.permute.xlu1 %4147 }
 0x467   : > { %v4099_v37 = vpop.permute.xlu0 %4098 }
 0x46a   : > { %4131 = vrot.lane.b32.xlu0 %v4036_v63, %s11388_s22  ;;  %4201 = vrot.lane.b32.xlu1 %v4036_v63, %s11389_s21  ;;  %v9878_v34 = vpop.permute.xlu1 %4002 }
 0x46b   : > { %v4126_v57 = vpop.permute.xlu0 %4125 }
 0x46e   : > { %4082 = vrot.lane.b32.xlu0 %v3954_v14, %s11306_s26  ;;  %4080 = vrot.lane.b32.xlu1 %v9881_v3, %s11306_s26  ;;  %v4048_v40 = vpop.permute.xlu1 %4047  ;;  %s11310_s26 = smov 60  }
 0x46f   : > { %v4097_v4 = vpop.permute.xlu0 %4096 }
 0x470   : > { %v4243_v11 = vsel %vm3161_vm11, %v4235_v52, %v4097_v4 }
 0x472   : > { %4159 = vrot.lane.b32.xlu0 %v3954_v14, %s11380_s16  ;;  %4137 = vrot.lane.b32.xlu1 %v4122_v24, %s11388_s22  ;;  %v4172_v54 = vpop.permute.xlu1 %4171 }
 0x476   : > { %4157 = vrot.lane.b32.xlu0 %v9881_v3, %s11380_s16  ;;  %4108 = vrot.lane.b32.xlu1 %v3997_v6, %s11387_s29  ;;  %v4196_v20 = vpop.permute.xlu1 %4195 }
 0x47a   : > { %4110 = vrot.lane.b32.xlu0 %v4095_v26, %s11387_s29  ;;  %4135 = vrot.lane.b32.xlu1 %v4042_v53, %s11388_s22  ;;  %v4001_v0 = vpop.permute.xlu1 %4000 }
 0x47e   : > { %4183 = vrot.lane.b32.xlu0 %v4095_v26, %s11383_s28  ;;  %4209 = vrot.lane.b32.xlu1 %v9362_v46, %s11389_s21  ;;  %v4046_v63 = vpop.permute.xlu1 %4045 }
 0x482   : > { %4012 = vrot.lane.b32.xlu0 %v3997_v6, %s11384_s23  ;;  %v4124_v14 = vpop.permute.xlu1 %4123 }
 0x483   : > { %v4251_v30 = vsel %vm11391_vm2, %v4243_v11, %v4124_v14 }
 0x484   : > { %v4259_v44 = vsel %vm11305_vm13, %v4251_v30, %v4148_v23 }
 0x485   : > { %v4267_v1 = vsel %vm11392_vm12, %v4259_v44, %v4172_v54  ;;  %v4220_v54 = vsel %vm3134_vm8, %v9727_v39, %v4001_v0  ;;  %vm11396_vm12 = vmmov %vm11393_vm5 }
 0x486   : > { %4057 = vrot.lane.b32.xlu0 %v4042_v53, %s11385_s25  ;;  %v4275_v46 = vsel %vm11393_vm5, %v4267_v1, %v4196_v20  ;;  %v4228_v20 = vsel %vm3143_vm9, %v4220_v54, %v4046_v63  ;;  %vm11397_vm5 = vmmov %vm11395_vm15 }
 0x487   : > { %6928 = vmatprep.mubr.msk.f32.mxu0 %vm11304_vm4, %v4275_v46  ;;  %vm11398_vm6 = vmmov %vm11396_vm12 }
 0x48a   : > { %4181 = vrot.lane.b32.xlu0 %v3997_v6, %s11383_s28  ;;  %v4236_v6 = vsel %vm3152_vm10, %v4228_v20, %v9865_v25 }
 0x48b   : > { %v4244_v18 = vsel %vm3161_vm11, %v4236_v6, %v4099_v37 }
 0x48c   : > { %v4252_v0 = vsel %vm11394_vm3, %v4244_v18, %v4126_v57  ;;  %vm11400_vm3 = vmmov %vm11397_vm5 }
 0x48e   : > { %4205 = vrot.lane.b32.xlu0 %v4042_v53, %s11389_s21  ;;  %v4221_v53 = vsel %vm3134_vm8, %v9722_v45, %v9878_v34 }
 0x48f   : > { %v4229_v56 = vsel %vm3143_vm9, %v4221_v53, %v4048_v40 }
 0x492   : > { %4207 = vrot.lane.b32.xlu0 %v4122_v24, %s11389_s21 }
 0x49c   : > { %v4075_v19 = vpop.permute.xlu0 %4074  ;;  %v4152_v16 = vpop.permute.xlu1 %4151 }
 0x4a0   : > { %v4150_v35 = vpop.permute.xlu0 %4149  ;;  %v4073_v2 = vpop.permute.xlu1 %4072 }
 0x4a1   : > { %v4237_v39 = vsel %vm3152_vm10, %v4229_v56, %v4073_v2  ;;  %v4260_v25 = vsel %vm11305_vm13, %v4252_v0, %v4150_v35 }
 0x4a4   : > { %v4007_v22 = vpop.permute.xlu0 %4006  ;;  %v4103_v8 = vpop.permute.xlu1 %4102 }
 0x4a8   : > { %v4130_v31 = vpop.permute.xlu0 %4129  ;;  %v4052_v23 = vpop.permute.xlu1 %4051 }
 0x4ac   : > { %v4005_v41 = vpop.permute.xlu0 %4004  ;;  %v4176_v61 = vpop.permute.xlu1 %4175 }
 0x4ad   : > { %v4222_v53 = vsel %vm3134_vm8, %v9771_v33, %v4005_v41 }
 0x4b0   : > { %v4050_v26 = vpop.permute.xlu0 %4049  ;;  %v4200_v24 = vpop.permute.xlu1 %4199 }
 0x4b1   : > { %v4230_v56 = vsel %vm3143_vm9, %v4222_v53, %v4050_v26 }
 0x4b4   : > { %v4174_v4 = vpop.permute.xlu0 %4173  ;;  %v4101_v52 = vpop.permute.xlu1 %4100 }
 0x4b5   : > { %v4245_v63 = vsel %vm3161_vm11, %v4237_v39, %v4101_v52  ;;  %v4268_v11 = vsel %vm11395_vm15, %v4260_v25, %v4174_v4  ;;  %v4223_v52 = vsel %vm3134_vm8, %v9763_v62, %v4007_v22  ;;  %vm11401_vm15 = vmmov %vm11391_vm2 }
 0x4b6   : > { %v4231_v0 = vsel %vm3143_vm9, %v4223_v52, %v4052_v23 }
 0x4b8   : > { %v4128_v14 = vpop.permute.xlu0 %4127  ;;  %v4198_v30 = vpop.permute.xlu1 %4197 }
 0x4b9   : > { %v4253_v45 = vsel %vm11391_vm2, %v4245_v63, %v4128_v14  ;;  %v4276_v34 = vsel %vm11396_vm12, %v4268_v11, %v4198_v30 }
 0x4ba   : > { %v4261_v40 = vsel %vm11305_vm13, %v4253_v45, %v4152_v16  ;;  %6929 = vmatmul.mubr.msk.f32.vlgmr.msra.gmra.mrb[16].mxu0 %vm11304_vm4, %v4276_v34 }
 0x4bb   : > { %v4269_v37 = vsel %vm11397_vm5, %v4261_v40, %v4176_v61  ;;  %v4238_v61 = vsel %vm3152_vm10, %v4230_v56, %v4075_v19 }
 0x4bc   : > { %v4277_v57 = vsel %vm11398_vm6, %v4269_v37, %v4200_v24  ;;  %v4246_v39 = vsel %vm3161_vm11, %v4238_v61, %v4103_v8  ;;  %vm11399_vm6 = vmmov %vm11391_vm2 }
 0x4bd   : > { %6931 = vmatprep.mubr.msk.f32.mxu0 %vm11304_vm4, %v4277_v57  ;;  %v4254_v33 = vsel %vm11399_vm6, %v4246_v39, %v4130_v31  ;;  %vm11402_vm2 = vmmov %vm11396_vm12 }
 0x4be   : > { %vm11403_vm12 = vmmov %vm11400_vm3 }
 0x4bf   : > { %vm11404_vm5 = vmmov %vm11402_vm2 }
 0x4c0   : > { %v4079_v44 = vpop.permute.xlu0 %4078  ;;  %v4156_v1 = vpop.permute.xlu1 %4155 }
 0x4c4   : > { %v4154_v46 = vpop.permute.xlu0 %4153  ;;  %v4077_v35 = vpop.permute.xlu1 %4076 }
 0x4c5   : > { %v4239_v11 = vsel %vm3152_vm10, %v4231_v0, %v4077_v35  ;;  %v4262_v26 = vsel %vm11305_vm13, %v4254_v33, %v4154_v46 }
 0x4c8   : > { %v4011_v2 = vpop.permute.xlu0 %4010  ;;  %v4107_v54 = vpop.permute.xlu1 %4106 }
 0x4c9   : > { %v4225_v0 = vsel %vm3134_vm8, %v9825_v15, %v4011_v2 }
 0x4cc   : > { %v4134_v20 = vpop.permute.xlu0 %4133  ;;  %v4056_v6 = vpop.permute.xlu1 %4055 }
 0x4d0   : > { %v4009_v16 = vpop.permute.xlu0 %4008  ;;  %v4180_v18 = vpop.permute.xlu1 %4179 }
 0x4d1   : > { %v4224_v53 = vsel %vm3134_vm8, %v9833_v36, %v4009_v16 }
 0x4d4   : > { %v4054_v24 = vpop.permute.xlu0 %4053  ;;  %v4204_v4 = vpop.permute.xlu1 %4203 }
 0x4d8   : > { %v4178_v63 = vpop.permute.xlu0 %4177  ;;  %v4105_v25 = vpop.permute.xlu1 %4104 }
 0x4d9   : > { %v4247_v41 = vsel %vm3161_vm11, %v4239_v11, %v4105_v25  ;;  %v4270_v19 = vsel %vm11400_vm3, %v4262_v26, %v4178_v63  ;;  %v4233_v25 = vsel %vm3143_vm9, %v4225_v0, %v4056_v6  ;;  %vm11405_vm3 = vmmov %vm11399_vm6 }
 0x4dc   : > { %v4132_v14 = vpop.permute.xlu0 %4131  ;;  %v4202_v30 = vpop.permute.xlu1 %4201 }
 0x4dd   : > { %v4255_v62 = vsel %vm11401_vm15, %v4247_v41, %v4132_v14  ;;  %v4278_v22 = vsel %vm11402_vm2, %v4270_v19, %v4202_v30  ;;  %vm11406_vm15 = vmmov %vm11405_vm3 }
 0x4de   : > { %v4263_v8 = vsel %vm11305_vm13, %v4255_v62, %v4156_v1  ;;  %6932 = vmatmul.mubr.msk.f32.gmra.mrb[18].mxu0 %vm11304_vm4, %v4278_v22  ;;  %v4232_v1 = vsel %vm3143_vm9, %v4224_v53, %v4054_v24  ;;  %vm11407_vm2 = vmmov %vm11403_vm12 }
 0x4df   : > { %v4271_v23 = vsel %vm11403_vm12, %v4263_v8, %v4180_v18  ;;  %v4240_v18 = vsel %vm3152_vm10, %v4232_v1, %v4079_v44  ;;  %vm11408_vm12 = vmmov %vm11404_vm5 }
 0x4e0   : > { %v4083_v45 = vpop.permute.xlu0 %4082  ;;  %v4279_v31 = vsel %vm11404_vm5, %v4271_v23, %v4204_v4  ;;  %v4081_v37 = vpop.permute.xlu1 %4080  ;;  %v4248_v36 = vsel %vm3161_vm11, %v4240_v18, %v4107_v54  ;;  %vm11409_vm5 = vmmov %vm11407_vm2 }
 0x4e1   : > { %6934 = vmatprep.mubr.msk.f32.mxu0 %vm11304_vm4, %v4279_v31  ;;  %v4241_v44 = vsel %vm3152_vm10, %v4233_v25, %v4081_v37  ;;  %v4256_v41 = vsel %vm11405_vm3, %v4248_v36, %v4134_v20  ;;  %vm11411_vm3 = vmmov %vm11408_vm12 }
 0x4e4   : > { %v4160_v34 = vpop.permute.xlu0 %4159  ;;  %v4138_v46 = vpop.permute.xlu1 %4137 }
 0x4e8   : > { %v4158_v40 = vpop.permute.xlu0 %4157  ;;  %v4109_v61 = vpop.permute.xlu1 %4108 }
 0x4e9   : > { %v4264_v2 = vsel %vm11305_vm13, %v4256_v41, %v4158_v40 }
 0x4ec   : > { %v4111_v57 = vpop.permute.xlu0 %4110  ;;  %v4136_v16 = vpop.permute.xlu1 %4135 }
 0x4f0   : > { %v4184_v35 = vpop.permute.xlu0 %4183  ;;  %v4210_v30 = vpop.permute.xlu1 %4209 }
 0x4f4   : > { %v4013_v56 = vpop.permute.xlu0 %4012 }
 0x4f5   : > { %v4226_v4 = vsel %vm3134_vm8, %v9881_v3, %v4013_v56  ;;  %v4249_v3 = vsel %vm3161_vm11, %v4241_v44, %v4109_v61 }
 0x4f6   : > { %v4257_v15 = vsel %vm11406_vm15, %v4249_v3, %v4136_v16  ;;  %vm11412_vm15 = vmmov %vm11411_vm3 }
 0x4f7   : > { %v4265_v19 = vsel %vm11305_vm13, %v4257_v15, %v4160_v34 }
 0x4f8   : > { %v4058_v52 = vpop.permute.xlu0 %4057 }
 0x4f9   : > { %v4234_v39 = vsel %vm3143_vm9, %v4226_v4, %v4058_v52 }
 0x4fa   : > { %v4242_v63 = vsel %vm3152_vm10, %v4234_v39, %v4083_v45 }
 0x4fb   : > { %v4250_v24 = vsel %vm3161_vm11, %v4242_v63, %v4111_v57 }
 0x4fc   : > { %v4182_v11 = vpop.permute.xlu0 %4181  ;;  %v4258_v33 = vsel %vm11399_vm6, %v4250_v24, %v4138_v46  ;;  %vm11410_vm6 = vmmov %vm11407_vm2 }
 0x4fd   : > { %v4272_v6 = vsel %vm11407_vm2, %v4264_v2, %v4182_v11  ;;  %v4266_v54 = vsel %vm11305_vm13, %v4258_v33, %v9845_v42  ;;  %v4273_v62 = vsel %vm11410_vm6, %v4265_v19, %v4184_v35  ;;  %v6680_v42 = vld [vmem:[%s11413_s6] ss:$0 sm:$0xff]  ;;  %vm11417_vm2 = vcmask 1043459   ;;  %s11325_s6 = smov 59  }
 0x4fe   : > { %v4274_v20 = vsel %vm11409_vm5, %v4266_v54, %v9856_v43  ;;  %vm11420_vm6 = vcmask 1042434  }
 0x4ff   : > { %v4282_v23 = vsel %vm11412_vm15, %v4274_v20, %v4210_v30 }
 0x500   : > { %v4206_v26 = vpop.permute.xlu0 %4205 }
 0x501   : > { %v4280_v14 = vsel %vm11408_vm12, %v4272_v6, %v4206_v26  ;;  %vm11418_vm12 = vcmask 1041409  }
 0x502   : > { %6935 = vmatmul.mubr.msk.f32.gmra.mrb[20].mxu0 %vm11304_vm4, %v4280_v14  ;;  %vm11419_vm5 = vmmov %vm11418_vm12 }
 0x503   : > { %vm11422_vm15 = vmmov %vm11419_vm5 }
 0x504   : > { %v4208_v22 = vpop.permute.xlu0 %4207 }
 0x505   : > { %v4281_v8 = vsel %vm11411_vm3, %v4273_v62, %v4208_v22  ;;  %vm11421_vm3 = vmmov %vm11420_vm6 }
 0x506   : > { %6937 = vmatprep.mubr.msk.f32.mxu0 %vm11304_vm4, %v4281_v8  ;;  %vm11424_vm13 = vmmov %vm11421_vm3 }
 0x507   : > { %6938 = vmatmul.mubr.msk.f32.gmra.mrb[22].mxu0 %vm11304_vm4, %v4282_v23  ;;  %vm11423_vm4 = vmmov %vm11417_vm2 }
 0x58d   : > { %v6930_v45 = vpop.f32.mrb[16].mxu0 }
 0x58e   : > { %v4388_v31 = vadd.f32 %v6930_v45, %v6680_v42  ;;  %v4382_v34 = vpop.f32.mrb[17].mxu0 }
 0x58f   : > { %v4383_v40 = vadd.f32 %v6680_v42, %v4382_v34 }
 0x590   : > { %4503 = vrot.lane.b32.xlu1 %v4388_v31, %s11384_s23  ;;  %v4422_v53 = vmul.f32 0.5, %v4388_v31 }
 0x591   : > { %4501 = vrot.lane.b32.xlu0 %v4383_v40, %s11384_s23  ;;  %v4421_v35 = vmul.f32 0.5, %v4383_v40 }
 0x593   : > { %7231 = vtanh.f32 %v4421_v35  ;;  %v11416_v35 = vld [vmem:[#allocation13_spill] sm:$0xff] }
 0x594   : > { %7233 = vtanh.f32 %v4422_v53 }
 0x59d   : > { %v7232_v61 = vpop.eup %7231 }
 0x59e   : > { %v7234_v18 = vpop.eup %7233  ;;  %v4437_v4 = vmul.f32 1.442695, %v7232_v61 }
 0x59f   : > { %v4439_v39 = vmul.f32 1.442695, %v7234_v18 }
 0x5b1   : > { %v6933_v43 = vpop.f32.mrb[18].mxu0 }
 0x5b2   : > { %v4398_v37 = vadd.f32 %v6933_v43, %v6680_v42  ;;  %v4392_v57 = vpop.f32.mrb[19].mxu0 }
 0x5b3   : > { %v4393_v46 = vadd.f32 %v6680_v42, %v4392_v57  ;;  %v11414_v57 = vld [vmem:[#allocation14_spill] sm:$0xff] }
 0x5b4   : > { %4507 = vrot.lane.b32.xlu0 %v4398_v37, %s11384_s23  ;;  %v4424_v56 = vmul.f32 0.5, %v4398_v37 }
 0x5b5   : > { %4505 = vrot.lane.b32.xlu1 %v4393_v46, %s11384_s23  ;;  %v4423_v1 = vmul.f32 0.5, %v4393_v46  ;;  %v11415_v46 = vld [vmem:[#allocation15_spill] sm:$0xff] }
 0x5b6   : > { %7235 = vtanh.f32 %v4424_v56  ;;  %v4946_v53 = vsel %vm11417_vm2, %v11416_v35, %v11415_v46 }
 0x5b7   : > { %7237 = vtanh.f32 %v4423_v1 }
 0x5b8   : > { %7239 = vpow2.f32 %v4437_v4 }
 0x5b9   : > { %7241 = vpow2.f32 %v4439_v39 }
 0x5c0   : > { %v7236_v52 = vpop.eup %7235 }
 0x5c1   : > { %v7238_v0 = vpop.eup %7237  ;;  %v4443_v63 = vmul.f32 1.442695, %v7236_v52 }
 0x5c2   : > { %v4441_v25 = vmul.f32 1.442695, %v7238_v0  ;;  %v7240_v41 = vpop.eup %7239 }
 0x5c3   : > { %7243 = vpow2.f32 %v4443_v63  ;;  %v7242_v6 = vpop.eup %7241 }
 0x5c4   : > { %7245 = vpow2.f32 %v4441_v25 }
 0x5cd   : > { %v7244_v14 = vpop.eup %7243 }
 0x5ce   : > { %v7246_v30 = vpop.eup %7245 }
 0x5d5   : > { %v6936_v36 = vpop.f32.mrb[20].mxu0 }
 0x5d6   : > { %v4408_v16 = vadd.f32 %v6936_v36, %v6680_v42  ;;  %v4402_v24 = vpop.f32.mrb[21].mxu0 }
 0x5d7   : > { %v4403_v44 = vadd.f32 %v6680_v42, %v4402_v24 }
 0x5d8   : > { %v4426_v11 = vmul.f32 0.5, %v4408_v16  ;;  %4511 = vrot.lane.b32.xlu1 %v4408_v16, %s11384_s23 }
 0x5d9   : > { %v4425_v3 = vmul.f32 0.5, %v4403_v44  ;;  %4509 = vrot.lane.b32.xlu0 %v4403_v44, %s11384_s23 }
 0x5da   : > { %7247 = vtanh.f32 %v4426_v11  ;;  %v6939_v33 = vpop.f32.mrb[22].mxu0 }
 0x5db   : > { %7249 = vtanh.f32 %v4425_v3  ;;  %v4418_v15 = vadd.f32 %v6939_v33, %v6680_v42  ;;  %v4412_v2 = vpop.f32.mrb[23].mxu0 }
 0x5dc   : > { %v4413_v54 = vadd.f32 %v6680_v42, %v4412_v2  ;;  %4461 = vrot.lane.b32.xlu1 %v7240_v41, %s7305_s17 }
 0x5dd   : > { %v4428_v26 = vmul.f32 0.5, %v4418_v15  ;;  %4463 = vrot.lane.b32.xlu0 %v7242_v6, %s7305_s17 }
 0x5de   : > { %v4427_v19 = vmul.f32 0.5, %v4413_v54 }
 0x5df   : > { %7251 = vtanh.f32 %v4428_v26 }
 0x5e0   : > { %7253 = vtanh.f32 %v4427_v19  ;;  %4467 = vrot.lane.b32.xlu1 %v7244_v14, %s7305_s17 }
 0x5e1   : > { %4465 = vrot.lane.b32.xlu0 %v7246_v30, %s7305_s17 }
 0x5e4   : > { %v7248_v20 = vpop.eup %7247 }
 0x5e5   : > { %v7250_v62 = vpop.eup %7249  ;;  %v4447_v22 = vmul.f32 1.442695, %v7248_v20 }
 0x5e6   : > { %v4445_v8 = vmul.f32 1.442695, %v7250_v62 }
 0x5e7   : > { %7255 = vpow2.f32 %v4447_v22 }
 0x5e8   : > { %7257 = vpow2.f32 %v4445_v8 }
 0x5e9   : > { %v7252_v23 = vpop.eup %7251 }
 0x5ea   : > { %v7254_v45 = vpop.eup %7253  ;;  %v4451_v42 = vmul.f32 1.442695, %v7252_v23 }
 0x5eb   : > { %v4449_v31 = vmul.f32 1.442695, %v7254_v45 }
 0x5ed   : > { %7259 = vpow2.f32 %v4449_v31 }
 0x5ee   : > { %7261 = vpow2.f32 %v4451_v42 }
 0x5f1   : > { %v7256_v34 = vpop.eup %7255 }
 0x5f2   : > { %4471 = vrot.lane.b32.xlu0 %v7256_v34, %s7305_s17  ;;  %v7258_v40 = vpop.eup %7257 }
 0x5f6   : > { %4469 = vrot.lane.b32.xlu0 %v7258_v40, %s7305_s17 }
 0x5f7   : > { %v7260_v43 = vpop.eup %7259 }
 0x5f8   : > { %4473 = vrot.lane.b32.xlu1 %v7260_v43, %s7305_s17  ;;  %v7262_v37 = vpop.eup %7261 }
 0x5fa   : > { %4475 = vrot.lane.b32.xlu0 %v7262_v37, %s7305_s17  ;;  %s11308_s17 = smov 96  }
 0x5fc   : > { %4513 = vrot.lane.b32.xlu1 %v4413_v54, %s11384_s23 }
 0x5fe   : > { %4922 = vrot.lane.b32.xlu0 %v11414_v57, %s11387_s29 }
 0x600   : > { %4515 = vrot.lane.b32.xlu1 %v4418_v15, %s11384_s23 }
 0x602   : > { %4956 = vrot.lane.b32.xlu0 %v4946_v53, %s11389_s21  ;;  %v4504_v56 = vpop.permute.xlu1 %4503 }
 0x603   : > { %v4502_v1 = vpop.permute.xlu0 %4501 }
 0x626   : > { %v4508_v18 = vpop.permute.xlu0 %4507 }
 0x627   : > { %v4506_v61 = vpop.permute.xlu1 %4505 }
 0x64a   : > { %v10009_v4 = vpop.permute.xlu1 %4511 }
 0x64b   : > { %v10011_v52 = vpop.permute.xlu0 %4509 }
 0x64e   : > { %v4462_v39 = vpop.permute.xlu1 %4461 }
 0x64f   : > { %v4485_v0 = vmul.f32 %v4462_v39, %v9396_v60  ;;  %v4464_v63 = vpop.permute.xlu0 %4463 }
 0x650   : > { %v4486_v25 = vmul.f32 %v4464_v63, %v9392_v27 }
 0x651   : > { %v4525_v36 = vadd.f32 %v4502_v1, %v4485_v0 }
 0x652   : > { %v4526_v16 = vadd.f32 %v4504_v56, %v4486_v25  ;;  %v4468_v24 = vpop.permute.xlu1 %4467 }
 0x653   : > { %v10017_v44 = vsel %vm3134_vm8, %v9716_v49, %v4525_v36  ;;  %v4488_v11 = vmul.f32 %v4468_v24, %v9400_v9  ;;  %v4466_v3 = vpop.permute.xlu0 %4465 }
 0x654   : > { %v4564_v33 = vrot.slane %v10017_v44, 7  ;;  %v4534_v41 = vsel %vm3134_vm8, %v9713_v5, %v4526_v16  ;;  %v4487_v60 = vmul.f32 %v4466_v3, %v9404_v59 }
 0x655   : > { %v4565_v15 = vrot.slane %v4534_v41, 7  ;;  %v4528_v2 = vadd.f32 %v4508_v18, %v4488_v11 }
 0x656   : > { %v4580_v27 = vsel %vm565_vm0, 0.0, %v4564_v33  ;;  %v4527_v6 = vadd.f32 %v4506_v61, %v4487_v60 }
 0x657   : > { %v4708_v54 = vcombine.high %v4580_v27, %v4580_v27  ;;  %v4581_v49 = vsel %vm565_vm0, 0.0, %v4565_v15  ;;  %v4589_v9 = vsel %vm565_vm0, %v4565_v15, 0.0  ;;  %v10032_v5 = vsel %vm3134_vm8, %v9755_v32, %v4528_v2 }
 0x658   : > { %v4604_v26 = vcombine.high %v4581_v49, %v4581_v49  ;;  %v4611_v19 = vrot.slane %v4581_v49, %v7420_v10  ;;  %v10036_v59 = vsel %vm3134_vm8, %v9758_v7, %v4527_v6  ;;  %v4567_v14 = vrot.slane %v10032_v5, 7 }
 0x659   : > { %v4566_v30 = vrot.slane %v10036_v59, 7  ;;  %v10041_v20 = vrot.slane %v4580_v27, %v7420_v10  ;;  %v10044_v62 = vrot.slane %v4708_v54, %v7420_v10  ;;  %v4627_v45 = vrot.slane %v4589_v9, %v7420_v10 }
 0x65a   : > { %v4618_v22 = vrot.slane %v4604_v26, %v7420_v10  ;;  %v4619_v8 = vcombine.high %v4611_v19, %v4611_v19  ;;  %v4583_v32 = vsel %vm565_vm0, 0.0, %v4567_v14  ;;  %v4868_v23 = vrot.slane %v4611_v19, %v7428_v13 }
 0x65b   : > { %v4582_v7 = vsel %vm565_vm0, 0.0, %v4566_v30  ;;  %v4628_v42 = vcombine.high %v4583_v32, %v4583_v32  ;;  %v4635_v31 = vrot.slane %v4583_v32, %v7420_v10  ;;  %v4807_v40 = vrot.slane %v4611_v19, %v7426_v12 }
 0x65c   : > { %v4732_v34 = vcombine.high %v4582_v7, %v4582_v7  ;;  %v4620_v43 = vcombine.high %v4618_v22, %v4618_v22  ;;  %v4872_v37 = vrot.slane %v4619_v8, %v7428_v13  ;;  %v4876_v57 = vrot.slane %v4618_v22, %v7428_v13 }
 0x65d   : > { %v4811_v46 = vrot.slane %v4619_v8, %v7426_v12  ;;  %v4642_v35 = vrot.slane %v4628_v42, %v7420_v10  ;;  %v10062_v53 = vrot.slane %v4582_v7, %v7420_v10  ;;  %v4815_v1 = vrot.slane %v4618_v22, %v7426_v12 }
 0x65e   : > { %v10065_v56 = vrot.slane %v4732_v34, %v7420_v10  ;;  %v4880_v61 = vrot.slane %v4620_v43, %v7428_v13  ;;  %v4913_v18 = vsel %vm11418_vm12, %v4872_v37, %v4868_v23  ;;  %v4819_v39 = vrot.slane %v4620_v43, %v7426_v12  ;;  %vm11427_vm12 = vmmov %vm11421_vm3 }
 0x65f   : > { %v4852_v0 = vsel %vm11419_vm5, %v4811_v46, %v4807_v40  ;;  %v4914_v63 = vsel %vm11420_vm6, %v4876_v57, %v4913_v18  ;;  %v4947_v36 = vsel %vm11422_vm15, %v4815_v1, %v4811_v46  ;;  %v4643_v16 = vcombine.high %v4635_v31, %v4635_v31 }
 0x660   : > { %v4853_v25 = vsel %vm11421_vm3, %v4815_v1, %v4852_v0  ;;  %v4915_v24 = vsel %vm11417_vm2, %v4880_v61, %v4914_v63  ;;  %v4948_v3 = vsel %vm11424_vm13, %v4819_v39, %v4947_v36  ;;  %v4644_v41 = vcombine.high %v4642_v35, %v4642_v35  ;;  %vm11425_vm13 = vmmov %vm11417_vm2 }
 0x661   : > { %v10077_v11 = vsel %vm11423_vm4, %v4819_v39, %v4853_v25  ;;  %4924 = vrot.lane.b32.xlu1 %v4915_v24, %s11387_s29  ;;  %v4937_v60 = vrot.slane %v4627_v45, %v7426_v12  ;;  %v4823_v15 = vrot.slane %v4635_v31, %v7426_v12  ;;  %v10086_v2 = vrot.slane %v4643_v16, %v7426_v12  ;;  %vm11426_vm4 = vmmov %vm11419_vm5 }
 0x662   : > { %5203 = vrot.lane.b32.xlu0 %v10077_v11, %s11382_s24  ;;  %v10089_v27 = vrot.slane %v4642_v35, %v7426_v12  ;;  %v10092_v6 = vrot.slane %v4644_v41, %v7426_v12  ;;  %v4723_v54 = vcombine.high %v10041_v20, %v10041_v20  ;;  %v4724_v49 = vcombine.high %v10044_v62, %v10044_v62  ;;  %vm11428_vm5 = vmmov %vm11417_vm2 }
 0x663   : > { %v4949_v26 = vsel %vm11425_vm13, %v4937_v60, %v4948_v3  ;;  %v4855_v19 = vsel %vm11426_vm4, %v10086_v2, %v4823_v15  ;;  %v4971_v22 = vrot.slane %v10041_v20, %v7426_v12  ;;  %v4979_v8 = vrot.slane %v10044_v62, %v7426_v12  ;;  %vm11429_vm6 = vmmov %vm11426_vm4 }
 0x664   : > { %v4472_v9 = vpop.permute.xlu0 %4471  ;;  %v4856_v7 = vsel %vm11427_vm12, %v10089_v27, %v4855_v19  ;;  %v4975_v23 = vrot.slane %v4723_v54, %v7426_v12  ;;  %v4983_v45 = vrot.slane %v4724_v49, %v7426_v12  ;;  %v4884_v42 = vrot.slane %v4635_v31, %v7428_v13  ;;  %vm11430_vm15 = vmmov %vm11426_vm4 }
 0x665   : > { %v4490_v32 = vmul.f32 %v4472_v9, %v9408_v38  ;;  %4958 = vrot.lane.b32.xlu1 %v4949_v26, %s11389_s21  ;;  %v4888_v34 = vrot.slane %v4643_v16, %v7428_v13  ;;  %v4892_v40 = vrot.slane %v4642_v35, %v7428_v13  ;;  %v10118_v43 = vsel %vm11428_vm5, %v10092_v6, %v4856_v7  ;;  %vm11432_vm13 = vmmov %vm11421_vm3 }
 0x666   : > { %5234 = vrot.lane.b32.xlu0 %v4915_v24, %s11312_s20  ;;  %v5032_v37 = vsel %vm11429_vm6, %v4975_v23, %v4971_v22  ;;  %v5059_v57 = vrot.slane %v10041_v20, %v7428_v13  ;;  %v5063_v61 = vrot.slane %v4723_v54, %v7428_v13  ;;  %v5067_v35 = vrot.slane %v10044_v62, %v7428_v13  ;;  %vm11433_vm12 = vmmov %vm11421_vm3 }
 0x667   : > { %v4530_v38 = vadd.f32 %v10009_v4, %v4490_v32  ;;  %v5033_v1 = vsel %vm11421_vm3, %v4979_v8, %v5032_v37  ;;  %v4916_v31 = vsel %vm11430_vm15, %v4888_v34, %v4884_v42  ;;  %v4896_v20 = vrot.slane %v4644_v41, %v7428_v13  ;;  %vm11434_vm5 = vmmov %vm11417_vm2 }
 0x668   : > { %v4470_v46 = vpop.permute.xlu0 %4469  ;;  %v5034_v39 = vsel %vm11417_vm2, %v4983_v45, %v5033_v1  ;;  %v4917_v63 = vsel %vm11432_vm13, %v4892_v40, %v4916_v31  ;;  %v5071_v62 = vrot.slane %v4724_v49, %v7428_v13  ;;  %v5120_v25 = vsel %vm11426_vm4, %v5063_v61, %v5059_v57  ;;  %vm11435_vm6 = vmmov %vm11417_vm2 }
 0x669   : > { %v10130_v4 = vsel %vm3134_vm8, %v9817_v50, %v4530_v38  ;;  %v4489_v18 = vmul.f32 %v4470_v46, %v9412_v51  ;;  %5205 = vrot.lane.b32.xlu1 %v10118_v43, %s11382_s24  ;;  %v5121_v51 = vsel %vm11433_vm12, %v5067_v35, %v5120_v25  ;;  %v4747_v36 = vcombine.high %v10062_v53, %v10062_v53  ;;  %vm11436_vm3 = vmmov %vm11426_vm4 }
 0x66a   : > { %5044 = vrot.lane.b32.xlu0 %v5034_v39, %s11431_s27  ;;  %v4474_v0 = vpop.permute.xlu1 %4473  ;;  %v4588_v16 = vsel %vm565_vm0, %v4564_v33, 0.0  ;;  %v4569_v24 = vrot.slane %v10130_v4, 7  ;;  %v4748_v3 = vcombine.high %v10065_v56, %v10065_v56  ;;  %v4918_v60 = vsel %vm11434_vm5, %v4896_v20, %v4917_v63  ;;  %vm11437_vm15 = vmmov %vm11436_vm3 }
 0x66b   : > { %v4529_v50 = vadd.f32 %v10011_v52, %v4489_v18  ;;  %v4491_v52 = vmul.f32 %v4474_v0, %v9424_v47  ;;  %v5122_v15 = vsel %vm11435_vm6, %v5071_v62, %v5121_v51  ;;  %v4987_v33 = vrot.slane %v10062_v53, %v7426_v12  ;;  %vm11438_vm2 = vmmov %vm11433_vm12 }
 0x66c   : > { %v4476_v54 = vpop.permute.xlu0 %4475  ;;  %v4991_v49 = vrot.slane %v4747_v36, %v7426_v12  ;;  %v4999_v9 = vrot.slane %v4748_v3, %v7426_v12  ;;  %v4731_v19 = vrot.slane %v4588_v16, %v7420_v10  ;;  %v4585_v22 = vsel %vm565_vm0, 0.0, %v4569_v24  ;;  %vm11439_vm13 = vmmov %vm11434_vm5 }
 0x66d   : > { %v10153_v41 = vsel %vm3134_vm8, %v9820_v55, %v4529_v50  ;;  %5236 = vrot.lane.b32.xlu1 %v4918_v60, %s11312_s20  ;;  %v4995_v55 = vrot.slane %v10065_v56, %v7426_v12  ;;  %v5160_v42 = vsel %vm11437_vm15, %v4979_v8, %v4975_v23  ;;  %v4492_v34 = vmul.f32 %v4476_v54, %v9420_v48  ;;  %vm11440_vm4 = vmmov %vm11438_vm2 }
 0x66e   : > { %5132 = vrot.lane.b32.xlu0 %v5122_v15, %s11313_s30  ;;  %v4514_v44 = vpop.permute.xlu1 %4513  ;;  %v4568_v32 = vrot.slane %v10153_v41, 7  ;;  %v5035_v7 = vsel %vm11436_vm3, %v4991_v49, %v4987_v33  ;;  %v4591_v37 = vsel %vm565_vm0, %v4567_v14, 0.0  ;;  %v5161_v8 = vsel %vm11440_vm4, %v4983_v45, %v5160_v42  ;;  %vm11441_vm12 = vmmov %vm11434_vm5 }
 0x66f   : > { %v4531_v47 = vadd.f32 %v4514_v44, %v4491_v52  ;;  %v5036_v38 = vsel %vm11438_vm2, %v4995_v55, %v5035_v7  ;;  %v4652_v23 = vcombine.high %v4585_v22, %v4585_v22  ;;  %v5079_v1 = vrot.slane %v4747_v36, %v7428_v13  ;;  %vm11442_vm5 = vmmov %vm11436_vm3 }
 0x670   : > { %v5037_v57 = vsel %vm11439_vm13, %v4999_v9, %v5036_v38  ;;  %v4584_v5 = vsel %vm565_vm0, 0.0, %v4568_v32  ;;  %v5083_v45 = vrot.slane %v10065_v56, %v7428_v13  ;;  %v4590_v31 = vsel %vm565_vm0, %v4566_v30, 0.0  ;;  %vm11443_vm6 = vmmov %vm11438_vm2 }
 0x671   : > { %v10174_v40 = vsel %vm3134_vm8, %v9868_v17, %v4531_v47  ;;  %5046 = vrot.lane.b32.xlu1 %v5037_v57, %s11431_s27  ;;  %v5147_v17 = vrot.slane %v4731_v19, %v7426_v12  ;;  %v4659_v61 = vrot.slane %v4585_v22, %v7420_v10  ;;  %v4651_v59 = vrot.slane %v4591_v37, %v7420_v10  ;;  %vm11444_vm15 = vmmov %vm11441_vm12 }
 0x672   : > { %5253 = vrot.lane.b32.xlu0 %v4949_v26, %s11308_s17  ;;  %v4516_v46 = vpop.permute.xlu1 %4515  ;;  %v4570_v14 = vrot.slane %v10174_v40, 7  ;;  %v5075_v26 = vrot.slane %v10062_v53, %v7428_v13  ;;  %v5087_v53 = vrot.slane %v4748_v3, %v7428_v13  ;;  %v4666_v30 = vrot.slane %v4652_v23, %v7420_v10  ;;  %vm11445_vm13 = vmmov %vm11436_vm3 }
 0x673   : > { %v4532_v48 = vadd.f32 %v4516_v46, %v4492_v34  ;;  %v5162_v4 = vsel %vm11441_vm12, %v5147_v17, %v5161_v8  ;;  %v4756_v39 = vcombine.high %v4584_v5, %v4584_v5  ;;  %v4593_v25 = vsel %vm565_vm0, %v4569_v24, 0.0  ;;  %vm11446_vm4 = vmmov %vm11441_vm12 }
 0x674   : > { %v5123_v56 = vsel %vm11442_vm5, %v5079_v1, %v5075_v26  ;;  %v10216_v0 = vsel %vm565_vm0, 0.0, %v4570_v14  ;;  %v10224_v50 = vrot.slane %v4584_v5, %v7420_v10  ;;  %v4755_v36 = vrot.slane %v4590_v31, %v7420_v10  ;;  %vm11447_vm12 = vmmov %vm11438_vm2 }
 0x675   : > { %v10200_v35 = vsel %vm3134_vm8, %v9861_v28, %v4532_v48  ;;  %v5124_v20 = vsel %vm11443_vm6, %v5083_v45, %v5123_v56  ;;  %v4950_v28 = vsel %vm11436_vm3, %v10089_v27, %v10086_v2  ;;  %v4941_v2 = vrot.slane %v4651_v59, %v7426_v12  ;;  %vm11448_vm5 = vmmov %vm11436_vm3 }
 0x676   : > { %v4571_v18 = vrot.slane %v10200_v35, 7  ;;  %5172 = vrot.lane.b32.xlu0 %v5162_v4, %s11310_s26  ;;  %v5125_v62 = vsel %vm11444_vm15, %v5087_v53, %v5124_v20  ;;  %v4951_v27 = vsel %vm11438_vm2, %v10092_v6, %v4950_v28  ;;  %v5163_v16 = vsel %vm11445_vm13, %v4995_v55, %v4991_v49  ;;  %vm11449_vm6 = vmmov %vm11436_vm3  ;;  %v4549_v35 = vld [vmem:[%s11469_s7 + $0x40] sm:$0xff] }
 0x677   : > { %5134 = vrot.lane.b32.xlu1 %v5125_v62, %s11313_s30  ;;  %v4667_v3 = vcombine.high %v4659_v61, %v4659_v61  ;;  %v10234_v24 = vrot.slane %v4756_v39, %v7420_v10  ;;  %v10238_v52 = vrot.slane %v10216_v0, %v7420_v10  ;;  %v4668_v54 = vcombine.high %v4666_v30, %v4666_v30  ;;  %vm11450_vm3 = vmmov %vm11446_vm4 }
 0x678   : > { %v4587_v63 = vsel %vm565_vm0, 0.0, %v4571_v18  ;;  %v4952_v6 = vsel %vm11446_vm4, %v4941_v2, %v4951_v27  ;;  %v4908_v33 = vrot.slane %v4666_v30, %v7428_v13  ;;  %v5164_v49 = vsel %vm11447_vm12, %v4999_v9, %v5163_v16  ;;  %vm11451_vm15 = vmmov %vm11438_vm2 }
 0x679   : > { %v4676_v51 = vcombine.high %v4587_v63, %v4587_v63  ;;  %v10241_v15 = vrot.slane %v4587_v63, %v7420_v10  ;;  %v4904_v44 = vrot.slane %v4667_v3, %v7428_v13  ;;  %v4839_v55 = vrot.slane %v4659_v61, %v7426_v12  ;;  %vm11452_vm13 = vmmov %vm11450_vm3 }
 0x67a   : > { %4926 = vrot.lane.b32.xlu0 %v4918_v60, %s11387_s29  ;;  %v4900_v60 = vrot.slane %v4659_v61, %v7428_v13  ;;  %v4843_v47 = vrot.slane %v4667_v3, %v7426_v12  ;;  %v4847_v19 = vrot.slane %v4666_v30, %v7426_v12  ;;  %v5151_v7 = vrot.slane %v4755_v36, %v7426_v12  ;;  %vm11453_vm4 = vmmov %vm11448_vm5 }
 0x67b   : > { %5255 = vrot.lane.b32.xlu1 %v4952_v6, %s11308_s17  ;;  %v10253_v22 = vrot.slane %v4676_v51, %v7420_v10  ;;  %v4851_v34 = vrot.slane %v4668_v54, %v7426_v12  ;;  %v4691_v9 = vcombine.high %v10241_v15, %v10241_v15  ;;  %v4912_v38 = vrot.slane %v4668_v54, %v7428_v13  ;;  %vm11454_vm12 = vmmov %vm11450_vm3  ;;  %s11491_s17 = smov 125  }
 0x67c   : > { %v4919_v42 = vsel %vm11448_vm5, %v4904_v44, %v4900_v60  ;;  %v4858_v37 = vsel %vm11449_vm6, %v4843_v47, %v4839_v55  ;;  %v4771_v57 = vcombine.high %v10224_v50, %v10224_v50  ;;  %v5165_v46 = vsel %vm11450_vm3, %v5151_v7, %v5164_v49  ;;  %vm11455_vm5 = vmmov %vm11453_vm4 }
 0x67d   : > { %v4920_v8 = vsel %vm11451_vm15, %v4908_v33, %v4919_v42  ;;  %v4859_v23 = vsel %vm11438_vm2, %v4847_v19, %v4858_v37  ;;  %v4675_v48 = vrot.slane %v4593_v25, %v7420_v10  ;;  %v4772_v1 = vcombine.high %v10234_v24, %v10234_v24  ;;  %vm11456_vm6 = vmmov %vm11438_vm2  ;;  %v4541_v37 = vld [vmem:[%s11469_s7] sm:$0xff] }
 0x67e   : > { %4960 = vrot.lane.b32.xlu0 %v4952_v6, %s11389_s21  ;;  %v10271_v17 = vsel %vm11452_vm13, %v4851_v34, %v4859_v23  ;;  %v5003_v5 = vrot.slane %v10224_v50, %v7426_v12  ;;  %v5007_v26 = vrot.slane %v4771_v57, %v7426_v12  ;;  %v4780_v45 = vcombine.high %v10216_v0, %v10216_v0  ;;  %vm11457_vm3 = vmmov %vm11438_vm2  ;;  %v4542_v23 = vld [vmem:[%s11469_s7 + $0x8] sm:$0xff] }
 0x67f   : > { %5174 = vrot.lane.b32.xlu1 %v5165_v46, %s11310_s26  ;;  %v4953_v31 = vsel %vm11453_vm4, %v4847_v19, %v4843_v47  ;;  %v5011_v61 = vrot.slane %v10234_v24, %v7426_v12  ;;  %v10287_v4 = vcombine.high %v10238_v52, %v10238_v52  ;;  %v4921_v53 = vsel %vm11454_vm12, %v4912_v38, %v4920_v8  ;;  %vm11458_vm15 = vmmov %vm11453_vm4  ;;  %s11479_s26 = smov 96  }
 0x680   : > { %v5038_v56 = vsel %vm11455_vm5, %v5007_v26, %v5003_v5  ;;  %v10292_v59 = vrot.slane %v4691_v9, %v7426_v12  ;;  %v4945_v30 = vrot.slane %v4675_v48, %v7426_v12  ;;  %v4692_v39 = vcombine.high %v10253_v22, %v10253_v22  ;;  %vm11459_vm2 = vmmov %vm11453_vm4  ;;  %v4543_v48 = vld [vmem:[%s11469_s7 + $0x10] sm:$0xff] }
 0x681   : > { %v5187_v20 = vrot.slane %v10241_v15, %v7426_v12  ;;  %v5095_v28 = vrot.slane %v4771_v57, %v7428_v13  ;;  %v4954_v0 = vsel %vm11456_vm6, %v4851_v34, %v4953_v31  ;;  %v5015_v63 = vrot.slane %v4772_v1, %v7426_v12  ;;  %vm11460_vm13 = vmmov %vm11454_vm12 }
 0x682   : > { %5207 = vrot.lane.b32.xlu0 %v10271_v17, %s11382_s24  ;;  %v10305_v62 = vrot.slane %v10253_v22, %v7426_v12  ;;  %v5091_v25 = vrot.slane %v10224_v50, %v7428_v13  ;;  %v5039_v2 = vsel %vm11457_vm3, %v5011_v61, %v5038_v56  ;;  %v5099_v51 = vrot.slane %v10234_v24, %v7428_v13  ;;  %vm11461_vm4 = vmmov %vm11454_vm12 }
 0x683   : > { %4928 = vrot.lane.b32.xlu1 %v4921_v53, %s11387_s29  ;;  %v5200_v27 = vsel %vm11458_vm15, %v10292_v59, %v5187_v20  ;;  %v5222_v36 = vrot.slane %v4691_v9, %v7428_v13  ;;  %v4592_v16 = vsel %vm565_vm0, %v4568_v32, 0.0  ;;  %v4794_v50 = vrot.slane %v4780_v45, %v7420_v10  ;;  %vm11462_vm12 = vmmov %vm11457_vm3  ;;  %v4545_v20 = vld [vmem:[%s11469_s7 + $0x20] sm:$0xff] }
 0x684   : > { %v5126_v3 = vsel %vm11459_vm2, %v5095_v28, %v5091_v25  ;;  %v4955_v54 = vsel %vm11460_vm13, %v4945_v30, %v4954_v0  ;;  %v10323_v6 = vrot.slane %v4692_v39, %v7426_v12  ;;  %v5218_v60 = vrot.slane %v10241_v15, %v7428_v13  ;;  %vm11463_vm5 = vmmov %vm11457_vm3 }
 0x685   : > { %v5040_v24 = vsel %vm11461_vm4, %v5015_v63, %v5039_v2  ;;  %v5201_v41 = vsel %vm11462_vm12, %v10305_v62, %v5200_v27  ;;  %v5103_v32 = vrot.slane %v4772_v1, %v7428_v13  ;;  %v5226_v44 = vrot.slane %v10253_v22, %v7428_v13  ;;  %vm11464_vm6 = vmmov %vm11459_vm2  ;;  %v4544_v1 = vld [vmem:[%s11469_s7 + $0x18] sm:$0xff] }
 0x686   : > { %5238 = vrot.lane.b32.xlu0 %v4921_v53, %s11312_s20  ;;  %v5127_v33 = vsel %vm11463_vm5, %v5099_v51, %v5126_v3  ;;  %v5231_v49 = vsel %vm11464_vm6, %v5222_v36, %v5218_v60  ;;  %v5023_v15 = vrot.slane %v10287_v4, %v7426_v12  ;;  %v4779_v55 = vrot.slane %v4592_v16, %v7420_v10  ;;  %vm11465_vm3 = vmmov %vm11459_vm2  ;;  %s11473_s20 = smov 84  }
 0x687   : > { %4962 = vrot.lane.b32.xlu1 %v4955_v54, %s11389_s21  ;;  %v5166_v47 = vsel %vm11465_vm3, %v5011_v61, %v5007_v26  ;;  %vm11466_vm15 = vmmov %vm11461_vm4  ;;  %v5230_v7 = vrot.slane %v4692_v39, %v7428_v13  ;;  %v4796_v42 = vcombine.high %v4794_v50, %v4794_v50  ;;  %v5019_v22 = vrot.slane %v10238_v52, %v7426_v12 }
 0x688   : > { %v5202_v19 = vsel %vm11466_vm15, %v10323_v6, %v5201_v41  ;;  %vm11467_vm2 = vmmov %vm11461_vm4  ;;  %v5027_v38 = vrot.slane %v4794_v50, %v7426_v12  ;;  %v5111_v8 = vrot.slane %v10287_v4, %v7428_v13  ;;  %v5155_v5 = vrot.slane %v4779_v55, %v7426_v12 }
 0x689   : > { %v5128_v34 = vsel %vm11467_vm2, %v5103_v32, %v5127_v33  ;;  %vm11468_vm13 = vmmov %vm11463_vm5  ;;  %v5031_v45 = vrot.slane %v4796_v42, %v7426_v12  ;;  %v5107_v31 = vrot.slane %v10238_v52, %v7428_v13  ;;  %v5115_v61 = vrot.slane %v4794_v50, %v7428_v13  ;;  %v4546_v52 = vld [vmem:[%s11469_s7 + $0x28] sm:$0xff]  ;;  %v4552_v32 = vld [vmem:[%s11469_s7 + $0x58] sm:$0xff] }
 0x68a   : > { %5048 = vrot.lane.b32.xlu0 %v5040_v24, %s11431_s27  ;;  %v5232_v9 = vsel %vm11468_vm13, %v5226_v44, %v5231_v49  ;;  %vm11470_vm4 = vmmov %vm11463_vm5  ;;  %v7022_v56 = vpack.c.bf16 %v4542_v23, %v4541_v37  ;;  %v7026_v30 = vpack.c.bf16 %v4544_v1, %v4543_v48  ;;  %v4594_v28 = vsel %vm565_vm0, %v4570_v14, 0.0  ;;  %v4547_v14 = vld [vmem:[%s11469_s7 + $0x30] sm:$0xff] }
 0x68b   : > { %5209 = vrot.lane.b32.xlu1 %v5202_v19, %s11382_s24  ;;  %v5167_v57 = vsel %vm11470_vm4, %v5015_v63, %v5166_v47  ;;  %vm11471_vm12 = vmmov %vm11465_vm3  ;;  %v5119_v63 = vrot.slane %v4796_v42, %v7428_v13  ;;  %v7030_v2 = vpack.c.bf16 %v4546_v52, %v4545_v20  ;;  %v4803_v27 = vrot.slane %v4594_v28, %v7420_v10  ;;  %v4548_v13 = vld [vmem:[%s11469_s7 + $0x38] sm:$0xff]  ;;  %s11492_s24 = smov 45  }
 0x68c   : > { %v5041_v46 = vsel %vm11471_vm12, %v5023_v15, %v5019_v22  ;;  %vm11472_vm5 = vmmov %vm11467_vm2  ;;  %7023 = vmatprep.subr.bf16.mxu1 %v7022_v56  ;;  %v4595_v51 = vsel %vm565_vm0, %v4571_v18, 0.0  ;;  %v7034_v3 = vpack.c.bf16 %v4548_v13, %v4547_v14  ;;  %v4550_v18 = vld [vmem:[%s11469_s7 + $0x48] sm:$0xff] }
 0x68d   : > { %v5233_v26 = vsel %vm11472_vm5, %v5230_v7, %v5232_v9  ;;  %vm11474_vm6 = vmmov %vm11467_vm2  ;;  %7025 = vmatpush3.bf16.msra.mxu1 %v7022_v56  ;;  %v4699_v50 = vrot.slane %v4595_v51, %v7420_v10  ;;  %v7038_v41 = vpack.c.bf16 %v4550_v18, %v4549_v35 }
 0x68e   : > { %5136 = vrot.lane.b32.xlu0 %v5128_v34, %s11313_s30  ;;  %v5168_v4 = vsel %vm11474_vm6, %v5155_v5, %v5167_v57  ;;  %vm11475_vm3 = vmmov %vm11470_vm4  ;;  %7027 = vmatprep.subr.bf16.mxu1 %v7026_v30 }
 0x68f   : > { %5240 = vrot.lane.b32.xlu1 %v5233_v26, %s11473_s20  ;;  %v5042_v53 = vsel %vm11475_vm3, %v5027_v38, %v5041_v46  ;;  %vm11477_vm15 = vmmov %vm11471_vm12  ;;  %s11315_s20 = smov 14  }
 0x690   : > { %v5129_v39 = vsel %vm11477_vm15, %v5111_v8, %v5107_v31  ;;  %v5043_v0 = vsel %vm11467_vm2, %v5031_v45, %v5042_v53  ;;  %vm11478_vm13 = vmmov %vm11475_vm3 }
 0x691   : > { %v5130_v25 = vsel %vm11478_vm13, %v5115_v61, %v5129_v39  ;;  %vm11480_vm4 = vmmov %vm11471_vm12  ;;  %7029 = vmatpush3.bf16.msra.mxu1 %v7026_v30  ;;  %vm5318_vm13 = vcmask 1043456  }
 0x692   : > { %5176 = vrot.lane.b32.xlu0 %v5168_v4, %s11476_s0  ;;  %v5169_v40 = vsel %vm11480_vm4, %v5027_v38, %v5023_v15  ;;  %vm11481_vm12 = vmmov %vm11467_vm2  ;;  %7031 = vmatprep.subr.bf16.mxu1 %v7030_v2  ;;  %v4923_v15 = vpop.permute.xlu0 %4922 }
 0x693   : > { %5050 = vrot.lane.b32.xlu1 %v5043_v0, %s11431_s27  ;;  %v5131_v36 = vsel %vm11481_vm12, %v5119_v63, %v5130_v25  ;;  %vm11482_vm5 = vmmov %vm11475_vm3  ;;  %v5265_v46 = vsel %vm3161_vm11, %v9140_v21, %v4923_v15  ;;  %s11319_s27 = smov 90  }
 0x694   : > { %v5170_v16 = vsel %vm11482_vm5, %v5031_v45, %v5169_v40  ;;  %vm11483_vm6 = vmmov %vm11480_vm4  ;;  %vm11486_vm4 = vmmov 1  }
 0x695   : > { %v5250_v60 = vsel %vm11483_vm6, %v10305_v62, %v10292_v59  ;;  %vm11484_vm3 = vmmov %vm11467_vm2  ;;  %7033 = vmatpush3.bf16.msra.mxu1 %v7030_v2  ;;  %v5249_v59 = vrot.slane %v4699_v50, %v7426_v12  ;;  %v4551_v62 = vld [vmem:[%s11469_s7 + $0x50] sm:$0xff]  ;;  %vm11487_vm6 = vcmask 195584  }
 0x696   : > { %5257 = vrot.lane.b32.xlu0 %v4955_v54, %s11479_s26  ;;  %v5159_v54 = vrot.slane %v4803_v27, %v7426_v12  ;;  %vm11485_vm15 = vmmov %vm11482_vm5  ;;  %7035 = vmatprep.subr.bf16.mxu1 %v7034_v3  ;;  %v7042_v33 = vpack.c.bf16 %v4552_v32, %v4551_v62  ;;  %v4554_v12 = vld [vmem:[%s11469_s7 + $0x68] sm:$0xf]  ;;  %v4957_v55 = vpop.permute.xlu0 %4956  ;;  %vm5277_vm5 = vcmask 392192  }
 0x697   : > { %5138 = vrot.lane.b32.xlu1 %v5131_v36, %s11313_s30  ;;  %v5251_v10 = vsel %vm11485_vm15, %v10323_v6, %v5250_v60  ;;  %v4553_v6 = vld [vmem:[%s11469_s7 + $0x60] sm:$0xff]  ;;  %vm7047_vm12 = vmpackc.low %vm5318_vm13, %vm11486_vm4  ;;  %v5269_v23 = vsel %vm11487_vm6, %v5265_v46, %v4957_v55  ;;  %vm11330_vm13 = vcmask 785408   ;;  %vm5313_vm4 = vcmask 883712   ;;  %s7322_s7 = smov 112   ;;  %s11527_s30 = sld [smem:[#allocation26_spill]] }
 0x698   : > { %v5171_v24 = vsel %vm11484_vm3, %v5159_v54, %v5170_v16  ;;  %v5252_v44 = vsel %vm11467_vm2, %v5249_v59, %v5251_v10  ;;  %v7046_v49 = vpack.c.bf16 %v4554_v12, %v4553_v6  ;;  %vm5282_vm3 = vcmask 490496   ;;  %vm11488_vm15 = vmmov %vm11487_vm6 }
 0x699   : > { %7037 = vmatpush3.bf16.msra.mxu1 %v7034_v3  ;;  %vm5291_vm2 = vcmask 687104  }
 0x69a   : > { %7039 = vmatprep.subr.bf16.mxu1 %v7038_v41 }
 0x69b   : > { %5178 = vrot.lane.b32.xlu1 %v5171_v24, %s11476_s0  ;;  %s11317_s0 = smov 7  }
 0x69d   : > { %7041 = vmatpush3.bf16.msra.mxu1 %v7038_v41 }
 0x69e   : > { %7043 = vmatprep.subr.bf16.mxu1 %v7042_v33 }
 0x69f   : > { %5259 = vrot.lane.b32.xlu1 %v5252_v44, %s11479_s26 }
 0x6a1   : > { %7045 = vmatpush3.bf16.msra.mxu1 %v7042_v33 }
 0x6a2   : > { %7048 = vmatprep.subr.msk.bf16.mxu1 %vm7047_vm12, %v7046_v49 }
 0x6a5   : > { %7051 = vmatpush3.bf16.msk.msra.mxu1 %vm7047_vm12, %v7046_v49  ;;  %vm11489_vm12 = vmmov %vm11487_vm6 }
 0x6d3   : > { %v4925_v47 = vpop.permute.xlu1 %4924 }
 0x6d4   : > { %v5204_v19 = vpop.permute.xlu0 %5203  ;;  %v5266_v61 = vsel %vm3161_vm11, %v10077_v11, %v4925_v47 }
 0x6d7   : > { %v4959_v7 = vpop.permute.xlu1 %4958 }
 0x6d8   : > { %v5235_v42 = vpop.permute.xlu0 %5234  ;;  %v5270_v21 = vsel %vm11488_vm15, %v5266_v61, %v4959_v7  ;;  %v6690_v7 = vld [vmem:[%s11490_s8] ss:$0 sm:$0xff] }
 0x6db   : > { %v5206_v22 = vpop.permute.xlu1 %5205 }
 0x6dc   : > { %v5045_v34 = vpop.permute.xlu0 %5044 }
 0x6dd   : > { %v5273_v1 = vsel %vm3731_vm1, %v5269_v23, %v5045_v34 }
 0x6df   : > { %v5237_v9 = vpop.permute.xlu1 %5236 }
 0x6e0   : > { %v5133_v38 = vpop.permute.xlu0 %5132 }
 0x6e1   : > { %v5278_v26 = vsel %vm5277_vm5, %v5273_v1, %v5133_v38 }
 0x6e3   : > { %v5047_v57 = vpop.permute.xlu1 %5046 }
 0x6e4   : > { %v5254_v37 = vpop.permute.xlu0 %5253  ;;  %v5274_v56 = vsel %vm3731_vm1, %v5270_v21, %v5047_v57 }
 0x6e8   : > { %v5173_v8 = vpop.permute.xlu0 %5172 }
 0x6e9   : > { %v5135_v48 = vpop.permute.xlu1 %5134  ;;  %v5283_v45 = vsel %vm5282_vm3, %v5278_v26, %v5173_v8 }
 0x6ea   : > { %v5287_v53 = vsel %vm3767_vm14, %v5283_v45, %v5204_v19  ;;  %v5279_v30 = vsel %vm5277_vm5, %v5274_v56, %v5135_v48 }
 0x6eb   : > { %v5292_v28 = vsel %vm5291_vm2, %v5287_v53, %v5235_v42 }
 0x6ec   : > { %v4927_v5 = vpop.permute.xlu0 %4926  ;;  %v5297_v25 = vsel %vm11330_vm13, %v5292_v28, %v5254_v37 }
 0x6ed   : > { %v5256_v31 = vpop.permute.xlu1 %5255  ;;  %v5267_v3 = vsel %vm3161_vm11, %v10118_v43, %v4927_v5 }
 0x6f0   : > { %v4961_v4 = vpop.permute.xlu0 %4960 }
 0x6f1   : > { %v5175_v39 = vpop.permute.xlu1 %5174  ;;  %v5271_v54 = vsel %vm11489_vm12, %v5267_v3, %v4961_v4  ;;  %vm11501_vm12 = vcmask 367616  }
 0x6f2   : > { %v5284_v20 = vsel %vm5282_vm3, %v5279_v30, %v5175_v39 }
 0x6f3   : > { %v5288_v0 = vsel %vm3767_vm14, %v5284_v20, %v5206_v22 }
 0x6f4   : > { %v5208_v52 = vpop.permute.xlu0 %5207  ;;  %v5293_v11 = vsel %vm5291_vm2, %v5288_v0, %v5237_v9  ;;  %v7313_v0 = vmov 0.0|0.0  }
 0x6f5   : > { %v4929_v63 = vpop.permute.xlu1 %4928  ;;  %v5298_v2 = vsel %vm11330_vm13, %v5293_v11, %v5256_v31  ;;  %7084 = vmatprep.subr.bf16.mxu1 %v7313_v0 }
 0x6f6   : > { %v5311_v27 = vcombine.low %v5297_v25, %v5298_v2  ;;  %v5268_v41 = vsel %vm3161_vm11, %v10271_v17, %v4929_v63  ;;  %v5447_v25 = vld [vmem:[%s11242_s9 + $0x100] sm:$0xff]  ;;  %v5448_v2 = vld [vmem:[%s11242_s9 + $0x108] sm:$0xff] }
 0x6f8   : > { %v5239_v40 = vpop.permute.xlu0 %5238  ;;  %6968 = vmatprep.mubr.msk.f32.mxu1 %vm5313_vm4, %v5311_v27 }
 0x6f9   : > { %v4963_v14 = vpop.permute.xlu1 %4962 }
 0x6fa   : > { %v5272_v59 = vsel %vm11487_vm6, %v5268_v41, %v4963_v14  ;;  %v5451_v41 = vld [vmem:[%s11242_s9 + $0x120] sm:$0xff]  ;;  %vm5622_vm6 = vcmask 56320  }
 0x6fc   : > { %v5049_v13 = vpop.permute.xlu0 %5048 }
 0x6fd   : > { %v5210_v51 = vpop.permute.xlu1 %5209  ;;  %v5275_v35 = vsel %vm3731_vm1, %v5271_v54, %v5049_v13  ;;  %v5415_v54 = vld [vmem:[%s11242_s9] sm:$0xff] }
 0x700   : > { %v5137_v36 = vpop.permute.xlu0 %5136 }
 0x701   : > { %v5241_v16 = vpop.permute.xlu1 %5240  ;;  %v5280_v18 = vsel %vm5277_vm5, %v5275_v35, %v5137_v36  ;;  %v5432_v36 = vld [vmem:[%s11242_s9 + $0x88] sm:$0xff] }
 0x702   : > { %v5416_v35 = vld [vmem:[%s11242_s9 + $0x8] sm:$0xff] }
 0x704   : > { %v5177_v60 = vpop.permute.xlu0 %5176 }
 0x705   : > { %v5051_v50 = vpop.permute.xlu1 %5050  ;;  %v5285_v24 = vsel %vm5282_vm3, %v5280_v18, %v5177_v60  ;;  %v7054_v18 = vpack.c.bf16 %v5416_v35, %v5415_v54 }
 0x706   : > { %v5276_v62 = vsel %vm3731_vm1, %v5272_v59, %v5051_v50  ;;  %v5289_v43 = vsel %vm3767_vm14, %v5285_v24, %v5208_v52  ;;  %v5450_v50 = vld [vmem:[%s11242_s9 + $0x118] sm:$0xff]  ;;  %v5433_v24 = vld [vmem:[%s11242_s9 + $0x90] sm:$0xff] }
 0x707   : > { %v5294_v6 = vsel %vm5291_vm2, %v5289_v43, %v5239_v40  ;;  %v7085_v40 = vpack.c.bf16 %v5448_v2, %v5447_v25  ;;  %v5417_v43 = vld [vmem:[%s11242_s9 + $0x10] sm:$0xff]  ;;  %v5424_v25 = vld [vmem:[%s11242_s9 + $0x48] sm:$0xff] }
 0x708   : > { %v5258_v12 = vpop.permute.xlu0 %5257 }
 0x709   : > { %v5139_v10 = vpop.permute.xlu1 %5138  ;;  %v5299_v17 = vsel %vm11330_vm13, %v5294_v6, %v5258_v12  ;;  %v5435_v6 = vld [vmem:[%s11242_s9 + $0xa0] sm:$0xff]  ;;  %v5436_v12 = vld [vmem:[%s11242_s9 + $0xa8] sm:$0xff] }
 0x70a   : > { %v5281_v32 = vsel %vm5277_vm5, %v5276_v62, %v5139_v10  ;;  %v5434_v10 = vld [vmem:[%s11242_s9 + $0x98] sm:$0xff]  ;;  %v5452_v62 = vld [vmem:[%s11242_s9 + $0x128] sm:$0xff] }
 0x70b   : > { %v7056_v59 = vpack.c.bf16 %v5434_v10, %v5433_v24  ;;  %v5444_v24 = vld [vmem:[%s11242_s9 + $0xe8] sm:$0xff]  ;;  %v5461_v10 = vld [vmem:[%s11242_s9 + $0x170] sm:$0xff] }
 0x70d   : > { %v5179_v44 = vpop.permute.xlu1 %5178 }
 0x70e   : > { %v5286_v33 = vsel %vm5282_vm3, %v5281_v32, %v5179_v44  ;;  %v7091_v32 = vpack.c.bf16 %v5452_v62, %v5451_v41  ;;  %v5418_v44 = vld [vmem:[%s11242_s9 + $0x18] sm:$0xff]  ;;  %v5427_v62 = vld [vmem:[%s11242_s9 + $0x60] sm:$0xff] }
 0x70f   : > { %v5290_v49 = vsel %vm3767_vm14, %v5286_v33, %v5210_v51  ;;  %vm5496_vm14 = vcmask 1044480   ;;  %v5431_v51 = vld [vmem:[%s11242_s9 + $0x80] sm:$0xff]  ;;  %v7058_v33 = vpack.c.bf16 %v5418_v44, %v5417_v43 }
 0x710   : > { %v5295_v15 = vsel %vm5291_vm2, %v5290_v49, %v5241_v16  ;;  %v10486_v5 = vsel %vm5496_vm14, %v11375_v29, 0.0  ;;  %v5449_v16 = vld [vmem:[%s11242_s9 + $0x110] sm:$0xff]  ;;  %v7052_v3 = vpack.c.bf16 %v5432_v36, %v5431_v51  ;;  %v5459_v36 = vld [vmem:[%s11242_s9 + $0x160] sm:$0xff] }
 0x711   : > { %v5260_v55 = vpop.permute.xlu1 %5259  ;;  %v10495_v45 = vrot.slane %v10486_v5, 2  ;;  %v10504_v29 = vrot.slane %v10486_v5, 1  ;;  %v7088_v60 = vpack.c.bf16 %v5450_v50, %v5449_v16  ;;  %v5453_v49 = vld [vmem:[%s11242_s9 + $0x130] sm:$0xff]  ;;  %v5460_v16 = vld [vmem:[%s11242_s9 + $0x168] sm:$0xff] }
 0x712   : > { %v5300_v47 = vsel %vm11330_vm13, %v5295_v15, %v5260_v55  ;;  %7053 = vmatprep.subr.bf16.mxu0 %v7052_v3  ;;  %v7060_v15 = vpack.c.bf16 %v5436_v12, %v5435_v6  ;;  %v5454_v55 = vld [vmem:[%s11242_s9 + $0x138] sm:$0xff]  ;;  %v5425_v3 = vld [vmem:[%s11242_s9 + $0x50] sm:$0xff]  ;;  %v7103_v54 = vpack.c.bf16 %v5460_v16, %v5459_v36  ;;  %vm5647_vm13 = vcmask 850944  }
 0x713   : > { %v5312_v19 = vcombine.low %v5299_v17, %v5300_v47  ;;  %7055 = vmatpush3.bf16.msra.mxu0 %v7054_v18  ;;  %v5419_v17 = vld [vmem:[%s11242_s9 + $0x20] sm:$0xff]  ;;  %v7094_v47 = vpack.c.bf16 %v5454_v55, %v5453_v49  ;;  %v5445_v49 = vld [vmem:[%s11242_s9 + $0xf0] sm:$0xff] }
 0x714   : > { %7057 = vmatprep.subr.bf16.mxu0 %v7056_v59  ;;  %v5443_v18 = vld [vmem:[%s11242_s9 + $0xe0] sm:$0xff]  ;;  %v5462_v59 = vld [vmem:[%s11242_s9 + $0x178] sm:$0xff] }
 0x715   : > { %6969 = vmatmul.mubr.msk.f32.vlgmr.msra.gmra.mrb[0].mxu1 %vm5313_vm4, %v5312_v19  ;;  %v5420_v19 = vld [vmem:[%s11242_s9 + $0x28] sm:$0xff]  ;;  %v7076_v41 = vpack.c.bf16 %v5444_v24, %v5443_v18  ;;  %v7106_v43 = vpack.c.bf16 %v5462_v59, %v5461_v10  ;;  %v5463_v55 = vld [vmem:[%s11242_s9 + $0x180] sm:$0xff]  ;;  %vm5617_vm4 = vcmask 736256  }
 0x716   : > { %7086 = vmatpush1.bf16.msra.mxu1 %v7085_v40  ;;  %v5441_v40 = vld [vmem:[%s11242_s9 + $0xd0] sm:$0xff] }
 0x717   : > { %7087 = vmatprep.subr.bf16.mxu1 %v7313_v0  ;;  %7059 = vmatpush3.bf16.msra.mxu0 %v7058_v33 }
 0x718   : > { %7061 = vmatprep.subr.bf16.mxu0 %v7060_v15  ;;  %v5446_v15 = vld [vmem:[%s11242_s9 + $0xf8] sm:$0xff] }
 0x71a   : > { %7089 = vmatpush1.bf16.msra.mxu1 %v7088_v60  ;;  %v5426_v60 = vld [vmem:[%s11242_s9 + $0x58] sm:$0xff] }
 0x71b   : > { %7090 = vmatprep.subr.bf16.mxu1 %v7313_v0  ;;  %v7074_v35 = vpack.c.bf16 %v5426_v60, %v5425_v3 }
 0x71e   : > { %7092 = vmatpush1.bf16.msra.mxu1 %v7091_v32  ;;  %v5428_v32 = vld [vmem:[%s11242_s9 + $0x68] sm:$0xff] }
 0x71f   : > { %7093 = vmatprep.subr.bf16.mxu1 %v7313_v0  ;;  %v7078_v33 = vpack.c.bf16 %v5428_v32, %v5427_v62 }
 0x722   : > { %7095 = vmatpush1.bf16.msra.mxu1 %v7094_v47  ;;  %v5429_v47 = vld [vmem:[%s11242_s9 + $0x70] sm:$0xff] }
 0x723   : > { %7096 = vmatprep.subr.bf16.mxu1 %v7313_v0 }
 0x7e8   : > { %v6970_v42 = vpop.f32.mrb[0].mxu1 }
 0x7e9   : > { %v5394_v22 = vadd.f32 %v6970_v42, %v6690_v7  ;;  %v5388_v34 = vpop.f32.mrb[1].mxu1  ;;  %v7062_v42 = vpack.c.bf16 %v5420_v19, %v5419_v17  ;;  %v7080_v17 = vpack.c.bf16 %v5446_v15, %v5445_v49  ;;  %v5430_v19 = vld [vmem:[%s11242_s9 + $0x78] sm:$0xff] }
 0x7ea   : > { %v5389_v9 = vadd.f32 %v6690_v7, %v5388_v34  ;;  %v5437_v34 = vld [vmem:[%s11242_s9 + $0xb0] sm:$0xff] }
 0x7eb   : > { %v5400_v57 = vcombine.high %v5394_v22, %v5394_v22  ;;  %v5409_v23 = vmul.f32 0.2, %v5394_v22  ;;  %vm5405_vm15 = vcmp.ge.f32.partialorder %v5394_v22, 0.0  ;;  %7063 = vmatpush3.bf16.msra.mxu0 %v7062_v42  ;;  %v7082_v42 = vpack.c.bf16 %v5430_v19, %v5429_v47 }
 0x7ec   : > { %vm5403_vm1 = vcmp.ge.f32.partialorder %v5389_v9, 0.0  ;;  %v5407_v38 = vmul.f32 0.2, %v5389_v9  ;;  %v5399_v37 = vcombine.high %v5389_v9, %v5389_v9 }
 0x7ed   : > { %v5410_v1 = vmul.f32 0.2, %v5400_v57  ;;  %vm5406_vm2 = vcmp.ge.f32.partialorder %v5400_v57, 0.0  ;;  %v10490_v26 = vsel %vm5405_vm15, %v5394_v22, %v5409_v23  ;;  %v5421_v23 = vld [vmem:[%s11242_s9 + $0x30] sm:$0xff]  ;;  %vm11502_vm15 = vmmov %vm11501_vm12 }
 0x7ee   : > { %v10478_v46 = vsel %vm5403_vm1, %v5389_v9, %v5407_v38  ;;  %vm5404_vm3 = vcmp.ge.f32.partialorder %v5399_v37, 0.0  ;;  %v5408_v8 = vmul.f32 0.2, %v5399_v37  ;;  %v5438_v9 = vld [vmem:[%s11242_s9 + $0xb8] sm:$0xff]  ;;  %v5455_v38 = vld [vmem:[%s11242_s9 + $0x140] sm:$0xff]  ;;  %vm5627_vm1 = vcmask 424960  }
 0x7ef   : > { %5476 = vrot.lane.b32.xlu0 %v10478_v46, %s11491_s17  ;;  %v10497_v31 = vsel %vm5406_vm2, %v5400_v57, %v5410_v1  ;;  %v7064_v57 = vpack.c.bf16 %v5438_v9, %v5437_v34  ;;  %v5422_v1 = vld [vmem:[%s11242_s9 + $0x38] sm:$0xff]  ;;  %v5465_v34 = vld [vmem:[%s11242_s9 + $0x190] sm:$0x1f]  ;;  %vm5637_vm2 = vcmask 113664  }
 0x7f0   : > { %v10482_v48 = vsel %vm5404_vm3, %v5399_v37, %v5408_v8  ;;  %v5456_v8 = vld [vmem:[%s11242_s9 + $0x148] sm:$0xff]  ;;  %vm5632_vm3 = vcmask 793600  }
 0x7f1   : > { %5478 = vrot.lane.b32.xlu1 %v10482_v48, %s11491_s17  ;;  %7065 = vmatprep.subr.bf16.mxu0 %v7064_v57 }
 0x7f3   : > { %5480 = vrot.lane.b32.xlu0 %v10490_v26, %s11491_s17 }
 0x7f5   : > { %5482 = vrot.lane.b32.xlu1 %v10497_v31, %s11491_s17 }
 0x7f7   : > { %5526 = vrot.lane.b32.xlu0 %v10495_v45, %s11319_s27 }
 0x7fb   : > { %5510 = vrot.lane.b32.xlu0 %v10504_v29, %s11492_s24 }
 0x861   : > { %v5477_v61 = vpop.permute.xlu0 %5476 }
 0x862   : > { %v5484_v53 = vrot.slane %v5477_v61, 7  ;;  %v7097_v61 = vpack.c.bf16 %v5456_v8, %v5455_v38 }
 0x863   : > { %v10508_v4 = vpop.permute.xlu1 %5478 }
 0x864   : > { %v5492_v52 = vsel %vm565_vm0, 0.0, %v5484_v53  ;;  %v5485_v22 = vrot.slane %v10508_v4, 7  ;;  %v7066_v4 = vpack.c.bf16 %v5422_v1, %v5421_v23  ;;  %v5439_v53 = vld [vmem:[%s11242_s9 + $0xc0] sm:$0xff]  ;;  %7098 = vmatpush1.bf16.msra.mxu1 %v7097_v61 }
 0x865   : > { %v5481_v21 = vpop.permute.xlu0 %5480  ;;  %v10522_v63 = vsel %vm5496_vm14, %v5492_v52, 0.0  ;;  %v5458_v52 = vld [vmem:[%s11242_s9 + $0x158] sm:$0xff]  ;;  %7099 = vmatprep.subr.bf16.mxu1 %v7313_v0 }
 0x866   : > { %v5486_v56 = vrot.slane %v5481_v21, 7  ;;  %v5507_v7 = vrot.slane %v10522_v63, 1  ;;  %v5523_v37 = vrot.slane %v10522_v63, 2  ;;  %v5493_v21 = vsel %vm565_vm0, 0.0, %v5485_v22  ;;  %7067 = vmatpush3.bf16.msra.mxu0 %v7066_v4 }
 0x867   : > { %v5483_v30 = vpop.permute.xlu1 %5482  ;;  %v10650_v2 = vsel %vm5496_vm14, %v5493_v21, 0.0  ;;  %v11499_v22 = vmov 0.0  }
 0x868   : > { %v5494_v39 = vsel %vm565_vm0, 0.0, %v5486_v56  ;;  %v5487_v28 = vrot.slane %v5483_v30, 7  ;;  %v5440_v56 = vld [vmem:[%s11242_s9 + $0xc8] sm:$0xff]  ;;  %v5524_v44 = vrot.slane %v10650_v2, 2  ;;  %v5508_v6 = vrot.slane %v10650_v2, 1 }
 0x869   : > { %v10512_v20 = vsel %vm5496_vm14, %v5494_v39, 0.0  ;;  %v7068_v30 = vpack.c.bf16 %v5440_v56, %v5439_v53  ;;  %v5457_v39 = vld [vmem:[%s11242_s9 + $0x150] sm:$0xff]  ;;  %v5527_v9 = vpop.permute.xlu0 %5526 }
 0x86a   : > { %5543 = vrot.lane.b32.xlu0 %v10512_v20, %s11317_s0  ;;  %5579 = vrot.lane.b32.xlu1 %v10512_v20, %s11315_s20  ;;  %v5525_v11 = vrot.slane %v10512_v20, 2  ;;  %v5495_v27 = vsel %vm565_vm0, 0.0, %v5487_v28  ;;  %v5509_v14 = vrot.slane %v10512_v20, 1  ;;  %s11496_s20 = smov 97   ;;  %v5423_v28 = vld [vmem:[%s11242_s9 + $0x40] sm:$0xff] }
 0x86b   : > { %v10536_v13 = vsel %vm5496_vm14, %v5495_v27, 0.0  ;;  %7069 = vmatprep.subr.bf16.mxu0 %v7068_v30  ;;  %v7070_v27 = vpack.c.bf16 %v5424_v25, %v5423_v28 }
 0x86c   : > { %v5551_v50 = vrot.slane %v10536_v13, 1  ;;  %v5564_v12 = vrot.slane %v10536_v13, 2 }
 0x86d   : > { %7071 = vmatpush3.bf16.msra.mxu0 %v7070_v27  ;;  %v5511_v38 = vpop.permute.xlu0 %5510 }
 0x86e   : > { %5539 = vrot.lane.b32.xlu0 %v10522_v63, %s11317_s0  ;;  %5532 = vrot.lane.b32.xlu1 %v5525_v11, %s11319_s27  ;;  %s11321_s27 = smov 52   ;;  %s11494_s0 = smov 14   ;;  %v5613_v3 = vsel %vm11501_vm12, %v10486_v5, %v5511_v38  ;;  %vm5642_vm12 = vcmask 482304  }
 0x872   : > { %5556 = vrot.lane.b32.xlu0 %v5509_v14, %s11321_s27  ;;  %5545 = vrot.lane.b32.xlu1 %v10536_v13, %s11493_s3  ;;  %s11498_s27 = smov 59  }
 0x876   : > { %5569 = vrot.lane.b32.xlu0 %v5525_v11, %s11323_s1  ;;  %5516 = vrot.lane.b32.xlu1 %v5509_v14, %s11492_s24  ;;  %s11495_s1 = smov 52  }
 0x87a   : > { %5581 = vrot.lane.b32.xlu0 %v10536_v13, %s11494_s0  ;;  %5591 = vrot.lane.b32.xlu1 %v5509_v14, %s11325_s6  ;;  %v5442_v14 = vld [vmem:[%s11242_s9 + $0xd8] sm:$0xff]  ;;  %v5464_v13 = vld [vmem:[%s11242_s9 + $0x188] sm:$0xff] }
 0x87b   : > { %v7072_v51 = vpack.c.bf16 %v5442_v14, %v5441_v40 }
 0x87d   : > { %7073 = vmatprep.subr.bf16.mxu0 %v7072_v51 }
 0x87e   : > { %5552 = vrot.lane.b32.xlu0 %v5507_v7, %s11495_s1  ;;  %5603 = vrot.lane.b32.xlu1 %v5525_v11, %s11327_s2  ;;  %v7100_v11 = vpack.c.bf16 %v5458_v52, %v5457_v39 }
 0x87f   : > { %7075 = vmatpush3.bf16.msra.mxu0 %v7074_v35  ;;  %v5618_v35 = vsel %vm5617_vm4, %v5613_v3, %v5527_v9 }
 0x880   : > { %7101 = vmatpush1.bf16.msra.mxu1 %v7100_v11  ;;  %7077 = vmatprep.subr.bf16.mxu0 %v7076_v41 }
 0x881   : > { %7102 = vmatprep.subr.bf16.mxu1 %v7313_v0 }
 0x882   : > { %5565 = vrot.lane.b32.xlu0 %v5523_v37, %s11496_s20  ;;  %5528 = vrot.lane.b32.xlu1 %v5523_v37, %s11497_s4 }
 0x883   : > { %7079 = vmatpush3.bf16.msra.mxu0 %v7078_v33 }
 0x884   : > { %7104 = vmatpush1.bf16.msra.mxu1 %v7103_v54  ;;  %7081 = vmatprep.subr.bf16.mxu0 %v7080_v17 }
 0x885   : > { %7105 = vmatprep.subr.bf16.mxu1 %v7313_v0 }
 0x886   : > { %5577 = vrot.lane.b32.xlu0 %v10650_v2, %s11494_s0  ;;  %5541 = vrot.lane.b32.xlu1 %v10650_v2, %s11493_s3 }
 0x887   : > { %7083 = vmatpush3.bf16.msra.mxu0 %v7082_v42 }
 0x888   : > { %7107 = vmatpush1.bf16.msra.mxu1 %v7106_v43 }
 0x889   : > { %7108 = vmatprep.subr.bf16.mxu1 %v7313_v0 }
 0x88a   : > { %5512 = vrot.lane.b32.xlu1 %v5507_v7, %s11492_s24  ;;  %5593 = vrot.lane.b32.xlu0 %v5551_v50, %s11498_s27  ;;  %v7109_v7 = vpack.c.bf16 %v5464_v13, %v5463_v55 }
 0x88c   : > { %7110 = vmatpush1.bf16.msra.mxu1 %v7109_v7 }
 0x88d   : > { %5810 = vmatprep.subr.mxu1 %v11499_v22 }
 0x88e   : > { %5530 = vrot.lane.b32.xlu0 %v5524_v44, %s11497_s4  ;;  %5558 = vrot.lane.b32.xlu1 %v5551_v50, %s11495_s1 }
 0x890   : > { %6703 = vmatpush1.msk.msra.mxu1 %vm5496_vm14, %v5465_v34 }
 0x891   : > { %7153 = vmatprep.subr.bf16.mxu1 %v7313_v0 }
 0x892   : > { %5514 = vrot.lane.b32.xlu0 %v5508_v6, %s11492_s24  ;;  %5571 = vrot.lane.b32.xlu1 %v5564_v12, %s11496_s20  ;;  %s11500_s24 = smov 104  }
 0x896   : > { %5589 = vrot.lane.b32.xlu0 %v5508_v6, %s11498_s27  ;;  %5554 = vrot.lane.b32.xlu1 %v5508_v6, %s11495_s1  ;;  %s7320_s1 = smov 32  }
 0x89a   : > { %5601 = vrot.lane.b32.xlu0 %v5524_v44, %s11500_s24  ;;  %5567 = vrot.lane.b32.xlu1 %v5524_v44, %s11496_s20  ;;  %s11506_s20 = smov 9  }
 0x89e   : > { %5605 = vrot.lane.b32.xlu0 %v5564_v12, %s11500_s24  ;;  %5583 = vrot.lane.b32.xlu1 %v10486_v5, %s11494_s0  ;;  %s7319_s0 = smov 16  }
 0x8a2   : > { %5595 = vrot.lane.b32.xlu1 %v10504_v29, %s11498_s27  ;;  %5885 = vrot.lane.b32.xlu0 %v10504_v29, %s11384_s23 }
 0x8a6   : > { %5607 = vrot.lane.b32.xlu1 %v10495_v45, %s11500_s24  ;;  %5900 = vrot.lane.b32.xlu0 %v10495_v45, %s11385_s25 }
 0x8aa   : > { %5957 = vrot.lane.b32.xlu1 %v10486_v5, %s11380_s16 }
 0x8ae   : > { %5969 = vrot.lane.b32.xlu1 %v10504_v29, %s11383_s28 }
 0x8dc   : > { %v5544_v37 = vpop.permute.xlu0 %5543  ;;  %v5580_v57 = vpop.permute.xlu1 %5579 }
 0x8e0   : > { %v5540_v8 = vpop.permute.xlu0 %5539  ;;  %v10748_v23 = vpop.permute.xlu1 %5532 }
 0x8e1   : > { %v5623_v18 = vsel %vm5622_vm6, %v5527_v9, %v5540_v8 }
 0x8e4   : > { %v5557_v1 = vpop.permute.xlu0 %5556  ;;  %v5546_v61 = vpop.permute.xlu1 %5545 }
 0x8e5   : > { %v5626_v10 = vsel %vm5622_vm6, %v10748_v23, %v5546_v61 }
 0x8e8   : > { %v10750_v4 = vpop.permute.xlu0 %5569  ;;  %v5517_v21 = vpop.permute.xlu1 %5516 }
 0x8ec   : > { %v10752_v53 = vpop.permute.xlu0 %5581  ;;  %v5592_v56 = vpop.permute.xlu1 %5591 }
 0x8f0   : > { %v5553_v30 = vpop.permute.xlu0 %5552  ;;  %v5604_v39 = vpop.permute.xlu1 %5603 }
 0x8f1   : > { %v5628_v41 = vsel %vm5627_vm1, %v5623_v18, %v5553_v30 }
 0x8f4   : > { %v5566_v52 = vpop.permute.xlu0 %5565  ;;  %v5529_v28 = vpop.permute.xlu1 %5528 }
 0x8f5   : > { %v5633_v59 = vsel %vm5632_vm3, %v5628_v41, %v5566_v52 }
 0x8f8   : > { %v5578_v11 = vpop.permute.xlu0 %5577  ;;  %v5542_v25 = vpop.permute.xlu1 %5541 }
 0x8f9   : > { %v5624_v62 = vsel %vm5622_vm6, %v5529_v28, %v5542_v25 }
 0x8fc   : > { %v5594_v27 = vpop.permute.xlu0 %5593  ;;  %v5513_v40 = vpop.permute.xlu1 %5512 }
 0x8fd   : > { %v5614_v50 = vsel %vm11502_vm15, %v10522_v63, %v5513_v40  ;;  %v5638_v63 = vsel %vm5637_vm2, %v5566_v52, %v5578_v11 }
 0x8fe   : > { %v5619_v43 = vsel %vm5617_vm4, %v5614_v50, %v5529_v28 }
 0x900   : > { %v5531_v14 = vpop.permute.xlu0 %5530  ;;  %v5559_v51 = vpop.permute.xlu1 %5558 }
 0x901   : > { %v5625_v24 = vsel %vm5622_vm6, %v5531_v14, %v5544_v37  ;;  %v5631_v44 = vsel %vm5627_vm1, %v5626_v10, %v5559_v51  ;;  %vm11503_vm6 = vmmov %vm11502_vm15 }
 0x902   : > { %v5630_v32 = vsel %vm5627_vm1, %v5625_v24, %v5557_v1  ;;  %v5616_v47 = vsel %vm11503_vm6, %v10512_v20, %v5517_v21  ;;  %vm11513_vm6 = vcmask 195584  }
 0x903   : > { %v5635_v22 = vsel %vm5632_vm3, %v5630_v32, %v10750_v4  ;;  %v5621_v8 = vsel %vm5617_vm4, %v5616_v47, %v10748_v23 }
 0x904   : > { %v5515_v36 = vpop.permute.xlu0 %5514  ;;  %v5572_v16 = vpop.permute.xlu1 %5571 }
 0x905   : > { %v5615_v33 = vsel %vm11502_vm15, %v10650_v2, %v5515_v36  ;;  %v5636_v15 = vsel %vm5632_vm3, %v5631_v44, %v5572_v16  ;;  %v6695_v2 = vcombine.low %v5618_v35, %v5619_v43 }
 0x906   : > { %v5620_v38 = vsel %vm5617_vm4, %v5615_v33, %v5531_v14  ;;  %v6700_v37 = vcombine.low %v5635_v22, %v5636_v15 }
 0x907   : > { %v6699_v1 = vcombine.low %v5620_v38, %v5621_v8  ;;  %v5469_v8 = vld [vmem:[%s11244_s11 + $0x10] sm:$0xff] }
 0x908   : > { %v5590_v54 = vpop.permute.xlu0 %5589  ;;  %v5555_v60 = vpop.permute.xlu1 %5554 }
 0x909   : > { %v5629_v6 = vsel %vm5627_vm1, %v5624_v62, %v5555_v60  ;;  %v5643_v19 = vsel %vm5642_vm12, %v5638_v63, %v5590_v54  ;;  %vm11504_vm1 = vcmask 171008  }
 0x90a   : > { %vm11505_vm4 = vmmov %vm11504_vm1 }
 0x90b   : > { %vm11512_vm15 = vmmov %vm11504_vm1 }
 0x90c   : > { %v5602_v12 = vpop.permute.xlu0 %5601  ;;  %v5568_v49 = vpop.permute.xlu1 %5567 }
 0x90d   : > { %v6698_v55 = vcombine.low %v5602_v12, %v5604_v39  ;;  %v5634_v17 = vsel %vm5632_vm3, %v5629_v6, %v5568_v49  ;;  %v5639_v13 = vsel %vm5637_vm2, %v5568_v49, %v5580_v57  ;;  %v5648_v34 = vsel %vm5647_vm13, %v5643_v19, %v5602_v12 }
 0x90e   : > { %v5644_v7 = vsel %vm5642_vm12, %v5639_v13, %v5592_v56  ;;  %v6696_v42 = vcombine.low %v5633_v59, %v5634_v17  ;;  %v5640_v56 = vsel %vm5637_vm2, %v10750_v4, %v10752_v53  ;;  %v6694_v4 = vld [vmem:[%s11243_s10] ss:$0 sm:$0xff]  ;;  %vm11509_vm3 = vcmask 146432  }
 0x90f   : > { %v5649_v9 = vsel %vm5647_vm13, %v5644_v7, %v5604_v39  ;;  %6704 = vmatprep.mubr.msk.f32.mxu1 %vm11504_vm1, %v6698_v55  ;;  %v5645_v39 = vsel %vm5642_vm12, %v5640_v56, %v5594_v27 }
 0x910   : > { %v6697_v57 = vcombine.low %v5648_v34, %v5649_v9  ;;  %5763 = vmatprep.mubr.f32.mxu0 %v6696_v42  ;;  %v5584_v20 = vpop.permute.xlu1 %5583  ;;  %v5606_v21 = vpop.permute.xlu0 %5605 }
 0x911   : > { %5764 = vmatmul.mubr.f32.vlgmr.msra.gmra.mrb[24].mxu0 %v6695_v2  ;;  %v5641_v30 = vsel %vm5637_vm2, %v5572_v16, %v5584_v20  ;;  %v5650_v11 = vsel %vm5647_vm13, %v5645_v39, %v5606_v21  ;;  %vm11510_vm2 = vmmov %vm11509_vm3 }
 0x912   : > { %5768 = vmatprep.mubr.f32.mxu0 %v6700_v37  ;;  %5839 = vmatmul.mubr.f32.vlgmr.msra.gmra.mrb[2].mxu1 %v6697_v57  ;;  %v5467_v37 = vld [vmem:[%s11244_s11] sm:$0xff]  ;;  %v5468_v57 = vld [vmem:[%s11244_s11 + $0x8] sm:$0xff] }
 0x913   : > { %v7111_v20 = vpack.c.bf16 %v5468_v57, %v5467_v37 }
 0x914   : > { %v5596_v61 = vpop.permute.xlu1 %5595 }
 0x915   : > { %5769 = vmatmul.mubr.f32.gmra.mrb[26].mxu0 %v6699_v1  ;;  %v5646_v52 = vsel %vm5642_vm12, %v5641_v30, %v5596_v61  ;;  %7112 = vmatprep.subr.bf16.mxu0 %v7111_v20  ;;  %v5470_v1 = vld [vmem:[%s11244_s11 + $0x18] sm:$0x7]  ;;  %v5886_v30 = vpop.permute.xlu0 %5885  ;;  %vm11511_vm12 = vmmov %vm11504_vm1 }
 0x916   : > { %7114 = vmatpush3.bf16.msra.mxu0 %v7111_v20  ;;  %v7115_v61 = vpack.c.bf16 %v5470_v1, %v5469_v8  ;;  %vm11514_vm1 = vmmov %vm11513_vm6 }
 0x918   : > { %v5608_v28 = vpop.permute.xlu1 %5607  ;;  %7117 = vmatprep.subr.msk.bf16.mxu0 %vm9287_vm7, %v7115_v61 }
 0x919   : > { %v5651_v23 = vsel %vm5647_vm13, %v5646_v52, %v5608_v28  ;;  %v6702_v25 = vcombine.low %v5606_v21, %v5608_v28  ;;  %v5901_v52 = vpop.permute.xlu0 %5900 }
 0x91a   : > { %v6701_v40 = vcombine.low %v5650_v11, %v5651_v23  ;;  %7120 = vmatpush3.bf16.msk.msra.mxu0 %vm9287_vm7, %v7115_v61  ;;  %vm11507_vm7 = vcmask 121856  }
 0x91b   : > { %6705 = vmatprep.mubr.msk.f32.mxu1 %vm11505_vm4, %v6702_v25  ;;  %vm11508_vm13 = vmmov %vm11507_vm7  ;;  %vm11515_vm4 = vcmask 220160  }
 0x91c   : > { %5844 = vmatmul.mubr.f32.gmra.mrb[4].mxu1 %v6701_v40  ;;  %v5958_v39 = vpop.permute.xlu1 %5957 }
 0x920   : > { %v5970_v58 = vpop.permute.xlu1 %5969 }
 0x9e4   : > { %v6816_v14 = vpop.f32.mrb[24].mxu0 }
 0x9e5   : > { %v6817_v51 = vpop.f32.mrb[25].mxu0  ;;  %v5840_v53 = vpop.f32.mrb[2].mxu1 }
 0x9e6   : > { %v6818_v27 = vadd.f32 %v6817_v51, %v6816_v14  ;;  %v5842_v36 = vpop.f32.mrb[3].mxu1 }
 0x9e8   : > { %v5766_v16 = vadd.f32 %v6818_v27, %v6694_v4  ;;  %v6819_v3 = vpop.f32.mrb[26].mxu0 }
 0x9e9   : > { %v6820_v50 = vpop.f32.mrb[27].mxu0 }
 0x9ea   : > { %v5841_v54 = vadd.f32 %v5840_v53, %v5766_v16  ;;  %v6821_v60 = vadd.f32 %v6820_v50, %v6819_v3 }
 0x9ec   : > { %v5851_v35 = vcombine.high %v5841_v54, %v5841_v54  ;;  %v10801_v18 = vadd.f32 %v5841_v54, %v10478_v46  ;;  %v5771_v10 = vadd.f32 %v6821_v60, %v6694_v4 }
 0x9ee   : > { %v5863_v24 = vrot.slane %v10801_v18, 7  ;;  %v10805_v59 = vadd.f32 %v5851_v35, %v10482_v48 }
 0x9ef   : > { %v5845_v41 = vpop.f32.mrb[4].mxu1 }
 0x9f0   : > { %v5846_v63 = vadd.f32 %v5845_v41, %v5771_v10  ;;  %v5847_v62 = vpop.f32.mrb[5].mxu1  ;;  %v5871_v43 = vsel %vm565_vm0, 0.0, %v5863_v24  ;;  %v5864_v33 = vrot.slane %v10805_v59, 7  ;;  %v5987_v24 = vsel %vm3134_vm8, %v10486_v5, %v5886_v30 }
 0x9f1   : > { %v10809_v32 = vsel %vm5496_vm14, %v5871_v43, 0.0  ;;  %v5991_v62 = vsel %vm3143_vm9, %v5987_v24, %v5901_v52 }
 0x9f2   : > { %5913 = vrot.lane.b32.xlu0 %v10809_v32, %s11506_s20  ;;  %v5882_v44 = vrot.slane %v10809_v32, 1  ;;  %v5897_v6 = vrot.slane %v10809_v32, 2  ;;  %v5872_v12 = vsel %vm565_vm0, 0.0, %v5864_v33  ;;  %v10825_v15 = vadd.f32 %v5846_v63, %v10490_v26 }
 0x9f3   : > { %v10822_v49 = vsel %vm5496_vm14, %v5872_v12, 0.0  ;;  %v5852_v47 = vcombine.high %v5846_v63, %v5846_v63 }
 0x9f4   : > { %5887 = vrot.lane.b32.xlu1 %v5882_v44, %s11384_s23  ;;  %v5883_v55 = vrot.slane %v10822_v49, 1  ;;  %v5865_v17 = vrot.slane %v10825_v15, 7  ;;  %v5898_v13 = vrot.slane %v10822_v49, 2 }
 0x9f5   : > { %v10843_v42 = vadd.f32 %v5852_v47, %v10497_v31 }
 0x9f6   : > { %5926 = vrot.lane.b32.xlu0 %v5882_v44, %s11387_s29  ;;  %v5873_v19 = vsel %vm565_vm0, 0.0, %v5865_v17 }
 0x9f7   : > { %v10840_v7 = vsel %vm5496_vm14, %v5873_v19, 0.0  ;;  %v5866_v22 = vrot.slane %v10843_v42, 7 }
 0x9f8   : > { %5902 = vrot.lane.b32.xlu1 %v5897_v6, %s11385_s25  ;;  %v5884_v2 = vrot.slane %v10840_v7, 1  ;;  %v5899_v34 = vrot.slane %v10840_v7, 2 }
 0x9f9   : > { %v5874_v9 = vsel %vm565_vm0, 0.0, %v5866_v22 }
 0x9fa   : > { %5939 = vrot.lane.b32.xlu0 %v5897_v6, %s11388_s22  ;;  %v5878_v38 = vsel %vm5496_vm14, %v5874_v9, 0.0 }
 0x9fb   : > { %v5925_v21 = vrot.slane %v5878_v38, 1  ;;  %v5938_v56 = vrot.slane %v5878_v38, 2 }
 0x9fc   : > { %5915 = vrot.lane.b32.xlu1 %v10822_v49, %s11506_s20 }
 0x9fe   : > { %5951 = vrot.lane.b32.xlu0 %v10822_v49, %s11380_s16 }
 0xa00   : > { %5928 = vrot.lane.b32.xlu1 %v5883_v55, %s11387_s29 }
 0xa02   : > { %5889 = vrot.lane.b32.xlu0 %v5883_v55, %s11384_s23 }
 0xa04   : > { %5941 = vrot.lane.b32.xlu1 %v5898_v13, %s11388_s22 }
 0xa06   : > { %5904 = vrot.lane.b32.xlu0 %v5898_v13, %s11385_s25 }
 0xa08   : > { %5953 = vrot.lane.b32.xlu1 %v10840_v7, %s11380_s16 }
 0xa0a   : > { %5917 = vrot.lane.b32.xlu0 %v10840_v7, %s11506_s20 }
 0xa0c   : > { %5891 = vrot.lane.b32.xlu1 %v5884_v2, %s11384_s23 }
 0xa0e   : > { %5963 = vrot.lane.b32.xlu0 %v5883_v55, %s11383_s28 }
 0xa10   : > { %5906 = vrot.lane.b32.xlu1 %v5899_v34, %s11385_s25 }
 0xa12   : > { %5975 = vrot.lane.b32.xlu0 %v5898_v13, %s11389_s21 }
 0xa14   : > { %5919 = vrot.lane.b32.xlu1 %v5878_v38, %s11506_s20 }
 0xa16   : > { %5930 = vrot.lane.b32.xlu0 %v5884_v2, %s11387_s29 }
 0xa18   : > { %5965 = vrot.lane.b32.xlu1 %v5884_v2, %s11383_s28 }
 0xa1a   : > { %5943 = vrot.lane.b32.xlu0 %v5899_v34, %s11388_s22 }
 0xa1c   : > { %5977 = vrot.lane.b32.xlu1 %v5899_v34, %s11389_s21 }
 0xa1e   : > { %5955 = vrot.lane.b32.xlu0 %v5878_v38, %s11380_s16 }
 0xa20   : > { %5932 = vrot.lane.b32.xlu1 %v5925_v21, %s11387_s29  ;;  %s7318_s29 = smov 86  }
 0xa22   : > { %5967 = vrot.lane.b32.xlu0 %v5925_v21, %s11383_s28  ;;  %s7321_s28 = smov 64  }
 0xa24   : > { %5945 = vrot.lane.b32.xlu1 %v5938_v56, %s11388_s22  ;;  %s11522_s22 = smov 48  }
 0xa26   : > { %5979 = vrot.lane.b32.xlu0 %v5938_v56, %s11389_s21 }
 0xa28   : > { %5981 = vrot.lane.b32.xlu1 %v10495_v45, %s11389_s21 }
 0xa64   : > { %v5914_v28 = vpop.permute.xlu0 %5913 }
 0xa65   : > { %v5995_v44 = vsel %vm3152_vm10, %v5991_v62, %v5914_v28 }
 0xa66   : > { %v5888_v11 = vpop.permute.xlu1 %5887 }
 0xa67   : > { %v5988_v41 = vsel %vm3134_vm8, %v10809_v32, %v5888_v11 }
 0xa68   : > { %v5927_v23 = vpop.permute.xlu0 %5926 }
 0xa69   : > { %v5999_v12 = vsel %vm3161_vm11, %v5995_v44, %v5927_v23 }
 0xa6a   : > { %v5903_v25 = vpop.permute.xlu1 %5902 }
 0xa6b   : > { %v5992_v43 = vsel %vm3143_vm9, %v5988_v41, %v5903_v25 }
 0xa6c   : > { %v5940_v40 = vpop.permute.xlu0 %5939 }
 0xa6d   : > { %v6003_v17 = vsel %vm11507_vm7, %v5999_v12, %v5940_v40 }
 0xa6e   : > { %v5916_v14 = vpop.permute.xlu1 %5915 }
 0xa6f   : > { %v5996_v33 = vsel %vm3152_vm10, %v5992_v43, %v5916_v14 }
 0xa70   : > { %v5952_v51 = vpop.permute.xlu0 %5951 }
 0xa71   : > { %v6007_v32 = vsel %vm11509_vm3, %v6003_v17, %v5952_v51  ;;  %vm11517_vm3 = vmmov %vm11510_vm2 }
 0xa72   : > { %v5929_v4 = vpop.permute.xlu1 %5928 }
 0xa73   : > { %v6000_v55 = vsel %vm3161_vm11, %v5996_v33, %v5929_v4 }
 0xa74   : > { %v5890_v53 = vpop.permute.xlu0 %5889 }
 0xa75   : > { %v5989_v1 = vsel %vm3134_vm8, %v10822_v49, %v5890_v53 }
 0xa76   : > { %v5942_v27 = vpop.permute.xlu1 %5941 }
 0xa77   : > { %v6004_v13 = vsel %vm11508_vm13, %v6000_v55, %v5942_v27  ;;  %vm11516_vm13 = vmmov %vm11507_vm7 }
 0xa78   : > { %v5905_v36 = vpop.permute.xlu0 %5904 }
 0xa79   : > { %v5993_v56 = vsel %vm3143_vm9, %v5989_v1, %v5905_v36 }
 0xa7a   : > { %v5954_v16 = vpop.permute.xlu1 %5953 }
 0xa7b   : > { %v6008_v19 = vsel %vm11510_vm2, %v6004_v13, %v5954_v16 }
 0xa7c   : > { %v5918_v3 = vpop.permute.xlu0 %5917 }
 0xa7d   : > { %v5997_v52 = vsel %vm3152_vm10, %v5993_v56, %v5918_v3  ;;  %v6706_v3 = vld [vmem:[%s11245_s12] ss:$0 sm:$0xff] }
 0xa7e   : > { %v5892_v50 = vpop.permute.xlu1 %5891  ;;  %v6227_v56 = vld [vmem:[%s11246_s13 + $0x100] sm:$0xff] }
 0xa7f   : > { %v5990_v8 = vsel %vm3134_vm8, %v10840_v7, %v5892_v50 }
 0xa80   : > { %v5964_v54 = vpop.permute.xlu0 %5963 }
 0xa81   : > { %v6011_v2 = vsel %vm11511_vm12, %v6007_v32, %v5964_v54 }
 0xa82   : > { %v5907_v60 = vpop.permute.xlu1 %5906 }
 0xa83   : > { %v5994_v61 = vsel %vm3143_vm9, %v5990_v8, %v5907_v60  ;;  %vm11518_vm9 = vmmov %vm11511_vm12 }
 0xa84   : > { %v5976_v35 = vpop.permute.xlu0 %5975 }
 0xa85   : > { %v6015_v9 = vsel %vm11513_vm6, %v6011_v2, %v5976_v35  ;;  %vm6369_vm6 = vcmask 261120  }
 0xa86   : > { %v5920_v10 = vpop.permute.xlu1 %5919 }
 0xa87   : > { %v5998_v30 = vsel %vm3152_vm10, %v5994_v61, %v5920_v10  ;;  %vm11519_vm10 = vmmov %vm11514_vm1 }
 0xa88   : > { %v5931_v63 = vpop.permute.xlu0 %5930 }
 0xa89   : > { %v6001_v23 = vsel %vm3161_vm11, %v5997_v52, %v5931_v63 }
 0xa8a   : > { %v5966_v6 = vpop.permute.xlu1 %5965 }
 0xa8b   : > { %v6012_v22 = vsel %vm11512_vm15, %v6008_v19, %v5966_v6  ;;  %vm11520_vm15 = vmmov %vm11514_vm1 }
 0xa8c   : > { %v5944_v47 = vpop.permute.xlu0 %5943 }
 0xa8d   : > { %v6005_v7 = vsel %vm11516_vm13, %v6001_v23, %v5944_v47 }
 0xa8e   : > { %v5978_v34 = vpop.permute.xlu1 %5977 }
 0xa8f   : > { %v6016_v38 = vsel %vm11514_vm1, %v6012_v22, %v5978_v34  ;;  %vm11523_vm1 = vcmask 785408  }
 0xa90   : > { %v6029_v37 = vcombine.low %v6015_v9, %v6016_v38  ;;  %v5956_v57 = vpop.permute.xlu0 %5955  ;;  %vm11525_vm13 = vmmov %vm11523_vm1 }
 0xa91   : > { %v6009_v14 = vsel %vm11510_vm2, %v6005_v7, %v5956_v57  ;;  %vm6591_vm2 = vcmask 19456  }
 0xa92   : > { %6979 = vmatprep.mubr.msk.f32.mxu0 %vm11515_vm4, %v6029_v37  ;;  %v5933_v20 = vpop.permute.xlu1 %5932 }
 0xa93   : > { %v6002_v28 = vsel %vm3161_vm11, %v5998_v30, %v5933_v20  ;;  %vm11521_vm11 = vmmov %vm11515_vm4 }
 0xa94   : > { %v5968_v21 = vpop.permute.xlu0 %5967  ;;  %vm11524_vm4 = vmmov %vm11523_vm1 }
 0xa95   : > { %v6013_v4 = vsel %vm11518_vm9, %v6009_v14, %v5968_v21 }
 0xa96   : > { %v5946_v11 = vpop.permute.xlu1 %5945 }
 0xa97   : > { %v6006_v25 = vsel %vm11507_vm7, %v6002_v28, %v5946_v11  ;;  %vm6374_vm7 = vcmask 654336  }
 0xa98   : > { %v6010_v49 = vsel %vm11517_vm3, %v6006_v25, %v5958_v39  ;;  %v5980_v40 = vpop.permute.xlu0 %5979  ;;  %vm11526_vm3 = vmmov %vm11523_vm1 }
 0xa99   : > { %v6014_v51 = vsel %vm11511_vm12, %v6010_v49, %v5970_v58  ;;  %v6017_v27 = vsel %vm11519_vm10, %v6013_v4, %v5980_v40  ;;  %v6229_v49 = vld [vmem:[%s11246_s13 + $0x110] sm:$0xff] }
 0xa9a   : > { %v5982_v53 = vpop.permute.xlu1 %5981 }
 0xa9b   : > { %v6018_v36 = vsel %vm11520_vm15, %v6014_v51, %v5982_v53 }
 0xa9c   : > { %v6030_v16 = vcombine.low %v6017_v27, %v6018_v36 }
 0xa9e   : > { %6980 = vmatmul.mubr.msk.f32.vlgmr.msra.gmra.mrb[28].mxu0 %vm11521_vm11, %v6030_v16 }
 0xb71   : > { %v6981_v39 = vpop.f32.mrb[28].mxu0 }
 0xb72   : > { %v6110_v50 = vadd.f32 %v6981_v39, %v6706_v3  ;;  %v6104_v54 = vpop.f32.mrb[29].mxu0  ;;  %v6212_v39 = vld [vmem:[%s11246_s13 + $0x88] sm:$0xff] }
 0xb73   : > { %v6105_v60 = vadd.f32 %v6706_v3, %v6104_v54  ;;  %v6211_v3 = vld [vmem:[%s11246_s13 + $0x80] sm:$0xff] }
 0xb74   : > { %v6116_v35 = vcombine.high %v6110_v50, %v6110_v50  ;;  %v6121_v58 = vmul.f32 0.5, %v6110_v50  ;;  %v6231_v54 = vld [vmem:[%s11246_s13 + $0x120] sm:$0xff] }
 0xb75   : > { %v6115_v24 = vcombine.high %v6105_v60, %v6105_v60  ;;  %v6119_v10 = vmul.f32 0.5, %v6105_v60  ;;  %6155 = vrot.lane.b32.xlu0 %v6105_v60, %s11384_s23  ;;  %v6232_v60 = vld [vmem:[%s11246_s13 + $0x128] sm:$0xff] }
 0xb76   : > { %v6122_v41 = vmul.f32 0.5, %v6116_v35  ;;  %7263 = vtanh.f32 %v6121_v58 }
 0xb77   : > { %v6120_v63 = vmul.f32 0.5, %v6115_v24  ;;  %7265 = vtanh.f32 %v6119_v10  ;;  %6157 = vrot.lane.b32.xlu1 %v6115_v24, %s11384_s23  ;;  %v6196_v24 = vld [vmem:[%s11246_s13 + $0x8] sm:$0xff] }
 0xb78   : > { %7267 = vtanh.f32 %v6122_v41  ;;  %v7160_v41 = vpack.c.bf16 %v6232_v60, %v6231_v54  ;;  %v6223_v60 = vld [vmem:[%s11246_s13 + $0xe0] sm:$0xff] }
 0xb79   : > { %7269 = vtanh.f32 %v6120_v63 }
 0xb80   : > { %v7264_v62 = vpop.eup %7263 }
 0xb81   : > { %v7266_v43 = vpop.eup %7265  ;;  %v6131_v12 = vmul.f32 1.442695, %v7264_v62  ;;  %v6213_v62 = vld [vmem:[%s11246_s13 + $0x90] sm:$0xff] }
 0xb82   : > { %v7268_v44 = vpop.eup %7267  ;;  %v6127_v33 = vmul.f32 1.442695, %v7266_v43  ;;  %v6214_v43 = vld [vmem:[%s11246_s13 + $0x98] sm:$0xff] }
 0xb83   : > { %v7270_v6 = vpop.eup %7269  ;;  %v6133_v17 = vmul.f32 1.442695, %v7268_v44  ;;  %v6233_v44 = vld [vmem:[%s11246_s13 + $0x130] sm:$0xff] }
 0xb84   : > { %7271 = vpow2.f32 %v6127_v33  ;;  %v6129_v55 = vmul.f32 1.442695, %v7270_v6  ;;  %v7125_v6 = vpack.c.bf16 %v6214_v43, %v6213_v62 }
 0xb86   : > { %7273 = vpow2.f32 %v6129_v55  ;;  %v6197_v55 = vld [vmem:[%s11246_s13 + $0x10] sm:$0xff] }
 0xb87   : > { %7275 = vpow2.f32 %v6131_v12  ;;  %v6234_v12 = vld [vmem:[%s11246_s13 + $0x138] sm:$0xff] }
 0xb88   : > { %7277 = vpow2.f32 %v6133_v17  ;;  %v7163_v17 = vpack.c.bf16 %v6234_v12, %v6233_v44  ;;  %v6208_v44 = vld [vmem:[%s11246_s13 + $0x68] sm:$0xff]  ;;  %v6226_v12 = vld [vmem:[%s11246_s13 + $0xf8] sm:$0xff] }
 0xb8e   : > { %v7272_v13 = vpop.eup %7271 }
 0xb8f   : > { %6139 = vrot.lane.b32.xlu0 %v7272_v13, %s7318_s29  ;;  %v6198_v13 = vld [vmem:[%s11246_s13 + $0x18] sm:$0xff] }
 0xb90   : > { %v7274_v47 = vpop.eup %7273 }
 0xb91   : > { %6141 = vrot.lane.b32.xlu1 %v7274_v47, %s7318_s29  ;;  %v7276_v32 = vpop.eup %7275 }
 0xb92   : > { %v7278_v19 = vpop.eup %7277 }
 0xb93   : > { %6143 = vrot.lane.b32.xlu0 %v7276_v32, %s7318_s29  ;;  %v7127_v32 = vpack.c.bf16 %v6198_v13, %v6197_v55  ;;  %v6246_v13 = vld [vmem:[%s11246_s13 + $0x198] sm:$0xff] }
 0xb95   : > { %6145 = vrot.lane.b32.xlu1 %v7278_v19, %s7318_s29 }
 0xb97   : > { %6159 = vrot.lane.b32.xlu0 %v6110_v50, %s11384_s23  ;;  %v7121_v50 = vpack.c.bf16 %v6212_v39, %v6211_v3  ;;  %v6205_v3 = vld [vmem:[%s11246_s13 + $0x50] sm:$0xff]  ;;  %v6206_v39 = vld [vmem:[%s11246_s13 + $0x58] sm:$0xff] }
 0xb98   : > { %v7143_v54 = vpack.c.bf16 %v6206_v39, %v6205_v3 }
 0xb99   : > { %6161 = vrot.lane.b32.xlu1 %v6116_v35, %s11384_s23  ;;  %v6195_v35 = vld [vmem:[%s11246_s13] sm:$0xff]  ;;  %7122 = vmatprep.subr.bf16.mxu0 %v7121_v50 }
 0xb9a   : > { %v7123_v63 = vpack.c.bf16 %v6196_v24, %v6195_v35  ;;  %v6224_v35 = vld [vmem:[%s11246_s13 + $0xe8] sm:$0xff]  ;;  %v6243_v24 = vld [vmem:[%s11246_s13 + $0x180] sm:$0xff] }
 0xb9b   : > { %6271 = vrot.lane.b32.xlu0 %v10495_v45, %s11479_s26 }
 0xb9c   : > { %7124 = vmatpush3.bf16.msra.mxu0 %v7123_v63  ;;  %v6207_v63 = vld [vmem:[%s11246_s13 + $0x60] sm:$0xff] }
 0xb9d   : > { %7126 = vmatprep.subr.bf16.mxu0 %v7125_v6  ;;  %v6225_v6 = vld [vmem:[%s11246_s13 + $0xf0] sm:$0xff] }
 0xb9e   : > { %v7149_v55 = vpack.c.bf16 %v6226_v12, %v6225_v6 }
 0xb9f   : > { %6256 = vrot.lane.b32.xlu0 %v10504_v29, %s11522_s22 }
 0xba0   : > { %7128 = vmatpush3.bf16.msra.mxu0 %v7127_v32  ;;  %v6209_v32 = vld [vmem:[%s11246_s13 + $0x70] sm:$0xff] }
 0xbe7   : > { %v6156_v2 = vpop.permute.xlu0 %6155 }
 0xbe9   : > { %v6158_v22 = vpop.permute.xlu1 %6157 }
 0xc01   : > { %v6140_v34 = vpop.permute.xlu0 %6139 }
 0xc02   : > { %v6151_v9 = vmul.f32 %v6140_v34, %v10478_v46  ;;  %v6228_v46 = vld [vmem:[%s11246_s13 + $0x108] sm:$0xff]  ;;  %v6235_v34 = vld [vmem:[%s11246_s13 + $0x140] sm:$0xff] }
 0xc03   : > { %v6142_v38 = vpop.permute.xlu1 %6141 }
 0xc04   : > { %v6152_v37 = vmul.f32 %v6142_v38, %v10482_v48  ;;  %v6167_v20 = vadd.f32 %v6156_v2, %v6151_v9  ;;  %v7154_v48 = vpack.c.bf16 %v6228_v46, %v6227_v56  ;;  %v6215_v2 = vld [vmem:[%s11246_s13 + $0xa0] sm:$0xff]  ;;  %v6236_v38 = vld [vmem:[%s11246_s13 + $0x148] sm:$0xff] }
 0xc05   : > { %v6144_v57 = vpop.permute.xlu0 %6143 }
 0xc06   : > { %v6168_v8 = vadd.f32 %v6158_v22, %v6152_v37  ;;  %v6153_v21 = vmul.f32 %v6144_v57, %v10490_v26  ;;  %v6171_v23 = vsel %vm3134_vm8, %v10801_v18, %v6167_v20  ;;  %7155 = vmatpush1.bf16.msra.mxu1 %v7154_v48  ;;  %v6216_v22 = vld [vmem:[%s11246_s13 + $0xa8] sm:$0xff]  ;;  %v6199_v37 = vld [vmem:[%s11246_s13 + $0x20] sm:$0xff]  ;;  %v7166_v57 = vpack.c.bf16 %v6236_v38, %v6235_v34  ;;  %v6201_v48 = vld [vmem:[%s11246_s13 + $0x30] sm:$0xff] }
 0xc07   : > { %v6146_v1 = vpop.permute.xlu1 %6145  ;;  %7156 = vmatprep.subr.bf16.mxu1 %v7313_v0  ;;  %v6179_v18 = vrot.slane %v6171_v23, 7  ;;  %v7129_v9 = vpack.c.bf16 %v6216_v22, %v6215_v2  ;;  %v6200_v20 = vld [vmem:[%s11246_s13 + $0x28] sm:$0xff]  ;;  %v6210_v34 = vld [vmem:[%s11246_s13 + $0x78] sm:$0xff]  ;;  %v6247_v38 = vld [vmem:[%s11246_s13 + $0x1a0] sm:$0xff] }
 0xc08   : > { %v6172_v61 = vsel %vm3134_vm8, %v10805_v59, %v6168_v8  ;;  %v6154_v28 = vmul.f32 %v6146_v1, %v10497_v31  ;;  %v6230_v31 = vld [vmem:[%s11246_s13 + $0x118] sm:$0xff]  ;;  %v7131_v8 = vpack.c.bf16 %v6200_v20, %v6199_v37  ;;  %v6217_v1 = vld [vmem:[%s11246_s13 + $0xb0] sm:$0xff]  ;;  %v6248_v37 = vld [vmem:[%s11246_s13 + $0x1a8] sm:$0xff] }
 0xc09   : > { %v6180_v30 = vrot.slane %v6172_v61, 7  ;;  %v6160_v52 = vpop.permute.xlu0 %6159  ;;  %v7157_v14 = vpack.c.bf16 %v6230_v31, %v6229_v49  ;;  %v6187_v36 = vsel %vm565_vm0, 0.0, %v6179_v18  ;;  %7130 = vmatprep.subr.bf16.mxu0 %v7129_v9  ;;  %v6218_v61 = vld [vmem:[%s11246_s13 + $0xb8] sm:$0xff]  ;;  %v6240_v49 = vld [vmem:[%s11246_s13 + $0x168] sm:$0xff]  ;;  %v6203_v31 = vld [vmem:[%s11246_s13 + $0x40] sm:$0xff]  ;;  %v7151_v9 = vpack.c.bf16 %v6210_v34, %v6209_v32 }
 0xc0a   : > { %v6169_v11 = vadd.f32 %v6160_v52, %v6153_v21  ;;  %v10998_v10 = vsel %vm5496_vm14, %v6187_v36, 0.0  ;;  %v6237_v21 = vld [vmem:[%s11246_s13 + $0x150] sm:$0xff]  ;;  %7132 = vmatpush3.bf16.msra.mxu0 %v7131_v8  ;;  %v6238_v52 = vld [vmem:[%s11246_s13 + $0x158] sm:$0xff]  ;;  %v6204_v18 = vld [vmem:[%s11246_s13 + $0x48] sm:$0xff]  ;;  %v7184_v20 = vpack.c.bf16 %v6248_v37, %v6247_v38 }
 0xc0b   : > { %v6188_v59 = vsel %vm565_vm0, 0.0, %v6180_v30  ;;  %v6162_v26 = vpop.permute.xlu1 %6161  ;;  %7158 = vmatpush1.bf16.msra.mxu1 %v7157_v14  ;;  %v6253_v56 = vrot.slane %v10998_v10, 1  ;;  %v6268_v46 = vrot.slane %v10998_v10, 2  ;;  %v7133_v30 = vpack.c.bf16 %v6218_v61, %v6217_v1 }
 0xc0c   : > { %v6173_v25 = vsel %vm3134_vm8, %v10825_v15, %v6169_v11  ;;  %v6170_v7 = vadd.f32 %v6162_v26, %v6154_v28  ;;  %v10960_v51 = vsel %vm5496_vm14, %v6188_v59, 0.0  ;;  %7159 = vmatprep.subr.bf16.mxu1 %v7313_v0  ;;  %v6202_v28 = vld [vmem:[%s11246_s13 + $0x38] sm:$0xff]  ;;  %v7169_v11 = vpack.c.bf16 %v6238_v52, %v6237_v21  ;;  %v6219_v59 = vld [vmem:[%s11246_s13 + $0xc0] sm:$0xff]  ;;  %v6220_v26 = vld [vmem:[%s11246_s13 + $0xc8] sm:$0xff] }
 0xc0d   : > { %v6181_v40 = vrot.slane %v6173_v25, 7  ;;  %v10976_v16 = vrot.slane %v10960_v51, 2  ;;  %v7135_v23 = vpack.c.bf16 %v6202_v28, %v6201_v48  ;;  %v6239_v25 = vld [vmem:[%s11246_s13 + $0x160] sm:$0xff]  ;;  %7134 = vmatprep.subr.bf16.mxu0 %v7133_v30  ;;  %v7139_v14 = vpack.c.bf16 %v6204_v18, %v6203_v31  ;;  %v6272_v8 = vpop.permute.xlu0 %6271 }
 0xc0e   : > { %v6174_v15 = vsel %vm3134_vm8, %v10843_v42, %v6170_v7  ;;  %v7137_v7 = vpack.c.bf16 %v6220_v26, %v6219_v59  ;;  %vm6359_vm8 = vcmask 523264  }
 0xc0f   : > { %v6189_v4 = vsel %vm565_vm0, 0.0, %v6181_v40  ;;  %v6182_v27 = vrot.slane %v6174_v15, 7  ;;  %7161 = vmatpush1.bf16.msra.mxu1 %v7160_v41  ;;  %v7172_v40 = vpack.c.bf16 %v6240_v49, %v6239_v25  ;;  %7136 = vmatpush3.bf16.msra.mxu0 %v7135_v23  ;;  %v6221_v15 = vld [vmem:[%s11246_s13 + $0xd0] sm:$0xff]  ;;  %v6244_v41 = vld [vmem:[%s11246_s13 + $0x188] sm:$0xff] }
 0xc10   : > { %v10966_v53 = vsel %vm5496_vm14, %v6189_v4, 0.0  ;;  %7162 = vmatprep.subr.bf16.mxu1 %v7313_v0  ;;  %7138 = vmatprep.subr.bf16.mxu0 %v7137_v7  ;;  %v6222_v4 = vld [vmem:[%s11246_s13 + $0xd8] sm:$0xff]  ;;  %v7178_v43 = vpack.c.bf16 %v6244_v41, %v6243_v24 }
 0xc11   : > { %6288 = vrot.lane.b32.xlu0 %v10966_v53, %s7319_s0  ;;  %6324 = vrot.lane.b32.xlu1 %v10966_v53, %s7320_s1  ;;  %v6270_v42 = vrot.slane %v10966_v53, 2  ;;  %v6190_v33 = vsel %vm565_vm0, 0.0, %v6182_v27  ;;  %v11024_v47 = vrot.slane %v10966_v53, 1  ;;  %v6241_v27 = vld [vmem:[%s11246_s13 + $0x170] sm:$0xff]  ;;  %v7141_v36 = vpack.c.bf16 %v6222_v4, %v6221_v15 }
 0xc12   : > { %v11028_v19 = vsel %vm5496_vm14, %v6190_v33, 0.0  ;;  %v7147_v33 = vpack.c.bf16 %v6208_v44, %v6207_v63  ;;  %vm6354_vm0 = vcmask 130048   ;;  %vm6364_vm14 = vcmask 916480  }
 0xc13   : > { %v6714_v58 = vcombine.low %v10976_v16, %v6270_v42  ;;  %7164 = vmatpush1.bf16.msra.mxu1 %v7163_v17  ;;  %7140 = vmatpush3.bf16.msra.mxu0 %v7139_v14  ;;  %v6296_v62 = vrot.slane %v11028_v19, 1  ;;  %v6245_v17 = vld [vmem:[%s11246_s13 + $0x190] sm:$0xff]  ;;  %v6309_v2 = vrot.slane %v11028_v19, 2 }
 0xc14   : > { %7165 = vmatprep.subr.bf16.mxu1 %v7313_v0  ;;  %7142 = vmatprep.subr.bf16.mxu0 %v7141_v36  ;;  %v7181_v22 = vpack.c.bf16 %v6246_v13, %v6245_v17 }
 0xc15   : > { %6284 = vrot.lane.b32.xlu0 %v10998_v10, %s7319_s0  ;;  %6277 = vrot.lane.b32.xlu1 %v6270_v42, %s11479_s26 }
 0xc16   : > { %6719 = vmatprep.mubr.msk.f32.mxu1 %vm5277_vm5, %v6714_v58  ;;  %v7145_v58 = vpack.c.bf16 %v6224_v35, %v6223_v60 }
 0xc17   : > { %7167 = vmatpush1.bf16.msra.mxu1 %v7166_v57  ;;  %7144 = vmatpush3.bf16.msra.mxu0 %v7143_v54  ;;  %v6254_v57 = vrot.slane %v10960_v51, 1 }
 0xc18   : > { %7168 = vmatprep.subr.bf16.mxu1 %v7313_v0  ;;  %7146 = vmatprep.subr.bf16.mxu0 %v7145_v58 }
 0xc19   : > { %6301 = vrot.lane.b32.xlu0 %v11024_v47, %s7321_s28  ;;  %6290 = vrot.lane.b32.xlu1 %v11028_v19, %s7319_s0 }
 0xc1b   : > { %7170 = vmatpush1.bf16.msra.mxu1 %v7169_v11  ;;  %7148 = vmatpush3.bf16.msra.mxu0 %v7147_v33 }
 0xc1c   : > { %7171 = vmatprep.subr.bf16.mxu1 %v7313_v0  ;;  %7150 = vmatprep.subr.bf16.mxu0 %v7149_v55 }
 0xc1d   : > { %6314 = vrot.lane.b32.xlu0 %v6270_v42, %s7322_s7  ;;  %6262 = vrot.lane.b32.xlu1 %v11024_v47, %s11522_s22  ;;  %v6242_v42 = vld [vmem:[%s11246_s13 + $0x178] sm:$0xff] }
 0xc1e   : > { %v7175_v50 = vpack.c.bf16 %v6242_v42, %v6241_v27 }
 0xc1f   : > { %7173 = vmatpush1.bf16.msra.mxu1 %v7172_v40  ;;  %7152 = vmatpush3.bf16.msra.mxu0 %v7151_v9 }
 0xc20   : > { %7174 = vmatprep.subr.bf16.mxu1 %v7313_v0 }
 0xc21   : > { %6297 = vrot.lane.b32.xlu0 %v6253_v56, %s7321_s28  ;;  %6273 = vrot.lane.b32.xlu1 %v6268_v46, %s11479_s26 }
 0xc23   : > { %7176 = vmatpush1.bf16.msra.mxu1 %v7175_v50 }
 0xc24   : > { %7177 = vmatprep.subr.bf16.mxu1 %v7313_v0 }
 0xc25   : > { %6310 = vrot.lane.b32.xlu0 %v6268_v46, %s7322_s7  ;;  %6286 = vrot.lane.b32.xlu1 %v10960_v51, %s7319_s0 }
 0xc27   : > { %7179 = vmatpush1.bf16.msra.mxu1 %v7178_v43 }
 0xc28   : > { %7180 = vmatprep.subr.bf16.mxu1 %v7313_v0 }
 0xc29   : > { %6322 = vrot.lane.b32.xlu0 %v10960_v51, %s7320_s1  ;;  %6258 = vrot.lane.b32.xlu1 %v6253_v56, %s11522_s22 }
 0xc2b   : > { %7182 = vmatpush1.bf16.msra.mxu1 %v7181_v22  ;;  %v6718_v22 = vcombine.low %v6309_v2, %v10495_v45 }
 0xc2c   : > { %7183 = vmatprep.subr.bf16.mxu1 %v7313_v0  ;;  %v6257_v0 = vpop.permute.xlu0 %6256 }
 0xc2d   : > { %6326 = vrot.lane.b32.xlu0 %v11028_v19, %s7320_s1  ;;  %6303 = vrot.lane.b32.xlu1 %v6296_v62, %s7321_s28  ;;  %v6346_v15 = vsel %vm5277_vm5, %v10486_v5, %v6257_v0 }
 0xc2e   : > { %v6350_v35 = vsel %vm11524_vm4, %v6346_v15, %v6272_v8 }
 0xc2f   : > { %7185 = vmatpush1.bf16.msra.mxu1 %v7184_v20 }
 0xc31   : > { %6275 = vrot.lane.b32.xlu0 %v10976_v16, %s11479_s26  ;;  %6316 = vrot.lane.b32.xlu1 %v6309_v2, %s7322_s7  ;;  %s7323_s26 = smov 80   ;;  %v6710_v2 = vld [vmem:[%s11247_s14] ss:$0 sm:$0xff] }
 0xc35   : > { %6260 = vrot.lane.b32.xlu0 %v6254_v57, %s11522_s22  ;;  %6299 = vrot.lane.b32.xlu1 %v6254_v57, %s7321_s28  ;;  %s6724_s28 = sshll.u32 %s11530_s19, 4 }
 0xc36   : > { %s494_s15 = scalar_lea.vmem %s11527_s30, %s6724_s28 }
 0xc39   : > { %6334 = vrot.lane.b32.xlu0 %v6254_v57, %s7323_s26  ;;  %6312 = vrot.lane.b32.xlu1 %v10976_v16, %s7322_s7 }
 0xc3d   : > { %6338 = vrot.lane.b32.xlu0 %v6296_v62, %s7323_s26  ;;  %6336 = vrot.lane.b32.xlu1 %v11024_v47, %s7323_s26 }
 0xc41   : > { %6328 = vrot.lane.b32.xlu1 %v10486_v5, %s7320_s1 }
 0xc45   : > { %6340 = vrot.lane.b32.xlu1 %v10504_v29, %s7323_s26 }
 0xc83   : > { %v6289_v1 = vpop.permute.xlu0 %6288  ;;  %v6325_v61 = vpop.permute.xlu1 %6324 }
 0xc87   : > { %v6285_v21 = vpop.permute.xlu0 %6284  ;;  %v6278_v56 = vpop.permute.xlu1 %6277 }
 0xc88   : > { %v6355_v4 = vsel %vm6354_vm0, %v6272_v8, %v6285_v21 }
 0xc8b   : > { %v6302_v46 = vpop.permute.xlu0 %6301  ;;  %v6291_v30 = vpop.permute.xlu1 %6290 }
 0xc8c   : > { %v6358_v36 = vsel %vm6354_vm0, %v6278_v56, %v6291_v30 }
 0xc8f   : > { %v6315_v52 = vpop.permute.xlu0 %6314  ;;  %v6263_v48 = vpop.permute.xlu1 %6262 }
 0xc90   : > { %v6349_v63 = vsel %vm5277_vm5, %v10966_v53, %v6263_v48 }
 0xc91   : > { %v6353_v13 = vsel %vm11526_vm3, %v6349_v63, %v6278_v56 }
 0xc93   : > { %v6298_v28 = vpop.permute.xlu0 %6297  ;;  %v6274_v16 = vpop.permute.xlu1 %6273 }
 0xc94   : > { %v6360_v42 = vsel %vm6359_vm8, %v6355_v4, %v6298_v28 }
 0xc97   : > { %v6311_v11 = vpop.permute.xlu0 %6310  ;;  %v6287_v23 = vpop.permute.xlu1 %6286 }
 0xc98   : > { %v6356_v27 = vsel %vm6354_vm0, %v6274_v16, %v6287_v23  ;;  %v6365_v54 = vsel %vm6364_vm14, %v6360_v42, %v6311_v11 }
 0xc9b   : > { %v6323_v47 = vpop.permute.xlu0 %6322  ;;  %v6259_v59 = vpop.permute.xlu1 %6258 }
 0xc9c   : > { %v6347_v18 = vsel %vm5277_vm5, %v10998_v10, %v6259_v59  ;;  %v6370_v44 = vsel %vm6369_vm6, %v6311_v11, %v6323_v47 }
 0xc9d   : > { %v6351_v3 = vsel %vm11523_vm1, %v6347_v18, %v6274_v16 }
 0xc9e   : > { %v6711_v62 = vcombine.low %v6350_v35, %v6351_v3 }
 0xc9f   : > { %v6327_v26 = vpop.permute.xlu0 %6326  ;;  %v6304_v25 = vpop.permute.xlu1 %6303 }
 0xca0   : > { %v6363_v58 = vsel %vm6359_vm8, %v6358_v36, %v6304_v25  ;;  %v6372_v38 = vsel %vm6369_vm6, %v6315_v52, %v6327_v26 }
 0xca3   : > { %v6276_v7 = vpop.permute.xlu0 %6275  ;;  %v6317_v29 = vpop.permute.xlu1 %6316 }
 0xca4   : > { %v6357_v49 = vsel %vm6354_vm0, %v6276_v7, %v6289_v1  ;;  %v6368_v43 = vsel %vm6364_vm14, %v6363_v58, %v6317_v29 }
 0xca5   : > { %v6362_v14 = vsel %vm6359_vm8, %v6357_v49, %v6302_v46 }
 0xca6   : > { %v6367_v10 = vsel %vm6364_vm14, %v6362_v14, %v6315_v52 }
 0xca7   : > { %v6261_v31 = vpop.permute.xlu0 %6260  ;;  %v6300_v40 = vpop.permute.xlu1 %6299  ;;  %v6716_v33 = vcombine.low %v6367_v10, %v6368_v43 }
 0xca8   : > { %v6361_v39 = vsel %vm6359_vm8, %v6356_v27, %v6300_v40  ;;  %v6348_v60 = vsel %vm5277_vm5, %v10960_v51, %v6261_v31 }
 0xca9   : > { %v6352_v51 = vsel %vm11525_vm13, %v6348_v60, %v6276_v7 }
 0xcaa   : > { %v6715_v32 = vcombine.low %v6352_v51, %v6353_v13 }
 0xcab   : > { %v6313_v50 = vpop.permute.xlu1 %6312  ;;  %v6335_v24 = vpop.permute.xlu0 %6334 }
 0xcac   : > { %v6366_v5 = vsel %vm6364_vm14, %v6361_v39, %v6313_v50  ;;  %v6371_v6 = vsel %vm6369_vm6, %v6313_v50, %v6325_v61  ;;  %v6375_v55 = vsel %vm6374_vm7, %v6370_v44, %v6335_v24 }
 0xcad   : > { %v6712_v41 = vcombine.low %v6365_v54, %v6366_v5 }
 0xcaf   : > { %6487 = vmatprep.mubr.f32.mxu0 %v6712_v41  ;;  %v6337_v12 = vpop.permute.xlu1 %6336  ;;  %v6339_v9 = vpop.permute.xlu0 %6338 }
 0xcb0   : > { %v6376_v17 = vsel %vm6374_vm7, %v6371_v6, %v6337_v12  ;;  %6488 = vmatmul.mubr.f32.vlgmr.msra.gmra.mrb[30].mxu0 %v6711_v62  ;;  %v6377_v20 = vsel %vm6374_vm7, %v6372_v38, %v6339_v9 }
 0xcb1   : > { %v6713_v53 = vcombine.low %v6375_v55, %v6376_v17  ;;  %6492 = vmatprep.mubr.f32.mxu0 %v6716_v33 }
 0xcb3   : > { %6563 = vmatmul.mubr.f32.vlgmr.msra.gmra.mrb[6].mxu1 %v6713_v53  ;;  %v6329_v34 = vpop.permute.xlu1 %6328 }
 0xcb4   : > { %6493 = vmatmul.mubr.f32.gmra.mrb[32].mxu0 %v6715_v32  ;;  %6720 = vmatprep.mubr.msk.f32.mxu1 %vm5277_vm5, %v6718_v22  ;;  %v6373_v37 = vsel %vm6369_vm6, %v6317_v29, %v6329_v34 }
 0xcb7   : > { %v6341_v57 = vpop.permute.xlu1 %6340 }
 0xcb8   : > { %v6378_v8 = vsel %vm6374_vm7, %v6373_v37, %v6341_v57 }
 0xcb9   : > { %v6717_v0 = vcombine.low %v6377_v20, %v6378_v8 }
 0xcbb   : > { %6568 = vmatmul.mubr.f32.gmra.mrb[8].mxu1 %v6717_v0 }
 0xd83   : > { %v6860_v19 = vpop.f32.mrb[30].mxu0 }
 0xd84   : > { %v6861_v45 = vpop.f32.mrb[31].mxu0 }
 0xd85   : > { %v6862_v1 = vadd.f32 %v6861_v45, %v6860_v19 }
 0xd86   : > { %v6564_v61 = vpop.f32.mrb[6].mxu1 }
 0xd87   : > { %v6490_v21 = vadd.f32 %v6862_v1, %v6710_v2  ;;  %v6863_v56 = vpop.f32.mrb[32].mxu0  ;;  %v6566_v46 = vpop.f32.mrb[7].mxu1 }
 0xd88   : > { %v6864_v30 = vpop.f32.mrb[33].mxu0 }
 0xd89   : > { %v6565_v52 = vadd.f32 %v6564_v61, %v6490_v21  ;;  %v6865_v48 = vadd.f32 %v6864_v30, %v6863_v56 }
 0xd8b   : > { %v6575_v28 = vcombine.high %v6565_v52, %v6565_v52  ;;  %vm6579_vm5 = vcmp.ge.f32.partialorder %v6565_v52, 0.0  ;;  %v6583_v16 = vmul.f32 0.2, %v6565_v52  ;;  %v6495_v47 = vadd.f32 %v6865_v48, %v6710_v2 }
 0xd8d   : > { %vm6580_vm12 = vcmp.ge.f32.partialorder %v6575_v28, 0.0  ;;  %v6584_v11 = vmul.f32 0.2, %v6575_v28  ;;  %v6587_v23 = vsel %vm6579_vm5, %v6565_v52, %v6583_v16 }
 0xd8e   : > { %6592 = vst.msk [vmem:[%s494_s15] sm:$0xf] %vm6591_vm2, %v6587_v23  ;;  %v6569_v59 = vpop.f32.mrb[8].mxu1 }
 0xd8f   : > { %v6588_v26 = vsel %vm6580_vm12, %v6575_v28, %v6584_v11  ;;  %v6570_v25 = vadd.f32 %v6569_v59, %v6495_v47  ;;  %v6571_v7 = vpop.f32.mrb[9].mxu1 }
 0xd90   : > { %6593 = vst.msk [vmem:[%s494_s15 + $0x4] sm:$0xf] %vm6591_vm2, %v6588_v26 }
 0xd91   : > { %v6576_v29 = vcombine.high %v6570_v25, %v6570_v25  ;;  %vm6581_vm9 = vcmp.ge.f32.partialorder %v6570_v25, 0.0  ;;  %v6585_v49 = vmul.f32 0.2, %v6570_v25 }
 0xd93   : > { %vm6582_vm10 = vcmp.ge.f32.partialorder %v6576_v29, 0.0  ;;  %v6586_v31 = vmul.f32 0.2, %v6576_v29  ;;  %v6589_v40 = vsel %vm6581_vm9, %v6570_v25, %v6585_v49 }
 0xd94   : > { %6594 = vst.msk [vmem:[%s494_s15 + $0x8] sm:$0xf] %vm6591_vm2, %v6589_v40 }
 0xd95   : > { %v6590_v18 = vsel %vm6582_vm10, %v6576_v29, %v6586_v31 }
 0xd96   : > { %6595 = vst.msk [vmem:[%s494_s15 + $0xc] sm:$0xf] %vm6591_vm2, %v6590_v18 }
 0xd97 PF: > { %s11528_s19 = sld [smem:[#allocation2_spill]] }
 0xd9d   : > { %s25_s18 = sadd.s32 1, %s11528_s19  }
 0xd9e   : > { %p22_p4 = scmp.ge.s32.totalorder %s25_s18, 4  }
 0xda0   :  { %24 = sbr.rel (!%p22_p4) target bundleno = 11 (0xb), region = 110 }

</bundles_post_ra>
